<compile_context>
chip_gen: v7x
topology: tpu7x:2x2x1
jax: 0.10.0
libtpu: 0.0.40
codegen_flags: <defaults>
</compile_context>

<pallas_src>
import jax
import jax.numpy as jnp
from jax.experimental import pallas as pl
from jax.experimental.pallas import tpu as pltpu

EPS = 1e-5
LANE = 128                      # channel dims padded to multiples of the lane width
VMEM_LIMIT = 48 * 1024 * 1024   # explicit budget; fits v7x's 64 MiB physical VMEM


def _round_up(x, m):
    return (x + m - 1) // m * m


def _pick_tile_h(h, w, target_rows=512):
    """Largest divisor of H such that TILE_H * W <= target_rows (MXU-sized M)."""
    best = 1
    for t in range(1, h + 1):
        if h % t == 0 and t * w <= target_rows:
            best = t
    return best


def _pick_tile_m(m):
    """Row tile for the mem-bound elementwise kernel (keep grid >= 2)."""
    for t in (2048, 1024, 512, 256, 128, 64, 32, 16, 8):
        if m % t == 0 and m // t >= 2:
            return t
    return m


# ------------- kernel A: 3x3 conv (in-VMEM taps) + BN partial stats -----------
def _conv3x3_stats_kernel(a0_ref, a1_ref, a2_ref, w_ref, y_ref, stats_ref):
    """One (TILE_H, W) row-block of a SAME 3x3 conv.

    a*_ref   : (1, TILE_H, W+2, Cp) bf16 -- activation rows h+kh (kh=0,1,2),
               zero padded along W (and along H via the shifted views).
    w_ref    : (9*Cp, Cp) bf16, rows ordered tap-major (kh*3+kw) then cin.
    y_ref    : (1, TILE_H, W, Cp) bf16 raw conv output.
    stats_ref: (1, 1, 2, Cp) f32 per-tile [sum, sum_of_squares] over rows.
    """
    tile_h, wp2, cp = a0_ref.shape[1], a0_ref.shape[2], a0_ref.shape[3]
    w_out = wp2 - 2

    # In-VMEM im2col over the 9 taps (no HBM materialization of the 9x copy).
    taps = []
    for a_ref in (a0_ref, a1_ref, a2_ref):          # kh = 0, 1, 2
        for kw in range(3):
            taps.append(a_ref[0, :, kw:kw + w_out, :])
    cols = jnp.concatenate(taps, axis=-1).reshape(tile_h * w_out, 9 * cp)

    y = jnp.dot(cols, w_ref[...], preferred_element_type=jnp.float32)

    # BN batch-stat partials from the f32 accumulator (before the bf16 cast).
    s = jnp.sum(y, axis=0, keepdims=True)           # (1, Cp)
    ss = jnp.sum(y * y, axis=0, keepdims=True)      # (1, Cp)
    stats_ref[...] = jnp.concatenate([s, ss], axis=0).reshape(1, 1, 2, cp)

    y_ref[...] = y.reshape(1, tile_h, w_out, cp).astype(y_ref.dtype)


def conv3x3_stats(a0, a1, a2, w_mat, *, tile_h):
    n, h, wp2, cp = a0.shape
    w_out = wp2 - 2
    ht = h // tile_h
    act_spec = pl.BlockSpec((1, tile_h, wp2, cp), lambda i, j: (i, j, 0, 0))
    return pl.pallas_call(
        _conv3x3_stats_kernel,
        out_shape=(
            jax.ShapeDtypeStruct((n, h, w_out, cp), jnp.bfloat16),
            jax.ShapeDtypeStruct((n, ht, 2, cp), jnp.float32),
        ),
        grid=(n, ht),
        in_specs=[
            act_spec, act_spec, act_spec,
            pl.BlockSpec((9 * cp, cp), lambda i, j: (0, 0)),
        ],
        out_specs=(
            pl.BlockSpec((1, tile_h, w_out, cp), lambda i, j: (i, j, 0, 0)),
            pl.BlockSpec((1, 1, 2, cp), lambda i, j: (i, j, 0, 0)),
        ),
        compiler_params=pltpu.CompilerParams(
            dimension_semantics=("parallel", "parallel"),
            vmem_limit_bytes=VMEM_LIMIT),
    )(a0, a1, a2, w_mat)


# ------------- kernel B: BN2 apply + residual add + ReLU (final) --------------
def _bn_add_relu_kernel(y_ref, id_ref, scale_ref, shift_ref, o_ref):
    y = y_ref[...].astype(jnp.float32)
    o_ref[...] = jnp.maximum(y * scale_ref[...] + shift_ref[...] + id_ref[...], 0.0)


def bn_add_relu(y2d, id2d, scale, shift, *, tile_m):
    m, c = y2d.shape
    return pl.pallas_call(
        _bn_add_relu_kernel,
        out_shape=jax.ShapeDtypeStruct((m, c), jnp.float32),
        grid=(m // tile_m,),
        in_specs=[
            pl.BlockSpec((tile_m, c), lambda i: (i, 0)),   # y2 (bf16)
            pl.BlockSpec((tile_m, c), lambda i: (i, 0)),   # identity (f32)
            pl.BlockSpec((1, c), lambda i: (0, 0)),
            pl.BlockSpec((1, c), lambda i: (0, 0)),
        ],
        out_specs=pl.BlockSpec((tile_m, c), lambda i: (i, 0)),
        compiler_params=pltpu.CompilerParams(
            dimension_semantics=("parallel",), vmem_limit_bytes=VMEM_LIMIT),
    )(y2d, id2d, scale, shift)


# ------------------------------ wrapper helpers --------------------------------
def _shifted_rows(act):
    """(N,H,W,Cp) -> three (N,H,W+2,Cp) views: padded rows h+0, h+1, h+2."""
    h = act.shape[1]
    p = jnp.pad(act, ((0, 0), (1, 1), (1, 1), (0, 0)))
    return p[:, 0:h], p[:, 1:h + 1], p[:, 2:h + 2]


def _prep_weight(w_hwio, cp):
    """(3,3,Cin,Cout) HWIO -> zero-padded (9*Cp, Cp) bf16 matmul weight."""
    _, _, cin, cout = w_hwio.shape
    wp = jnp.pad(w_hwio, ((0, 0), (0, 0), (0, cp - cin), (0, cp - cout)))
    return wp.reshape(9 * cp, cp).astype(jnp.bfloat16)


def _pad_bn(gamma, beta, cp):
    c = gamma.shape[0]
    g = jnp.concatenate([gamma.astype(jnp.float32), jnp.ones((cp - c,), jnp.float32)])
    b = jnp.concatenate([beta.astype(jnp.float32), jnp.zeros((cp - c,), jnp.float32)])
    return g, b


def _bn_scale_shift(stats, gamma, beta, count):
    """Global (training-mode) BN: fold per-tile partials into scale/shift."""
    s = jnp.sum(stats[..., 0, :], axis=(0, 1))
    ss = jnp.sum(stats[..., 1, :], axis=(0, 1))
    mean = s / count
    var = jnp.maximum(ss / count - mean * mean, 0.0)      # biased, like PyTorch fwd
    scale = gamma * jax.lax.rsqrt(var + EPS)
    shift = beta - mean * scale
    return scale[None, :], shift[None, :]                 # (1, Cp)


# ------------------------------- full BasicBlock -------------------------------
@jax.jit
def basic_block_forward(x_nchw, params):
    n, cin, h, w = x_nchw.shape
    planes = params["w1"].shape[-1]
    # downsample=None + stride=1 (module defaults) => inplanes == planes.
    assert params["w2"].shape[-1] == planes and cin == planes

    cp = _round_up(planes, LANE)
    m = n * h * w
    tile_h = _pick_tile_h(h, w)
    tile_m = _pick_tile_m(m)

    x_nhwc = jnp.transpose(x_nchw, (0, 2, 3, 1)).astype(jnp.float32)
    x_pad = jnp.pad(x_nhwc, ((0, 0), (0, 0), (0, 0), (0, cp - cin)))
    identity2d = x_pad.reshape(m, cp)                      # residual path stays f32

    w1 = _prep_weight(params["w1"], cp)
    w2 = _prep_weight(params["w2"], cp)
    g1, b1 = _pad_bn(params["g1"], params["b1"], cp)
    g2, b2 = _pad_bn(params["g2"], params["b2"], cp)

    # --- conv1 (+ BN1 batch-stat partials) ---
    a0, a1, a2 = _shifted_rows(x_pad.astype(jnp.bfloat16))
    y1, st1 = conv3x3_stats(a0, a1, a2, w1, tile_h=tile_h)
    sc1, sh1 = _bn_scale_shift(st1, g1, b1, float(m))

    # --- BN1 apply + ReLU fused into producing conv2's shifted inputs ---
    # (XLA fuses the elementwise math into the pad/slice copies conv2 needs
    #  anyway, so there is no separate o1 intermediate round-tripping HBM.)
    act1 = jnp.maximum(y1.astype(jnp.float32) * sc1 + sh1, 0.0).astype(jnp.bfloat16)
    c0, c1, c2 = _shifted_rows(act1)

    # --- conv2 (+ BN2 batch-stat partials) ---
    y2, st2 = conv3x3_stats(c0, c1, c2, w2, tile_h=tile_h)
    sc2, sh2 = _bn_scale_shift(st2, g2, b2, float(m))

    # --- BN2 apply + residual add + ReLU ---
    out2d = bn_add_relu(y2.reshape(m, cp), identity2d, sc2, sh2, tile_m=tile_m)

    out = out2d[:, :planes].reshape(n, h, w, planes)
    return jnp.transpose(out, (0, 3, 1, 2))                # NHWC -> NCHW


# ---------------------------------- reference -----------------------------------
def _ref_forward(x_nchw, params):
    """Pure-JAX reference mirroring the kernel's precision policy
    (bf16 conv operands, f32 accumulation, f32 BN math)."""
    x = jnp.transpose(x_nchw, (0, 2, 3, 1)).astype(jnp.float32)

    def conv(inp, w_hwio):
        return jax.lax.conv_general_dilated(
            inp.astype(jnp.bfloat16), w_hwio.astype(jnp.bfloat16),
            window_strides=(1, 1), padding="SAME",
            dimension_numbers=("NHWC", "HWIO", "NHWC"),
            preferred_element_type=jnp.float32)

    def bn_apply(y, g, b):
        mu = y.mean(axis=(0, 1, 2))
        var = ((y - mu) ** 2).mean(axis=(0, 1, 2))          # biased
        scale = g * jax.lax.rsqrt(var + EPS)
        shift = b - mu * scale
        return y * scale + shift

    y = jax.nn.relu(bn_apply(conv(x, params["w1"]), params["g1"], params["b1"]))
    y = bn_apply(conv(y, params["w2"]), params["g2"], params["b2"])
    y = jax.nn.relu(y + x)
    return jnp.transpose(y, (0, 3, 1, 2))


if __name__ == "__main__":
    # BasicBlock defaults: expansion=1, stride=1, downsample=None -> inplanes == planes.
    N, planes, H, W = 2, 4, 16, 16
    inplanes = planes

    key = jax.random.PRNGKey(0)
    ks = jax.random.split(key, 7)

    params = {
        # conv weights in HWIO layout: (3, 3, Cin, Cout)
        # (PyTorch OIHW weight maps here via w.permute(2, 3, 1, 0))
        "w1": 0.1 * jax.random.normal(ks[0], (3, 3, inplanes, planes), jnp.float32),
        "w2": 0.1 * jax.random.normal(ks[1], (3, 3, planes, planes), jnp.float32),
        # BN affine params (PyTorch default gamma=1, beta=0; perturbed for a
        # non-trivial, deterministic test)
        "g1": 1.0 + 0.1 * jax.random.normal(ks[2], (planes,), jnp.float32),
        "b1": 0.1 * jax.random.normal(ks[3], (planes,), jnp.float32),
        "g2": 1.0 + 0.1 * jax.random.normal(ks[4], (planes,), jnp.float32),
        "b2": 0.1 * jax.random.normal(ks[5], (planes,), jnp.float32),
    }

    x = jax.random.normal(ks[6], (N, inplanes, H, W), jnp.float32)

    out = basic_block_forward(x, params)
    out = jax.block_until_ready(out)

    ref = _ref_forward(x, params)
    assert out.shape == (N, planes, H, W), out.shape
    max_err = float(jnp.max(jnp.abs(out - ref)))
    # Tolerance reflects bf16 storage of the intermediate conv outputs.
    assert jnp.allclose(out, ref, atol=1e-2, rtol=1e-2), max_err

    print("KERNEL_OK")
</pallas_src>

<mosaic_0001>
module attributes {stable_mosaic.version = 11 : i64} {
  func.func @_conv3x3_stats_kernel(%arg0: i32, %arg1: i32, %arg2: memref<1x16x18x128xbf16, #tpu.memory_space<vmem>>, %arg3: memref<1x16x18x128xbf16, #tpu.memory_space<vmem>>, %arg4: memref<1x16x18x128xbf16, #tpu.memory_space<vmem>>, %arg5: memref<1152x128xbf16, #tpu.memory_space<vmem>>, %arg6: memref<1x16x16x128xbf16, #tpu.memory_space<vmem>>, %arg7: memref<1x1x2x128xf32, #tpu.memory_space<vmem>>) attributes {dimension_semantics = [#tpu.dimension_semantics<parallel>, #tpu.dimension_semantics<parallel>], iteration_bounds = array<i64: 2, 1>, scalar_prefetch = 0 : i64, scratch_operands = 0 : i64, tpu.core_type = #tpu.core_type<tc>, window_params = [{transform_indices = @transform_0, window_bounds = array<i64: 1, 16, 18, 128>}, {transform_indices = @transform_1, window_bounds = array<i64: 1, 16, 18, 128>}, {transform_indices = @transform_2, window_bounds = array<i64: 1, 16, 18, 128>}, {pipeline_mode = #tpu.pipeline_mode<synchronous>, transform_indices = @transform_3, window_bounds = array<i64: 1152, 128>}, {transform_indices = @transform_4, window_bounds = array<i64: 1, 16, 16, 128>}, {transform_indices = @transform_5, window_bounds = array<i64: 1, 1, 2, 128>}]} {
    %c0 = arith.constant 0 : index
    %c0_0 = arith.constant 0 : index
    %c0_1 = arith.constant 0 : index
    %c0_2 = arith.constant 0 : index
    %0 = vector.load %arg2[%c0, %c0_0, %c0_1, %c0_2] : memref<1x16x18x128xbf16, #tpu.memory_space<vmem>>, vector<1x16x16x128xbf16>
    %1 = vector.shape_cast %0 : vector<1x16x16x128xbf16> to vector<16x16x128xbf16>
    %c0_3 = arith.constant 0 : index
    %c0_4 = arith.constant 0 : index
    %c1 = arith.constant 1 : index
    %c0_5 = arith.constant 0 : index
    %2 = vector.load %arg2[%c0_3, %c0_4, %c1, %c0_5] : memref<1x16x18x128xbf16, #tpu.memory_space<vmem>>, vector<1x16x16x128xbf16>
    %3 = vector.shape_cast %2 : vector<1x16x16x128xbf16> to vector<16x16x128xbf16>
    %c0_6 = arith.constant 0 : index
    %c0_7 = arith.constant 0 : index
    %c2 = arith.constant 2 : index
    %c0_8 = arith.constant 0 : index
    %4 = vector.load %arg2[%c0_6, %c0_7, %c2, %c0_8] : memref<1x16x18x128xbf16, #tpu.memory_space<vmem>>, vector<1x16x16x128xbf16>
    %5 = vector.shape_cast %4 : vector<1x16x16x128xbf16> to vector<16x16x128xbf16>
    %c0_9 = arith.constant 0 : index
    %c0_10 = arith.constant 0 : index
    %c0_11 = arith.constant 0 : index
    %c0_12 = arith.constant 0 : index
    %6 = vector.load %arg3[%c0_9, %c0_10, %c0_11, %c0_12] : memref<1x16x18x128xbf16, #tpu.memory_space<vmem>>, vector<1x16x16x128xbf16>
    %7 = vector.shape_cast %6 : vector<1x16x16x128xbf16> to vector<16x16x128xbf16>
    %c0_13 = arith.constant 0 : index
    %c0_14 = arith.constant 0 : index
    %c1_15 = arith.constant 1 : index
    %c0_16 = arith.constant 0 : index
    %8 = vector.load %arg3[%c0_13, %c0_14, %c1_15, %c0_16] : memref<1x16x18x128xbf16, #tpu.memory_space<vmem>>, vector<1x16x16x128xbf16>
    %9 = vector.shape_cast %8 : vector<1x16x16x128xbf16> to vector<16x16x128xbf16>
    %c0_17 = arith.constant 0 : index
    %c0_18 = arith.constant 0 : index
    %c2_19 = arith.constant 2 : index
    %c0_20 = arith.constant 0 : index
    %10 = vector.load %arg3[%c0_17, %c0_18, %c2_19, %c0_20] : memref<1x16x18x128xbf16, #tpu.memory_space<vmem>>, vector<1x16x16x128xbf16>
    %11 = vector.shape_cast %10 : vector<1x16x16x128xbf16> to vector<16x16x128xbf16>
    %c0_21 = arith.constant 0 : index
    %c0_22 = arith.constant 0 : index
    %c0_23 = arith.constant 0 : index
    %c0_24 = arith.constant 0 : index
    %12 = vector.load %arg4[%c0_21, %c0_22, %c0_23, %c0_24] : memref<1x16x18x128xbf16, #tpu.memory_space<vmem>>, vector<1x16x16x128xbf16>
    %13 = vector.shape_cast %12 : vector<1x16x16x128xbf16> to vector<16x16x128xbf16>
    %c0_25 = arith.constant 0 : index
    %c0_26 = arith.constant 0 : index
    %c1_27 = arith.constant 1 : index
    %c0_28 = arith.constant 0 : index
    %14 = vector.load %arg4[%c0_25, %c0_26, %c1_27, %c0_28] : memref<1x16x18x128xbf16, #tpu.memory_space<vmem>>, vector<1x16x16x128xbf16>
    %15 = vector.shape_cast %14 : vector<1x16x16x128xbf16> to vector<16x16x128xbf16>
    %c0_29 = arith.constant 0 : index
    %c0_30 = arith.constant 0 : index
    %c2_31 = arith.constant 2 : index
    %c0_32 = arith.constant 0 : index
    %16 = vector.load %arg4[%c0_29, %c0_30, %c2_31, %c0_32] : memref<1x16x18x128xbf16, #tpu.memory_space<vmem>>, vector<1x16x16x128xbf16>
    %17 = vector.shape_cast %16 : vector<1x16x16x128xbf16> to vector<16x16x128xbf16>
    %18 = tpu.concatenate %1, %3, %5, %7, %9, %11, %13, %15, %17 in 2 : vector<16x16x128xbf16>, vector<16x16x128xbf16>, vector<16x16x128xbf16>, vector<16x16x128xbf16>, vector<16x16x128xbf16>, vector<16x16x128xbf16>, vector<16x16x128xbf16>, vector<16x16x128xbf16>, vector<16x16x128xbf16> -> vector<16x16x1152xbf16>
    %19 = vector.shape_cast %18 : vector<16x16x1152xbf16> to vector<256x1152xbf16>
    %c0_33 = arith.constant 0 : index
    %c0_34 = arith.constant 0 : index
    %20 = vector.load %arg5[%c0_33, %c0_34] : memref<1152x128xbf16, #tpu.memory_space<vmem>>, vector<1152x128xbf16>
    %cst = arith.constant dense<0.000000e+00> : vector<256x128xf32>
    %21 = tpu.matmul %19, %20, %cst {dimension_numbers = #tpu.dot_dimension_numbers<[1], [0], [0], [1], [0, 0, 1, 1], [], []>} : vector<256x1152xbf16>, vector<1152x128xbf16>, vector<256x128xf32> -> vector<256x128xf32>
    %cst_35 = arith.constant dense<0.000000e+00> : vector<128xf32>
    %22 = vector.multi_reduction <add>, %21, %cst_35 [0] : vector<256x128xf32> to vector<128xf32>
    %23 = vector.shape_cast %22 : vector<128xf32> to vector<1x128xf32>
    %24 = arith.mulf %21, %21 : vector<256x128xf32>
    %cst_36 = arith.constant dense<0.000000e+00> : vector<128xf32>
    %25 = vector.multi_reduction <add>, %24, %cst_36 [0] : vector<256x128xf32> to vector<128xf32>
    %26 = vector.shape_cast %25 : vector<128xf32> to vector<1x128xf32>
    %27 = tpu.concatenate %23, %26 in 0 : vector<1x128xf32>, vector<1x128xf32> -> vector<2x128xf32>
    %28 = vector.shape_cast %27 : vector<2x128xf32> to vector<1x1x2x128xf32>
    %c0_37 = arith.constant 0 : index
    %c0_38 = arith.constant 0 : index
    %c0_39 = arith.constant 0 : index
    %c0_40 = arith.constant 0 : index
    %29 = vector.load %arg7[%c0_37, %c0_38, %c0_39, %c0_40] : memref<1x1x2x128xf32, #tpu.memory_space<vmem>>, vector<1x1x2x128xf32>
    tpu.vector_store %arg7[%c0_37, %c0_38, %c0_39, %c0_40], %28 {strides = array<i32>} : memref<1x1x2x128xf32, #tpu.memory_space<vmem>>, vector<1x1x2x128xf32>,
    %30 = vector.shape_cast %21 : vector<256x128xf32> to vector<1x16x16x128xf32>
    %31 = arith.truncf %30 : vector<1x16x16x128xf32> to vector<1x16x16x128xbf16>
    %c0_41 = arith.constant 0 : index
    %c0_42 = arith.constant 0 : index
    %c0_43 = arith.constant 0 : index
    %c0_44 = arith.constant 0 : index
    %32 = vector.load %arg6[%c0_41, %c0_42, %c0_43, %c0_44] : memref<1x16x16x128xbf16, #tpu.memory_space<vmem>>, vector<1x16x16x128xbf16>
    tpu.vector_store %arg6[%c0_41, %c0_42, %c0_43, %c0_44], %31 {strides = array<i32>} : memref<1x16x16x128xbf16, #tpu.memory_space<vmem>>, vector<1x16x16x128xbf16>,
    return
  }
  func.func @transform_0(%arg0: i32, %arg1: i32) -> (i32, i32, i32, i32) {
    %c0_i32 = arith.constant 0 : i32
    %c0_i32_0 = arith.constant 0 : i32
    %c0_i32_1 = arith.constant 0 : i32
    return %arg0, %arg1, %c0_i32, %c0_i32_0 : i32, i32, i32, i32
  }
  func.func @transform_1(%arg0: i32, %arg1: i32) -> (i32, i32, i32, i32) {
    %c0_i32 = arith.constant 0 : i32
    %c0_i32_0 = arith.constant 0 : i32
    %c0_i32_1 = arith.constant 0 : i32
    return %arg0, %arg1, %c0_i32, %c0_i32_0 : i32, i32, i32, i32
  }
  func.func @transform_2(%arg0: i32, %arg1: i32) -> (i32, i32, i32, i32) {
    %c0_i32 = arith.constant 0 : i32
    %c0_i32_0 = arith.constant 0 : i32
    %c0_i32_1 = arith.constant 0 : i32
    return %arg0, %arg1, %c0_i32, %c0_i32_0 : i32, i32, i32, i32
  }
  func.func @transform_3(%arg0: i32, %arg1: i32) -> (i32, i32) {
    %c0_i32 = arith.constant 0 : i32
    %c0_i32_0 = arith.constant 0 : i32
    %c0_i32_1 = arith.constant 0 : i32
    return %c0_i32, %c0_i32_0 : i32, i32
  }
  func.func @transform_4(%arg0: i32, %arg1: i32) -> (i32, i32, i32, i32) {
    %c0_i32 = arith.constant 0 : i32
    %c0_i32_0 = arith.constant 0 : i32
    %c0_i32_1 = arith.constant 0 : i32
    return %arg0, %arg1, %c0_i32, %c0_i32_0 : i32, i32, i32, i32
  }
  func.func @transform_5(%arg0: i32, %arg1: i32) -> (i32, i32, i32, i32) {
    %c0_i32 = arith.constant 0 : i32
    %c0_i32_0 = arith.constant 0 : i32
    %c0_i32_1 = arith.constant 0 : i32
    return %arg0, %arg1, %c0_i32, %c0_i32_0 : i32, i32, i32, i32
  }
}

module attributes {stable_mosaic.version = 11 : i64} {
  func.func @_bn_add_relu_kernel(%arg0: i32, %arg1: memref<256x128xbf16, #tpu.memory_space<vmem>>, %arg2: memref<256x128xf32, #tpu.memory_space<vmem>>, %arg3: memref<1x128xf32, #tpu.memory_space<vmem>>, %arg4: memref<1x128xf32, #tpu.memory_space<vmem>>, %arg5: memref<256x128xf32, #tpu.memory_space<vmem>>) attributes {dimension_semantics = [#tpu.dimension_semantics<parallel>], iteration_bounds = array<i64: 2>, scalar_prefetch = 0 : i64, scratch_operands = 0 : i64, tpu.core_type = #tpu.core_type<tc>, window_params = [{transform_indices = @transform_0, window_bounds = array<i64: 256, 128>}, {transform_indices = @transform_1, window_bounds = array<i64: 256, 128>}, {pipeline_mode = #tpu.pipeline_mode<synchronous>, transform_indices = @transform_2, window_bounds = array<i64: 1, 128>}, {pipeline_mode = #tpu.pipeline_mode<synchronous>, transform_indices = @transform_3, window_bounds = array<i64: 1, 128>}, {transform_indices = @transform_4, window_bounds = array<i64: 256, 128>}]} {
    %c0 = arith.constant 0 : index
    %c0_0 = arith.constant 0 : index
    %0 = vector.load %arg1[%c0, %c0_0] : memref<256x128xbf16, #tpu.memory_space<vmem>>, vector<256x128xbf16>
    %1 = arith.extf %0 : vector<256x128xbf16> to vector<256x128xf32>
    %c0_1 = arith.constant 0 : index
    %c0_2 = arith.constant 0 : index
    %2 = vector.load %arg3[%c0_1, %c0_2] : memref<1x128xf32, #tpu.memory_space<vmem>>, vector<1x128xf32>
    %3 = vector.broadcast %2 : vector<1x128xf32> to vector<256x128xf32>
    %4 = arith.mulf %1, %3 : vector<256x128xf32>
    %c0_3 = arith.constant 0 : index
    %c0_4 = arith.constant 0 : index
    %5 = vector.load %arg4[%c0_3, %c0_4] : memref<1x128xf32, #tpu.memory_space<vmem>>, vector<1x128xf32>
    %6 = vector.broadcast %5 : vector<1x128xf32> to vector<256x128xf32>
    %7 = arith.addf %4, %6 : vector<256x128xf32>
    %c0_5 = arith.constant 0 : index
    %c0_6 = arith.constant 0 : index
    %8 = vector.load %arg2[%c0_5, %c0_6] : memref<256x128xf32, #tpu.memory_space<vmem>>, vector<256x128xf32>
    %9 = arith.addf %7, %8 : vector<256x128xf32>
    %cst = arith.constant 0.000000e+00 : f32
    %10 = vector.broadcast %cst : f32 to vector<256x128xf32>
    %11 = arith.maximumf %9, %10 : vector<256x128xf32>
    %c0_7 = arith.constant 0 : index
    %c0_8 = arith.constant 0 : index
    %12 = vector.load %arg5[%c0_7, %c0_8] : memref<256x128xf32, #tpu.memory_space<vmem>>, vector<256x128xf32>
    tpu.vector_store %arg5[%c0_7, %c0_8], %11 {strides = array<i32>} : memref<256x128xf32, #tpu.memory_space<vmem>>, vector<256x128xf32>,
    return
  }
  func.func @transform_0(%arg0: i32) -> (i32, i32) {
    %c0_i32 = arith.constant 0 : i32
    %c0_i32_0 = arith.constant 0 : i32
    return %arg0, %c0_i32 : i32, i32
  }
  func.func @transform_1(%arg0: i32) -> (i32, i32) {
    %c0_i32 = arith.constant 0 : i32
    %c0_i32_0 = arith.constant 0 : i32
    return %arg0, %c0_i32 : i32, i32
  }
  func.func @transform_2(%arg0: i32) -> (i32, i32) {
    %c0_i32 = arith.constant 0 : i32
    %c0_i32_0 = arith.constant 0 : i32
    %c0_i32_1 = arith.constant 0 : i32
    return %c0_i32, %c0_i32_0 : i32, i32
  }
  func.func @transform_3(%arg0: i32) -> (i32, i32) {
    %c0_i32 = arith.constant 0 : i32
    %c0_i32_0 = arith.constant 0 : i32
    %c0_i32_1 = arith.constant 0 : i32
    return %c0_i32, %c0_i32_0 : i32, i32
  }
  func.func @transform_4(%arg0: i32) -> (i32, i32) {
    %c0_i32 = arith.constant 0 : i32
    %c0_i32_0 = arith.constant 0 : i32
    return %arg0, %c0_i32 : i32, i32
  }
}

</mosaic_0001>

<bundles_post_ra>
// kernel: basic_block_forward.5
= control target key start
LH: loop header
LB: loop body
LE: loop exit
PB: predicated region body
PF: predicated region fallthrough
CT: control target
= control target key end

     0   :  { %s696_s15 = smov 0   ;;  %s884_s0 = inlined_call_operand.vmem [shape: bf16[512,128], index: 0, kind: input, shape index: {}]   ;;  %s885_s1 = inlined_call_operand.vmem [shape: f32[512,128], index: 1, kind: input, shape index: {}]   ;;  %s886_s2 = inlined_call_operand.vmem [shape: f32[1,128], index: 2, kind: input, shape index: {}]   ;;  %s887_s3 = inlined_call_operand.vmem [shape: f32[1,128], index: 3, kind: input, shape index: {}]   ;;  %s888_s4 = inlined_call_operand.vmem [shape: f32[512,128], index: 4, kind: output, shape index: {}]  }
   0x1 LB: > { %s561_s16 = sadd.s32 4294967295, %s669_s15   ;;  %p565_p0 = scmp.ge.s32.totalorder %s669_s15, 1  ;;  %s669_s15 = sphi %s696_s15, %s14_s15  }
   0x2   : > { %p174_p1 = scmp.lt.s32.totalorder %s669_s15, 3 }
   0x4   : > { %p175_p2 = pnand %p565_p0, %p174_p1 }
   0x5   : > { %s566_s17 = sshll.u32 (!%p175_p2), %s561_s16, 5  ;;  %v717_v1 = vld [vmem:[%s886_s2] ss:$0 sm:$0xff] (!%p175_p2) }
   0x6   : > { %178 = sbr.rel (%p175_p2) target bundleno = 60 (0x3c), region = 36  ;;  %p206_p3 = scmp.lt.s32.totalorder (!%p175_p2), %s566_s17, 63  ;;  %v730_v5 = vld [vmem:[%s887_s3] ss:$0 sm:$0xff] (!%p175_p2) }
   0xd   : > { %s890_s17 = smov (!%p206_p3, %s566_s17), 63 }
   0xe   : > { %s567_s18 = sshll.u32 %s890_s17, 2  ;;  %s569_s19 = sshll.u32 %s890_s17, 3 }
   0xf   : > { %s711_s22 = scalar_lea.vmem %s884_s0, %s567_s18  ;;  %s724_s27 = scalar_lea.vmem %s885_s1, %s569_s19 }
  0x10   : > { %v577_v0 = vld [vmem:[%s711_s22] sm:$0xff]   ;;  %v640_v4 = vld [vmem:[%s711_s22 + $0x8] sm:$0xff]   ;;  %v641_v8 = vld [vmem:[%s711_s22 + $0x10] sm:$0xff]   ;;  %s761_s6 = scalar_lea.vmem %s888_s4, %s569_s19 }
  0x11   : > { %v578_v2 = vunpack.c.l.bf16 %v577_v0  ;;  %v579_v3 = vunpack.c.h.bf16 %v577_v0  ;;  %v582_v6 = vunpack.c.l.bf16 %v640_v4  ;;  %v583_v7 = vunpack.c.h.bf16 %v640_v4  ;;  %v642_v13 = vld [vmem:[%s711_s22 + $0x18] sm:$0xff]   ;;  %v365_v14 = vld [vmem:[%s724_s27] sm:$0xff]  ;;  %v366_v15 = vld [vmem:[%s724_s27 + $0x8] sm:$0xff] }
  0x12   : > { %v586_v11 = vunpack.c.l.bf16 %v641_v8  ;;  %v587_v12 = vunpack.c.h.bf16 %v641_v8  ;;  %v590_v18 = vunpack.c.l.bf16 %v642_v13  ;;  %v591_v19 = vunpack.c.h.bf16 %v642_v13  ;;  %v367_v22 = vld [vmem:[%s724_s27 + $0x10] sm:$0xff]  ;;  %v368_v23 = vld [vmem:[%s724_s27 + $0x18] sm:$0xff]  ;;  %v369_v28 = vld [vmem:[%s724_s27 + $0x20] sm:$0xff] }
  0x13   : > { %v294_v9 = vmul.f32 %v578_v2, %v717_v1  ;;  %v295_v10 = vmul.f32 %v579_v3, %v717_v1  ;;  %v296_v16 = vmul.f32 %v582_v6, %v717_v1  ;;  %v297_v17 = vmul.f32 %v583_v7, %v717_v1  ;;  %v370_v29 = vld [vmem:[%s724_s27 + $0x28] sm:$0xff]  ;;  %v371_v36 = vld [vmem:[%s724_s27 + $0x30] sm:$0xff]  ;;  %v372_v37 = vld [vmem:[%s724_s27 + $0x38] sm:$0xff] }
  0x14   : > { %v298_v24 = vmul.f32 %v586_v11, %v717_v1  ;;  %v299_v25 = vmul.f32 %v587_v12, %v717_v1  ;;  %v300_v30 = vmul.f32 %v590_v18, %v717_v1  ;;  %v301_v31 = vmul.f32 %v591_v19, %v717_v1  ;;  %v643_v42 = vld [vmem:[%s711_s22 + $0x20] sm:$0xff]   ;;  %v644_v47 = vld [vmem:[%s711_s22 + $0x28] sm:$0xff]   ;;  %v645_v52 = vld [vmem:[%s711_s22 + $0x30] sm:$0xff]  }
  0x15   : > { %v333_v20 = vadd.f32 %v730_v5, %v294_v9  ;;  %v334_v21 = vadd.f32 %v730_v5, %v295_v10  ;;  %v335_v26 = vadd.f32 %v730_v5, %v296_v16  ;;  %v336_v27 = vadd.f32 %v730_v5, %v297_v17  ;;  %v646_v57 = vld [vmem:[%s711_s22 + $0x38] sm:$0xff]   ;;  %v373_v3 = vld [vmem:[%s724_s27 + $0x40] sm:$0xff]  ;;  %v374_v4 = vld [vmem:[%s724_s27 + $0x48] sm:$0xff] }
  0x16   : > { %v337_v34 = vadd.f32 %v730_v5, %v298_v24  ;;  %v338_v35 = vadd.f32 %v730_v5, %v299_v25  ;;  %v339_v40 = vadd.f32 %v730_v5, %v300_v30  ;;  %v340_v41 = vadd.f32 %v730_v5, %v301_v31  ;;  %v375_v12 = vld [vmem:[%s724_s27 + $0x50] sm:$0xff]  ;;  %v376_v13 = vld [vmem:[%s724_s27 + $0x58] sm:$0xff]  ;;  %v377_v18 = vld [vmem:[%s724_s27 + $0x60] sm:$0xff] }
  0x17   : > { %v397_v32 = vadd.f32 %v365_v14, %v333_v20  ;;  %v398_v33 = vadd.f32 %v366_v15, %v334_v21  ;;  %v399_v38 = vadd.f32 %v367_v22, %v335_v26  ;;  %v400_v39 = vadd.f32 %v368_v23, %v336_v27  ;;  %v378_v19 = vld [vmem:[%s724_s27 + $0x68] sm:$0xff]  ;;  %v379_v26 = vld [vmem:[%s724_s27 + $0x70] sm:$0xff]  ;;  %v380_v27 = vld [vmem:[%s724_s27 + $0x78] sm:$0xff] }
  0x18   : > { %v401_v45 = vadd.f32 %v369_v28, %v337_v34  ;;  %v402_v46 = vadd.f32 %v370_v29, %v338_v35  ;;  %v403_v50 = vadd.f32 %v371_v36, %v339_v40  ;;  %v404_v51 = vadd.f32 %v372_v37, %v340_v41  ;;  %v648_v37 = vld [vmem:[%s711_s22 + $0x48] sm:$0xff]  }
  0x19   : > { %v429_v43 = vmax.f32 %v397_v32, 0.0  ;;  %v430_v44 = vmax.f32 %v398_v33, 0.0  ;;  %v431_v48 = vmax.f32 %v399_v38, 0.0  ;;  %v432_v49 = vmax.f32 %v400_v39, 0.0  ;;  %v647_v32 = vld [vmem:[%s711_s22 + $0x40] sm:$0xff]  }
  0x1a   : > { %v433_v53 = vmax.f32 %v401_v45, 0.0  ;;  %v434_v54 = vmax.f32 %v402_v46, 0.0  ;;  %v594_v55 = vunpack.c.l.bf16 %v643_v42  ;;  %v595_v56 = vunpack.c.h.bf16 %v643_v42  ;;  %v649_v42 = vld [vmem:[%s711_s22 + $0x50] sm:$0xff]  }
  0x1b   : > { %461 = vst [vmem:[%s761_s6] sm:$0xff] %v429_v43  ;;  %462 = vst [vmem:[%s761_s6 + $0x8] sm:$0xff] %v430_v44  ;;  %v435_v58 = vmax.f32 %v403_v50, 0.0  ;;  %v436_v59 = vmax.f32 %v404_v51, 0.0  ;;  %v598_v60 = vunpack.c.l.bf16 %v644_v47  ;;  %v599_v61 = vunpack.c.h.bf16 %v644_v47  ;;  %v650_v47 = vld [vmem:[%s711_s22 + $0x58] sm:$0xff]  }
  0x1c   : > { %463 = vst [vmem:[%s761_s6 + $0x10] sm:$0xff] %v431_v48  ;;  %464 = vst [vmem:[%s761_s6 + $0x18] sm:$0xff] %v432_v49  ;;  %v302_v62 = vmul.f32 %v594_v55, %v717_v1  ;;  %v303_v63 = vmul.f32 %v595_v56, %v717_v1  ;;  %v602_v0 = vunpack.c.l.bf16 %v645_v52  ;;  %v603_v2 = vunpack.c.h.bf16 %v645_v52  ;;  %v381_v56 = vld [vmem:[%s724_s27 + $0x80] sm:$0xff] }
  0x1d   : > { %465 = vst [vmem:[%s761_s6 + $0x20] sm:$0xff] %v433_v53  ;;  %466 = vst [vmem:[%s761_s6 + $0x28] sm:$0xff] %v434_v54  ;;  %v304_v6 = vmul.f32 %v598_v60, %v717_v1  ;;  %v305_v7 = vmul.f32 %v599_v61, %v717_v1  ;;  %v606_v8 = vunpack.c.l.bf16 %v646_v57  ;;  %v607_v9 = vunpack.c.h.bf16 %v646_v57  ;;  %v382_v57 = vld [vmem:[%s724_s27 + $0x88] sm:$0xff] }
  0x1e   : > { %467 = vst [vmem:[%s761_s6 + $0x30] sm:$0xff] %v435_v58  ;;  %468 = vst [vmem:[%s761_s6 + $0x38] sm:$0xff] %v436_v59  ;;  %v341_v10 = vadd.f32 %v730_v5, %v302_v62  ;;  %v342_v11 = vadd.f32 %v730_v5, %v303_v63  ;;  %v306_v14 = vmul.f32 %v602_v0, %v717_v1  ;;  %v610_v45 = vunpack.c.l.bf16 %v647_v32  ;;  %v383_v0 = vld [vmem:[%s724_s27 + $0x90] sm:$0xff] }
  0x1f   : > { %v307_v15 = vmul.f32 %v603_v2, %v717_v1  ;;  %v343_v16 = vadd.f32 %v730_v5, %v304_v6  ;;  %v344_v17 = vadd.f32 %v730_v5, %v305_v7  ;;  %v308_v20 = vmul.f32 %v606_v8, %v717_v1  ;;  %v384_v2 = vld [vmem:[%s724_s27 + $0x98] sm:$0xff]  ;;  %v385_v8 = vld [vmem:[%s724_s27 + $0xa0] sm:$0xff] }
  0x20   : > { %v309_v21 = vmul.f32 %v607_v9, %v717_v1  ;;  %v405_v22 = vadd.f32 %v373_v3, %v341_v10  ;;  %v406_v23 = vadd.f32 %v374_v4, %v342_v11  ;;  %v345_v24 = vadd.f32 %v730_v5, %v306_v14  ;;  %v386_v9 = vld [vmem:[%s724_s27 + $0xa8] sm:$0xff] }
  0x21   : > { %v346_v25 = vadd.f32 %v730_v5, %v307_v15  ;;  %v407_v28 = vadd.f32 %v375_v12, %v343_v16  ;;  %v408_v29 = vadd.f32 %v376_v13, %v344_v17  ;;  %v347_v30 = vadd.f32 %v730_v5, %v308_v20  ;;  %v387_v16 = vld [vmem:[%s724_s27 + $0xb0] sm:$0xff]  ;;  %v388_v17 = vld [vmem:[%s724_s27 + $0xb8] sm:$0xff] }
  0x22   : > { %v348_v31 = vadd.f32 %v730_v5, %v309_v21  ;;  %v437_v33 = vmax.f32 %v405_v22, 0.0  ;;  %v438_v34 = vmax.f32 %v406_v23, 0.0  ;;  %v409_v35 = vadd.f32 %v377_v18, %v345_v24  ;;  %v651_v22 = vld [vmem:[%s711_s22 + $0x60] sm:$0xff]  }
  0x23   : > { %v410_v36 = vadd.f32 %v378_v19, %v346_v25  ;;  %v439_v38 = vmax.f32 %v407_v28, 0.0  ;;  %v440_v39 = vmax.f32 %v408_v29, 0.0  ;;  %v411_v40 = vadd.f32 %v379_v26, %v347_v30 }
  0x24   : > { %v412_v41 = vadd.f32 %v380_v27, %v348_v31  ;;  %469 = vst [vmem:[%s761_s6 + $0x40] sm:$0xff] %v437_v33  ;;  %470 = vst [vmem:[%s761_s6 + $0x48] sm:$0xff] %v438_v34  ;;  %v441_v43 = vmax.f32 %v409_v35, 0.0  ;;  %v611_v46 = vunpack.c.h.bf16 %v647_v32  ;;  %v614_v50 = vunpack.c.l.bf16 %v648_v37  ;;  %v652_v27 = vld [vmem:[%s711_s22 + $0x68] sm:$0xff]   ;;  %v653_v32 = vld [vmem:[%s711_s22 + $0x70] sm:$0xff]  }
  0x25   : > { %v442_v44 = vmax.f32 %v410_v36, 0.0  ;;  %471 = vst [vmem:[%s761_s6 + $0x50] sm:$0xff] %v439_v38  ;;  %472 = vst [vmem:[%s761_s6 + $0x58] sm:$0xff] %v440_v39  ;;  %v443_v48 = vmax.f32 %v411_v40, 0.0  ;;  %v615_v51 = vunpack.c.h.bf16 %v648_v37  ;;  %v310_v52 = vmul.f32 %v610_v45, %v717_v1  ;;  %v654_v37 = vld [vmem:[%s711_s22 + $0x78] sm:$0xff]  }
  0x26   : > { %v444_v49 = vmax.f32 %v412_v41, 0.0  ;;  %473 = vst [vmem:[%s761_s6 + $0x60] sm:$0xff] %v441_v43  ;;  %v311_v53 = vmul.f32 %v611_v46, %v717_v1  ;;  %v618_v54 = vunpack.c.l.bf16 %v649_v42  ;;  %v619_v55 = vunpack.c.h.bf16 %v649_v42  ;;  %v389_v46 = vld [vmem:[%s724_s27 + $0xc0] sm:$0xff] }
  0x27   : > { %474 = vst [vmem:[%s761_s6 + $0x68] sm:$0xff] %v442_v44  ;;  %475 = vst [vmem:[%s761_s6 + $0x70] sm:$0xff] %v443_v48  ;;  %v312_v58 = vmul.f32 %v614_v50, %v717_v1  ;;  %v313_v59 = vmul.f32 %v615_v51, %v717_v1  ;;  %v622_v60 = vunpack.c.l.bf16 %v650_v47  ;;  %v623_v61 = vunpack.c.h.bf16 %v650_v47  ;;  %v390_v47 = vld [vmem:[%s724_s27 + $0xc8] sm:$0xff] }
  0x28   : > { %476 = vst [vmem:[%s761_s6 + $0x78] sm:$0xff] %v444_v49  ;;  %v349_v62 = vadd.f32 %v730_v5, %v310_v52  ;;  %v350_v63 = vadd.f32 %v730_v5, %v311_v53  ;;  %v314_v3 = vmul.f32 %v618_v54, %v717_v1  ;;  %v315_v4 = vmul.f32 %v619_v55, %v717_v1  ;;  %v391_v54 = vld [vmem:[%s724_s27 + $0xd0] sm:$0xff]  ;;  %v392_v55 = vld [vmem:[%s724_s27 + $0xd8] sm:$0xff] }
  0x29   : > { %v351_v6 = vadd.f32 %v730_v5, %v312_v58  ;;  %v352_v7 = vadd.f32 %v730_v5, %v313_v59  ;;  %v316_v10 = vmul.f32 %v622_v60, %v717_v1  ;;  %v317_v11 = vmul.f32 %v623_v61, %v717_v1  ;;  %v393_v60 = vld [vmem:[%s724_s27 + $0xe0] sm:$0xff]  ;;  %v394_v61 = vld [vmem:[%s724_s27 + $0xe8] sm:$0xff] }
  0x2a   : > { %v413_v12 = vadd.f32 %v381_v56, %v349_v62  ;;  %v414_v13 = vadd.f32 %v382_v57, %v350_v63  ;;  %v353_v14 = vadd.f32 %v730_v5, %v314_v3  ;;  %v354_v15 = vadd.f32 %v730_v5, %v315_v4 }
  0x2b   : > { %v415_v18 = vadd.f32 %v383_v0, %v351_v6  ;;  %v416_v19 = vadd.f32 %v384_v2, %v352_v7  ;;  %v355_v20 = vadd.f32 %v730_v5, %v316_v10  ;;  %v356_v21 = vadd.f32 %v730_v5, %v317_v11  ;;  %v395_v6 = vld [vmem:[%s724_s27 + $0xf0] sm:$0xff]  ;;  %v396_v7 = vld [vmem:[%s724_s27 + $0xf8] sm:$0xff] }
  0x2c   : > { %v445_v23 = vmax.f32 %v413_v12, 0.0  ;;  %v446_v24 = vmax.f32 %v414_v13, 0.0  ;;  %v417_v25 = vadd.f32 %v385_v8, %v353_v14  ;;  %v418_v26 = vadd.f32 %v386_v9, %v354_v15 }
  0x2d   : > { %v447_v28 = vmax.f32 %v415_v18, 0.0  ;;  %v448_v29 = vmax.f32 %v416_v19, 0.0  ;;  %v419_v30 = vadd.f32 %v387_v16, %v355_v20  ;;  %v420_v31 = vadd.f32 %v388_v17, %v356_v21 }
  0x2e   : > { %477 = vst [vmem:[%s761_s6 + $0x80] sm:$0xff] %v445_v23  ;;  %478 = vst [vmem:[%s761_s6 + $0x88] sm:$0xff] %v446_v24  ;;  %v449_v33 = vmax.f32 %v417_v25, 0.0  ;;  %v450_v34 = vmax.f32 %v418_v26, 0.0  ;;  %v626_v35 = vunpack.c.l.bf16 %v651_v22  ;;  %v627_v36 = vunpack.c.h.bf16 %v651_v22 }
  0x2f   : > { %479 = vst [vmem:[%s761_s6 + $0x90] sm:$0xff] %v447_v28  ;;  %480 = vst [vmem:[%s761_s6 + $0x98] sm:$0xff] %v448_v29  ;;  %v451_v38 = vmax.f32 %v419_v30, 0.0  ;;  %v452_v39 = vmax.f32 %v420_v31, 0.0  ;;  %v630_v40 = vunpack.c.l.bf16 %v652_v27  ;;  %v631_v41 = vunpack.c.h.bf16 %v652_v27 }
  0x30   : > { %481 = vst [vmem:[%s761_s6 + $0xa0] sm:$0xff] %v449_v33  ;;  %482 = vst [vmem:[%s761_s6 + $0xa8] sm:$0xff] %v450_v34  ;;  %v318_v42 = vmul.f32 %v626_v35, %v717_v1  ;;  %v319_v43 = vmul.f32 %v627_v36, %v717_v1  ;;  %v634_v44 = vunpack.c.l.bf16 %v653_v32  ;;  %v635_v45 = vunpack.c.h.bf16 %v653_v32 }
  0x31   : > { %483 = vst [vmem:[%s761_s6 + $0xb0] sm:$0xff] %v451_v38  ;;  %484 = vst [vmem:[%s761_s6 + $0xb8] sm:$0xff] %v452_v39  ;;  %v320_v48 = vmul.f32 %v630_v40, %v717_v1  ;;  %v321_v49 = vmul.f32 %v631_v41, %v717_v1  ;;  %v638_v50 = vunpack.c.l.bf16 %v654_v37  ;;  %v639_v51 = vunpack.c.h.bf16 %v654_v37 }
  0x32   : > { %v357_v52 = vadd.f32 %v730_v5, %v318_v42  ;;  %v358_v53 = vadd.f32 %v730_v5, %v319_v43  ;;  %v322_v56 = vmul.f32 %v634_v44, %v717_v1  ;;  %v323_v57 = vmul.f32 %v635_v45, %v717_v1 }
  0x33   : > { %v359_v58 = vadd.f32 %v730_v5, %v320_v48  ;;  %v360_v59 = vadd.f32 %v730_v5, %v321_v49  ;;  %v324_v62 = vmul.f32 %v638_v50, %v717_v1  ;;  %v325_v63 = vmul.f32 %v639_v51, %v717_v1 }
  0x34   : > { %v421_v0 = vadd.f32 %v389_v46, %v357_v52  ;;  %v422_v2 = vadd.f32 %v390_v47, %v358_v53  ;;  %v361_v3 = vadd.f32 %v730_v5, %v322_v56  ;;  %v362_v4 = vadd.f32 %v730_v5, %v323_v57 }
  0x35   : > { %v423_v8 = vadd.f32 %v391_v54, %v359_v58  ;;  %v424_v9 = vadd.f32 %v392_v55, %v360_v59  ;;  %v363_v10 = vadd.f32 %v730_v5, %v324_v62  ;;  %v364_v11 = vadd.f32 %v730_v5, %v325_v63 }
  0x36   : > { %v453_v12 = vmax.f32 %v421_v0, 0.0  ;;  %v454_v1 = vmax.f32 %v422_v2, 0.0  ;;  %v425_v13 = vadd.f32 %v393_v60, %v361_v3  ;;  %v426_v14 = vadd.f32 %v394_v61, %v362_v4 }
  0x37   : > { %v455_v15 = vmax.f32 %v423_v8, 0.0  ;;  %v456_v16 = vmax.f32 %v424_v9, 0.0  ;;  %v427_v17 = vadd.f32 %v395_v6, %v363_v10  ;;  %v428_v18 = vadd.f32 %v396_v7, %v364_v11 }
  0x38   : > { %485 = vst [vmem:[%s761_s6 + $0xc0] sm:$0xff] %v453_v12  ;;  %486 = vst [vmem:[%s761_s6 + $0xc8] sm:$0xff] %v454_v1  ;;  %v457_v19 = vmax.f32 %v425_v13, 0.0  ;;  %v458_v20 = vmax.f32 %v426_v14, 0.0 }
  0x39   : > { %487 = vst [vmem:[%s761_s6 + $0xd0] sm:$0xff] %v455_v15  ;;  %488 = vst [vmem:[%s761_s6 + $0xd8] sm:$0xff] %v456_v16  ;;  %v459_v21 = vmax.f32 %v427_v17, 0.0  ;;  %v460_v5 = vmax.f32 %v428_v18, 0.0 }
  0x3a   : > { %489 = vst [vmem:[%s761_s6 + $0xe0] sm:$0xff] %v457_v19  ;;  %490 = vst [vmem:[%s761_s6 + $0xe8] sm:$0xff] %v458_v20 }
  0x3b   : > { %491 = vst [vmem:[%s761_s6 + $0xf0] sm:$0xff] %v459_v21  ;;  %492 = vst [vmem:[%s761_s6 + $0xf8] sm:$0xff] %v460_v5 }
  0x3c PF: > { %s14_s15 = sadd.s32 1, %s669_s15  }
  0x3d   : > { %p11_p4 = scmp.ge.s32.totalorder %s14_s15, 4  }
  0x3f   :  { %13 = sbr.rel (!%p11_p4) target bundleno = 1 (0x1), region = 69 }

// kernel: basic_block_forward.3
= control target key start
LH: loop header
LB: loop body
LE: loop exit
PB: predicated region body
PF: predicated region fallthrough
CT: control target
= control target key end

     0   :  { %s5010_s18 = smov 0   ;;  %s5012_s19 = smov 0   ;;  %s6417_s0 = inlined_call_operand.vmem [shape: bf16[2,16,18,128], index: 0, kind: input, shape index: {}]   ;;  %s6418_s1 = inlined_call_operand.vmem [shape: bf16[2,16,18,128], index: 1, kind: input, shape index: {}]   ;;  %s6419_s2 = inlined_call_operand.vmem [shape: bf16[2,16,18,128], index: 2, kind: input, shape index: {}]   ;;  %s6420_s3 = inlined_call_operand.vmem [shape: bf16[1152,128], index: 3, kind: input, shape index: {}]   ;;  %s6421_s4 = inlined_call_operand.vmem [shape: bf16[2,16,16,128], index: 4, kind: output, shape index: {0}]   ;;  %s6422_s5 = inlined_call_operand.vmem [shape: f32[2,1,2,128], index: 5, kind: output, shape index: {1}]  }
   0x1   :  { %s5014_s20 = smov 0  }
   0x2 LB: > { %s28_s21 = sadd.s32 1, %s4974_s19  ;;  %p3786_p0 = scmp.ge.s32.totalorder %s4978_s20, 1  ;;  %s4978_s20 = sphi %s5014_s20, %s16_s20   ;;  %s4974_s19 = sphi %s5012_s19, %s6424_s19   ;;  %s4970_s18 = sphi %s5010_s18, %s6423_s18  }
   0x3   : > { %p30_p1 = scmp.ge.s32.totalorder %s28_s21, 2  ;;  %p250_p2 = scmp.lt.s32.totalorder %s4978_s20, 3 }
   0x5   : > { %s6426_s21 = smov (%p30_p1, %s28_s21), 0  ;;  %p251_p3 = pnand %p3786_p0, %p250_p2 }
   0x6   : > { %v4732_v0 = vld [vmem:[%s6420_s3 + $0x40] sm:$0xff] (!%p251_p3)   ;;  %p316_p4 = scmp.lt.s32.totalorder (!%p251_p3), %s4970_s18, 1  ;;  %v4734_v2 = vld [vmem:[%s6420_s3 + $0x48] sm:$0xff] (!%p251_p3)   ;;  %v4736_v4 = vld [vmem:[%s6420_s3 + $0x50] sm:$0xff] (!%p251_p3)   ;;  %vm703_vm0 = vsmask.f32 (!%p251_p3), 7424 }
   0x7   : > { %254 = sbr.rel (%p251_p3) target bundleno = 559 (0x22f), region = 36  ;;  %v4733_v1 = vld [vmem:[%s6420_s3] sm:$0xff] (!%p251_p3)   ;;  %4171 = vmatprep.subr.bf16.mxu0 (!%p251_p3), %v4732_v0  ;;  %4691 = vmatprep.subr.bf16.mxu1 (!%p251_p3), %v4732_v0  ;;  %v4735_v3 = vld [vmem:[%s6420_s3 + $0x8] sm:$0xff] (!%p251_p3)   ;;  %v4737_v5 = vld [vmem:[%s6420_s3 + $0x10] sm:$0xff] (!%p251_p3)   ;;  %vm960_vm1 = vcmask (!%p251_p3), 1046528   ;;  %vm3440_vm2 = vcmask (!%p251_p3), 1040384  }
   0x8   : > { %4172 = vmatpush3.bf16.msra.mxu0 (!%p251_p3), %v4733_v1  ;;  %4699 = vmatpush3.bf16.msra.mxu1 (!%p251_p3), %v4733_v1  ;;  %v4738_v6 = vld [vmem:[%s6420_s3 + $0x58] sm:$0xff] (!%p251_p3)   ;;  %v4740_v8 = vld [vmem:[%s6420_s3 + $0x60] sm:$0xff] (!%p251_p3)   ;;  %v4742_v10 = vld [vmem:[%s6420_s3 + $0x68] sm:$0xff] (!%p251_p3)  }
   0x9   : > { %4173 = vmatprep.subr.bf16.mxu0 (!%p251_p3), %v4734_v2  ;;  %4692 = vmatprep.subr.bf16.mxu1 (!%p251_p3), %v4734_v2  ;;  %v4739_v7 = vld [vmem:[%s6420_s3 + $0x18] sm:$0xff] (!%p251_p3)   ;;  %v4741_v9 = vld [vmem:[%s6420_s3 + $0x20] sm:$0xff] (!%p251_p3)   ;;  %v4743_v17 = vld [vmem:[%s6420_s3 + $0x28] sm:$0xff] (!%p251_p3)  }
   0xa   : > { %v4744_v21 = vld [vmem:[%s6420_s3 + $0x70] sm:$0xff] (!%p251_p3)   ;;  %v4746_v31 = vld [vmem:[%s6420_s3 + $0x78] sm:$0xff] (!%p251_p3)   ;;  %v4752_v37 = vld [vmem:[%s6420_s3 + $0xc0] sm:$0xff] (!%p251_p3)  }
   0xb   : > { %v4745_v26 = vld [vmem:[%s6420_s3 + $0x30] sm:$0xff] (!%p251_p3)   ;;  %v4747_v34 = vld [vmem:[%s6420_s3 + $0x38] sm:$0xff] (!%p251_p3)   ;;  %v4753_v40 = vld [vmem:[%s6420_s3 + $0x140] sm:$0xff] (!%p251_p3)  }
   0xc   : > { %4174 = vmatpush3.bf16.msra.mxu0 (!%p251_p3), %v4735_v3  ;;  %4700 = vmatpush3.bf16.msra.mxu1 (!%p251_p3), %v4735_v3  ;;  %v4754_v46 = vld [vmem:[%s6420_s3 + $0x80] sm:$0xff] (!%p251_p3)   ;;  %v4756_v57 = vld [vmem:[%s6420_s3 + $0xc8] sm:$0xff] (!%p251_p3)   ;;  %v4762_v2 = vld [vmem:[%s6420_s3 + $0xd0] sm:$0xff] (!%p251_p3)  }
   0xd   : > { %4175 = vmatprep.subr.bf16.mxu0 (!%p251_p3), %v4736_v4  ;;  %4693 = vmatprep.subr.bf16.mxu1 (!%p251_p3), %v4736_v4  ;;  %v4755_v47 = vld [vmem:[%s6420_s3 + $0x100] sm:$0xff] (!%p251_p3)   ;;  %v4757_v59 = vld [vmem:[%s6420_s3 + $0x88] sm:$0xff] (!%p251_p3)  }
   0xe   : > { %s6428_s18 = smov (!%p316_p4, %s4970_s18), 1  ;;  %v4765_v63 = vld [vmem:[%s6420_s3 + $0x148] sm:$0xff]  }
   0xf   : > { %s5052_s11 = smul.u32 192, %s6428_s18  ;;  %v4767_v3 = vld [vmem:[%s6420_s3 + $0x108] sm:$0xff]   ;;  %s3792_s27 = sshll.u32 %s6428_s18, 1 }
  0x10   : > { %4176 = vmatpush3.bf16.msra.mxu0 %v4737_v5  ;;  %4701 = vmatpush3.bf16.msra.mxu1 %v4737_v5  ;;  %s365_s30 = scalar_lea.vmem %s6422_s5, %s3792_s27 }
  0x11   : > { %4177 = vmatprep.subr.bf16.mxu0 %v4738_v6  ;;  %4694 = vmatprep.subr.bf16.mxu1 %v4738_v6  ;;  %s5064_s22 = scalar_lea.vmem %s6417_s0, %s5052_s11  ;;  %s5208_s15 = scalar_lea.vmem %s6418_s1, %s5052_s11 }
  0x12   : > { %v367_v11 = vld [vmem:[%s5064_s22] sm:$0xf]  ;;  %v5074_v12 = vld [vmem:[%s5064_s22 + $0x4] sm:$0xf]  ;;  %v391_v15 = vld [vmem:[%s5064_s22 + $0x90] sm:$0xf]  ;;  %s5579_s10 = scalar_lea.vmem %s6419_s2, %s5052_s11 }
  0x13   : > { %v5077_v13 = vcombine.low %v367_v11, %v5074_v12  ;;  %v5080_v14 = vld [vmem:[%s5064_s22 + $0x8] ss:$0 sps:$4 sm:$0x11]   ;;  %v392_v16 = vld [vmem:[%s5064_s22 + $0x94] sm:$0xf] }
  0x14   : > { %4178 = vmatpush3.bf16.msra.mxu0 %v4739_v7  ;;  %4702 = vmatpush3.bf16.msra.mxu1 %v4739_v7  ;;  %v712_v20 = vshll.u32 %v5080_v14, 16  ;;  %v3805_v22 = vcombine.low %v391_v15, %v392_v16  ;;  %v4751_v23 = vld [vmem:[%s5064_s22 + $0x98] ss:$0 sps:$4 sm:$0x11]   ;;  %v369_v38 = vld [vmem:[%s5064_s22 + $0xc] sm:$0xf] }
  0x15   : > { %4179 = vmatprep.subr.bf16.mxu0 %v4740_v8  ;;  %4695 = vmatprep.subr.bf16.mxu1 %v4740_v8  ;;  %v705_v18 = vshrl.u32 %v5077_v13, 16  ;;  %v707_v19 = vshll.u32 %v5077_v13, 16  ;;  %v856_v29 = vshll.u32 %v4751_v23, 16  ;;  %v5109_v39 = vld [vmem:[%s5064_s22 + $0x10] sm:$0xf] }
  0x16   : > { %v714_v25 = vrot.slane %v712_v20, 1  ;;  %v849_v27 = vshrl.u32 %v3805_v22, 16  ;;  %v851_v28 = vshll.u32 %v3805_v22, 16  ;;  %v3794_v41 = vcombine.low %v369_v38, %v5109_v39  ;;  %v5116_v42 = vld [vmem:[%s5064_s22 + $0x14] ss:$0 sps:$4 sm:$0x11]  }
  0x17   : > { %v709_v24 = vrot.slane %v707_v19, 1  ;;  %v858_v33 = vrot.slane %v856_v29, 1  ;;  %v393_v44 = vld [vmem:[%s5064_s22 + $0x9c] sm:$0xf]  ;;  %v394_v45 = vld [vmem:[%s5064_s22 + $0xa0] sm:$0xf] }
  0x18   : > { %4180 = vmatpush3.bf16.msra.mxu0 %v4741_v9  ;;  %4703 = vmatpush3.bf16.msra.mxu1 %v4741_v9  ;;  %v853_v32 = vrot.slane %v851_v28, 1  ;;  %v717_v48 = vshrl.u32 %v3794_v41, 16  ;;  %v719_v49 = vshll.u32 %v3794_v41, 16  ;;  %v724_v50 = vshll.u32 %v5116_v42, 16  ;;  %v371_v4 = vld [vmem:[%s5064_s22 + $0x18] sm:$0xf] }
  0x19   : > { %4181 = vmatprep.subr.bf16.mxu0 %v4742_v10  ;;  %4696 = vmatprep.subr.bf16.mxu1 %v4742_v10  ;;  %v710_v30 = vor.u32 %v709_v24, %v705_v18  ;;  %v3806_v51 = vcombine.low %v393_v44, %v394_v45  ;;  %v4761_v52 = vld [vmem:[%s5064_s22 + $0xa4] ss:$0 sps:$4 sm:$0x11]   ;;  %v5148_v5 = vld [vmem:[%s5064_s22 + $0x1c] sm:$0xf]  ;;  %v4763_v7 = vld [vmem:[%s6420_s3 + $0x90] sm:$0xff]  }
  0x1a   : > { %v854_v36 = vor.u32 %v853_v32, %v849_v27  ;;  %v721_v53 = vrot.slane %v719_v49, 1  ;;  %v726_v54 = vrot.slane %v724_v50, 1  ;;  %v868_v58 = vshll.u32 %v4761_v52, 16  ;;  %v5156_v9 = vld [vmem:[%s5064_s22 + $0x20] ss:$0 sps:$4 sm:$0x11]  }
  0x1b   : > { %v715_v35 = vsel %vm703_vm0, %v710_v30, %v714_v25  ;;  %v861_v55 = vshrl.u32 %v3806_v51, 16  ;;  %v863_v56 = vshll.u32 %v3806_v51, 16  ;;  %v3795_v8 = vcombine.low %v371_v4, %v5148_v5  ;;  %v4764_v10 = vld [vmem:[%s6420_s3 + $0xd8] sm:$0xff]   ;;  %v395_v11 = vld [vmem:[%s5064_s22 + $0xa8] sm:$0xf]  ;;  %v4772_v29 = vld [vmem:[%s6420_s3 + $0xe0] sm:$0xff]  }
  0x1c   : > { %4182 = vmatpush3.bf16.msra.mxu0 %v4743_v17  ;;  %4704 = vmatpush3.bf16.msra.mxu1 %v4743_v17  ;;  %v859_v43 = vsel %vm703_vm0, %v854_v36, %v858_v33  ;;  %v722_v60 = vor.u32 %v721_v53, %v717_v48  ;;  %v870_v62 = vrot.slane %v868_v58, 1  ;;  %v736_v17 = vshll.u32 %v5156_v9, 16  ;;  %v4771_v19 = vld [vmem:[%s5064_s22 + $0xb0] ss:$0 sps:$4 sm:$0x11]   ;;  %v4766_v25 = vld [vmem:[%s6420_s3 + $0x98] sm:$0xff]  }
  0x1d   : > { %4183 = vmatprep.subr.bf16.mxu0 %v4744_v21  ;;  %4697 = vmatprep.subr.bf16.mxu1 %v4744_v21  ;;  %v865_v61 = vrot.slane %v863_v56, 1  ;;  %v729_v15 = vshrl.u32 %v3795_v8, 16  ;;  %v731_v16 = vshll.u32 %v3795_v8, 16  ;;  %v880_v24 = vshll.u32 %v4771_v19, 16  ;;  %v373_v30 = vld [vmem:[%s5064_s22 + $0x24] sm:$0xf] }
  0x1e   : > { %2561 = vmatprep.mubr.bf16.mxu0 %v715_v35  ;;  %2657 = vmatprep.mubr.bf16.mxu1 %v859_v43  ;;  %v727_v0 = vsel %vm703_vm0, %v722_v60, %v726_v54  ;;  %v738_v21 = vrot.slane %v736_v17, 1  ;;  %v5181_v36 = vld [vmem:[%s5064_s22 + $0x2c] ss:$0 sps:$4 sm:$0x11]   ;;  %v397_v38 = vld [vmem:[%s5064_s22 + $0xb4] sm:$0xf] }
  0x1f   : > { %v866_v1 = vor.u32 %v865_v61, %v861_v55  ;;  %v733_v20 = vrot.slane %v731_v16, 1  ;;  %v882_v28 = vrot.slane %v880_v24, 1  ;;  %v748_v45 = vshll.u32 %v5181_v36, 16  ;;  %v4775_v48 = vld [vmem:[%s6420_s3 + $0xa8] sm:$0xff]   ;;  %v4781_v52 = vld [vmem:[%s6420_s3 + $0x150] sm:$0xff]   ;;  %v4785_v17 = vld [vmem:[%s6420_s3 + $0xb8] sm:$0xff]  }
  0x20   : > { %4184 = vmatpush3.bf16.msra.mxu0 %v4745_v26  ;;  %4705 = vmatpush3.bf16.msra.mxu1 %v4745_v26  ;;  %v415_v16 = vld [vmem:[%s5064_s22] sm:$0xe]  ;;  %v4794_v24 = vld [vmem:[%s6420_s3 + $0x118] sm:$0xff]  }
  0x21   : > { %4185 = vmatprep.subr.bf16.mxu0 %v4746_v31  ;;  %4698 = vmatprep.subr.bf16.mxu1 %v4746_v31  ;;  %v871_v6 = vsel %vm703_vm0, %v866_v1, %v870_v62  ;;  %v734_v26 = vor.u32 %v733_v20, %v729_v15  ;;  %v5173_v31 = vld [vmem:[%s5064_s22 + $0x28] sm:$0xf]  ;;  %v750_v50 = vrot.slane %v748_v45, 1  ;;  %v375_v62 = vld [vmem:[%s5064_s22 + $0x30] sm:$0xf]  ;;  %v4791_v20 = vld [vmem:[%s6420_s3 + $0x1c0] sm:$0xff]  }
  0x22   : > { %v3796_v35 = vcombine.low %v373_v30, %v5173_v31  ;;  %v5260_v30 = vld [vmem:[%s5064_s22 + $0x44] ss:$0 sps:$4 sm:$0x11]   ;;  %v4806_v45 = vld [vmem:[%s6420_s3 + $0x1c8] sm:$0xff]  }
  0x23   : > { %v739_v32 = vsel %vm703_vm0, %v734_v26, %v738_v21  ;;  %v5254_v26 = vld [vmem:[%s5064_s22 + $0x40] sm:$0xf] }
  0x24   : > { %4186 = vmatpush3.bf16.msra.mxu0 %v4747_v34  ;;  %4706 = vmatpush3.bf16.msra.mxu1 %v4747_v34  ;;  %v4773_v34 = vld [vmem:[%s6420_s3 + $0xa0] sm:$0xff]   ;;  %v741_v43 = vshrl.u32 %v3796_v35, 16  ;;  %v743_v44 = vshll.u32 %v3796_v35, 16 }
  0x25   : > { %4283 = vmatprep.subr.bf16.mxu1 %v4752_v37  ;;  %4395 = vmatprep.subr.bf16.mxu0 %v4753_v40  ;;  %v4774_v37 = vld [vmem:[%s6420_s3 + $0xe8] sm:$0xff]   ;;  %v398_v40 = vld [vmem:[%s5064_s22 + $0xb8] sm:$0xf] }
  0x26   : > { %v745_v49 = vrot.slane %v743_v44, 1  ;;  %v379_v44 = vld [vmem:[%s5064_s22 + $0x48] sm:$0xf] }
  0x27   : > { %2562 = vmatmul.mubr.bf16.vlgmr.msra.gmra.mrb[0].mxu0 %v5077_v13  ;;  %2658 = vmatmul.mubr.bf16.vlgmr.msra.gmra.mrb[0].mxu1 %v3805_v22  ;;  %v396_v13 = vld [vmem:[%s5064_s22 + $0xac] sm:$0xf] }
  0x28   : > { %4284 = vmatpush3.bf16.msra.mxu1 %v4754_v46  ;;  %4396 = vmatpush3.bf16.msra.mxu0 %v4755_v47  ;;  %v3807_v18 = vcombine.low %v395_v11, %v396_v13  ;;  %v4779_v46 = vld [vmem:[%s5064_s22 + $0xbc] ss:$0 sps:$4 sm:$0x11]   ;;  %v3808_v47 = vcombine.low %v397_v38, %v398_v40  ;;  %v746_v55 = vor.u32 %v745_v49, %v741_v43 }
  0x29   : > { %4285 = vmatprep.subr.bf16.mxu1 %v4756_v57  ;;  %2569 = vmatprep.mubr.bf16.mxu0 %v727_v0  ;;  %v4780_v57 = vld [vmem:[%s6420_s3 + $0xf0] sm:$0xff]  }
  0x2a   : > { %4397 = vmatprep.subr.bf16.mxu0 %v4765_v63  ;;  %2665 = vmatprep.mubr.bf16.mxu1 %v871_v6  ;;  %v873_v22 = vshrl.u32 %v3807_v18, 16  ;;  %v875_v23 = vshll.u32 %v3807_v18, 16  ;;  %v885_v53 = vshrl.u32 %v3808_v47, 16  ;;  %v887_v54 = vshll.u32 %v3808_v47, 16  ;;  %v5212_v63 = vld [vmem:[%s5064_s22 + $0x34] sm:$0xf] }
  0x2b   : > { %v751_v60 = vsel %vm703_vm0, %v746_v55, %v750_v50  ;;  %v4782_v0 = vld [vmem:[%s6420_s3 + $0xb0] sm:$0xff]   ;;  %v3797_v1 = vcombine.low %v375_v62, %v5212_v63  ;;  %v4784_v6 = vld [vmem:[%s6420_s3 + $0xf8] sm:$0xff]  }
  0x2c   : > { %4286 = vmatpush3.bf16.msra.mxu1 %v4757_v59  ;;  %4398 = vmatpush3.bf16.msra.mxu0 %v4767_v3  ;;  %v877_v27 = vrot.slane %v875_v23, 1  ;;  %v889_v58 = vrot.slane %v887_v54, 1  ;;  %v4783_v59 = vld [vmem:[%s6420_s3 + $0x110] sm:$0xff]   ;;  %v962_v3 = vrot.slane %v5080_v14, 1  ;;  %v3825_v14 = vcombine.low %v415_v16, %v5074_v12  ;;  %v4793_v12 = vld [vmem:[%s6420_s3 + $0x158] sm:$0xff]   ;;  %v4792_v23 = vld [vmem:[%s6420_s3 + $0x180] sm:$0xff]  }
  0x2d   : > { %4287 = vmatprep.subr.bf16.mxu1 %v4762_v2  ;;  %4399 = vmatprep.subr.bf16.mxu0 %v4781_v52  ;;  %v5219_v2 = vld [vmem:[%s5064_s22 + $0x38] ss:$0 sps:$4 sm:$0x11]   ;;  %v755_v11 = vshll.u32 %v3797_v1, 16 }
  0x2e   : > { %v878_v33 = vor.u32 %v877_v27, %v873_v22  ;;  %v890_v61 = vor.u32 %v889_v58, %v885_v53  ;;  %v760_v13 = vshll.u32 %v5219_v2, 16  ;;  %v961_v21 = vrot.slane %v3825_v14, 1  ;;  %v5290_v53 = vld [vmem:[%s5208_s15 + $0x1c] sm:$0xf]  ;;  %v417_v58 = vld [vmem:[%s5064_s22 + $0x18] sm:$0xe] }
  0x2f   : > { %2570 = vmatmul.mubr.bf16.gmra.mrb[4].mxu0 %v3794_v41  ;;  %2666 = vmatmul.mubr.bf16.gmra.mrb[4].mxu1 %v3806_v51  ;;  %v892_v51 = vshll.u32 %v4779_v46, 16  ;;  %v968_v14 = vrot.slane %v5156_v9, 1 }
  0x30   : > { %4288 = vmatpush3.bf16.msra.mxu1 %v4763_v7  ;;  %2577 = vmatprep.mubr.bf16.mxu0 %v739_v32  ;;  %v883_v41 = vsel %vm703_vm0, %v878_v33, %v882_v28  ;;  %v431_v7 = vld [vmem:[%s5208_s15] sm:$0xf]  ;;  %v762_v19 = vrot.slane %v760_v13, 1  ;;  %v963_v28 = vsel %vm960_vm1, %v961_v21, %v962_v3  ;;  %v433_v32 = vld [vmem:[%s5208_s15 + $0xc] sm:$0xf]  ;;  %v3827_v3 = vcombine.low %v417_v58, %v5148_v5 }
  0x31   : > { %4289 = vmatprep.subr.bf16.mxu1 %v4764_v10  ;;  %2673 = vmatprep.mubr.bf16.mxu1 %v883_v41  ;;  %v894_v56 = vrot.slane %v892_v51, 1  ;;  %v753_v10 = vshrl.u32 %v3797_v1, 16  ;;  %v4805_v33 = vld [vmem:[%s6420_s3 + $0x160] sm:$0xff]   ;;  %v772_v41 = vshll.u32 %v5260_v30, 16  ;;  %v4814_v13 = vld [vmem:[%s6420_s3 + $0x168] sm:$0xff]  }
  0x32   : > { %4400 = vmatpush3.bf16.msra.mxu0 %v4783_v59  ;;  %v5287_v51 = vld [vmem:[%s5064_s22 + $0x50] ss:$0 sps:$4 sm:$0x11]   ;;  %v4808_v59 = vld [vmem:[%s6420_s3 + $0x188] sm:$0xff]   ;;  %v967_v16 = vrot.slane %v3827_v3, 1 }
  0x33   : > { %v895_v4 = vsel %vm703_vm0, %v890_v61, %v894_v56  ;;  %4401 = vmatprep.subr.bf16.mxu0 %v4793_v12  ;;  %v774_v49 = vrot.slane %v772_v41, 1  ;;  %v418_v12 = vld [vmem:[%s5064_s22 + $0x24] sm:$0xe]  ;;  %v5373_v58 = vld [vmem:[%s5064_s22 + $0x74] ss:$0 sps:$4 sm:$0x11]  }
  0x34   : > { %4290 = vmatpush3.bf16.msra.mxu1 %v4766_v25  ;;  %v377_v25 = vld [vmem:[%s5064_s22 + $0x3c] sm:$0xf]  ;;  %v820_v3 = vshll.u32 %v5373_v58, 16 }
  0x35   : > { %4291 = vmatprep.subr.bf16.mxu1 %v4772_v29  ;;  %v3798_v29 = vcombine.low %v377_v25, %v5254_v26  ;;  %v969_v25 = vsel %vm960_vm1, %v967_v16, %v968_v14  ;;  %v441_v16 = vld [vmem:[%s5208_s15 + $0x3c] sm:$0xf] }
  0x36   : > { %4402 = vmatpush3.bf16.msra.mxu0 %v4794_v24  ;;  %v420_v14 = vld [vmem:[%s5064_s22 + $0x3c] sm:$0xe] }
  0x37   : > { %2578 = vmatmul.mubr.bf16.gmra.mrb[8].mxu0 %v3795_v8  ;;  %2674 = vmatmul.mubr.bf16.gmra.mrb[8].mxu1 %v3807_v18  ;;  %v5228_v8 = vld [vmem:[%s5208_s15 + $0x4] sm:$0xf]  ;;  %v757_v18 = vrot.slane %v755_v11, 1  ;;  %v765_v38 = vshrl.u32 %v3798_v29, 16  ;;  %v767_v40 = vshll.u32 %v3798_v29, 16 }
  0x38   : > { %4292 = vmatpush3.bf16.msra.mxu1 %v4773_v34  ;;  %2585 = vmatprep.mubr.bf16.mxu0 %v751_v60  ;;  %v5232_v15 = vcombine.low %v431_v7, %v5228_v8  ;;  %v5267_v34 = vld [vmem:[%s5208_s15 + $0x10] sm:$0xf]  ;;  %v5308_v7 = vld [vmem:[%s5064_s22 + $0x58] sm:$0xf] }
  0x39   : > { %4293 = vmatprep.subr.bf16.mxu1 %v4774_v37  ;;  %2681 = vmatprep.mubr.bf16.mxu1 %v895_v4  ;;  %v758_v22 = vor.u32 %v757_v18, %v753_v10  ;;  %v965_v37 = vrot.slane %v5116_v42, 1  ;;  %v5273_v43 = vcombine.low %v433_v32, %v5267_v34  ;;  %v5281_v42 = vld [vmem:[%s5064_s22 + $0x4c] sm:$0xf]  ;;  %v5312_v11 = vld [vmem:[%s5064_s22 + $0x5c] ss:$0 sps:$4 sm:$0x11]  }
  0x3a   : > { %4403 = vmatprep.subr.bf16.mxu0 %v4805_v33  ;;  %v3799_v50 = vcombine.low %v379_v44, %v5281_v42  ;;  %v5322_v18 = vld [vmem:[%s5208_s15 + $0x28] sm:$0xf]  ;;  %v796_v21 = vshll.u32 %v5312_v11, 16  ;;  %v4821_v32 = vld [vmem:[%s6420_s3 + $0x1d0] sm:$0xff]  }
  0x3b   : > { %v763_v27 = vsel %vm703_vm0, %v758_v22, %v762_v19  ;;  %v4815_v22 = vld [vmem:[%s6420_s3 + $0x128] sm:$0xff]  }
  0x3c   : > { %4294 = vmatpush3.bf16.msra.mxu1 %v4775_v48  ;;  %v769_v48 = vrot.slane %v767_v40, 1  ;;  %v777_v55 = vshrl.u32 %v3799_v50, 16  ;;  %v779_v56 = vshll.u32 %v3799_v50, 16  ;;  %v798_v24 = vrot.slane %v796_v21, 1  ;;  %v5398_v21 = vld [vmem:[%s5208_s15 + $0x40] sm:$0xf] }
  0x3d   : > { %4295 = vmatprep.subr.bf16.mxu1 %v4780_v57  ;;  %v784_v57 = vshll.u32 %v5287_v51, 16  ;;  %v971_v40 = vrot.slane %v5181_v36, 1  ;;  %v4828_v36 = vld [vmem:[%s6420_s3 + $0x170] sm:$0xff]  }
  0x3e   : > { %v770_v54 = vor.u32 %v769_v48, %v765_v38  ;;  %v5357_v48 = vld [vmem:[%s5208_s15 + $0x34] sm:$0xf] }
  0x3f   : > { %2586 = vmatmul.mubr.bf16.gmra.mrb[12].mxu0 %v3796_v35  ;;  %2682 = vmatmul.mubr.bf16.gmra.mrb[12].mxu1 %v3808_v47  ;;  %v416_v35 = vld [vmem:[%s5064_s22 + $0xc] sm:$0xe]  ;;  %v435_v47 = vld [vmem:[%s5208_s15 + $0x18] sm:$0xf] }
  0x40   : > { %4296 = vmatpush3.bf16.msra.mxu1 %v4782_v0  ;;  %2722 = vmatprep.mubr.bf16.mxu1 %v5232_v15  ;;  %v3826_v46 = vcombine.low %v416_v35, %v5109_v39  ;;  %v4807_v39 = vld [vmem:[%s6420_s3 + $0x120] sm:$0xff]   ;;  %v5302_v61 = vcombine.low %v435_v47, %v5290_v53  ;;  %v775_v62 = vsel %vm703_vm0, %v770_v54, %v774_v49  ;;  %v781_v0 = vrot.slane %v779_v56, 1  ;;  %v5345_v35 = vld [vmem:[%s5064_s22 + $0x68] ss:$0 sps:$4 sm:$0x11]  }
  0x41   : > { %4297 = vmatprep.subr.bf16.mxu1 %v4784_v6  ;;  %2593 = vmatprep.mubr.bf16.mxu0 %v763_v27  ;;  %v381_v6 = vld [vmem:[%s5064_s22 + $0x54] sm:$0xf]  ;;  %v439_v47 = vld [vmem:[%s5208_s15 + $0x30] sm:$0xf] }
  0x42   : > { %v964_v52 = vrot.slane %v3826_v46, 1  ;;  %4404 = vmatpush3.bf16.msra.mxu0 %v4807_v39  ;;  %v782_v4 = vor.u32 %v781_v0, %v777_v55  ;;  %v3800_v10 = vcombine.low %v381_v6, %v5308_v7  ;;  %v808_v46 = vshll.u32 %v5345_v35, 16  ;;  %v419_v49 = vld [vmem:[%s5064_s22 + $0x30] sm:$0xe]  ;;  %v385_v39 = vld [vmem:[%s5064_s22 + $0x6c] sm:$0xf] }
  0x43   : > { %4405 = vmatprep.subr.bf16.mxu0 %v4814_v13  ;;  %v5366_v54 = vld [vmem:[%s5064_s22 + $0x70] sm:$0xf]  ;;  %v3829_v56 = vcombine.low %v419_v49, %v5212_v63 }
  0x44   : > { %4298 = vmatpush3.bf16.msra.mxu1 %v4785_v17  ;;  %v966_v60 = vsel %vm960_vm1, %v964_v52, %v965_v37  ;;  %v437_v17 = vld [vmem:[%s5208_s15 + $0x24] sm:$0xf]  ;;  %v789_v19 = vshrl.u32 %v3800_v10, 16  ;;  %v4822_v37 = vld [vmem:[%s6420_s3 + $0x190] sm:$0xff]   ;;  %v810_v52 = vrot.slane %v808_v46, 1 }
  0x45   : > { %4507 = vmatprep.subr.bf16.mxu1 %v4791_v20  ;;  %v791_v20 = vshll.u32 %v3800_v10, 16  ;;  %v5332_v27 = vcombine.low %v437_v17, %v5322_v18  ;;  %v973_v6 = vrot.slane %v3829_v56, 1  ;;  %v5433_v46 = vld [vmem:[%s5208_s15 + $0x4c] sm:$0xf] }
  0x46   : > { %4406 = vmatpush3.bf16.msra.mxu0 %v4815_v22  ;;  %v3830_v22 = vcombine.low %v420_v14, %v5254_v26 }
  0x47   : > { %2594 = vmatmul.mubr.bf16.gmra.mrb[16].mxu0 %v3797_v1  ;;  %2723 = vmatmul.mubr.bf16.vlgmr.msra.gmra.mrb[16].mxu1 %v963_v28  ;;  %v786_v1 = vrot.slane %v784_v57, 1  ;;  %v793_v9 = vrot.slane %v791_v20, 1  ;;  %v383_v28 = vld [vmem:[%s5064_s22 + $0x60] sm:$0xf]  ;;  %v5370_v57 = vcombine.low %v385_v39, %v5366_v54  ;;  %v822_v20 = vrot.slane %v820_v3, 1 }
  0x48   : > { %4508 = vmatpush3.bf16.msra.mxu1 %v4792_v23  ;;  %2730 = vmatprep.mubr.bf16.mxu1 %v5273_v43  ;;  %v3828_v23 = vcombine.low %v418_v12, %v5173_v31  ;;  %v4848_v39 = vld [vmem:[%s6420_s3 + $0x1e0] sm:$0xff]  }
  0x49   : > { %4509 = vmatprep.subr.bf16.mxu1 %v4806_v45  ;;  %2601 = vmatprep.mubr.bf16.mxu0 %v775_v62  ;;  %v787_v5 = vsel %vm703_vm0, %v782_v4, %v786_v1  ;;  %v794_v33 = vor.u32 %v793_v9, %v789_v19  ;;  %v974_v62 = vrot.slane %v5219_v2, 1  ;;  %v813_v1 = vshrl.u32 %v5370_v57, 16  ;;  %v4829_v4 = vld [vmem:[%s6420_s3 + $0x130] sm:$0xff]   ;;  %v5389_v2 = vld [vmem:[%s5064_s22 + $0x7c] sm:$0xf] }
  0x4a   : > { %v970_v38 = vrot.slane %v3828_v23, 1  ;;  %4407 = vmatprep.subr.bf16.mxu0 %v4828_v36  ;;  %v815_v63 = vshll.u32 %v5370_v57, 16  ;;  %v4835_v23 = vld [vmem:[%s6420_s3 + $0x1d8] sm:$0xff]   ;;  %v421_v36 = vld [vmem:[%s5064_s22 + $0x48] sm:$0xe] }
  0x4b   : > { %v799_v41 = vsel %vm703_vm0, %v794_v33, %v798_v24  ;;  %4408 = vmatpush3.bf16.msra.mxu0 %v4829_v4  ;;  %v975_v9 = vsel %vm960_vm1, %v973_v6, %v974_v62  ;;  %v5410_v24 = vcombine.low %v441_v16, %v5398_v21  ;;  %v5454_v62 = vld [vmem:[%s6420_s3 + $0x200] sm:$0xff]   ;;  %v980_v4 = vrot.slane %v5287_v51, 1  ;;  %v445_v6 = vld [vmem:[%s5208_s15 + $0x54] sm:$0xf]  ;;  %v5469_v51 = vld [vmem:[%s5208_s15 + $0x58] sm:$0xf] }
  0x4c   : > { %4510 = vmatpush3.bf16.msra.mxu1 %v4808_v59  ;;  %v972_v59 = vsel %vm960_vm1, %v970_v38, %v971_v40  ;;  %v817_v13 = vrot.slane %v815_v63, 1  ;;  %v4837_v38 = vld [vmem:[%s6420_s3 + $0x178] sm:$0xff]  }
  0x4d   : > { %4511 = vmatprep.subr.bf16.mxu1 %v4821_v32  ;;  %v4838_v40 = vld [vmem:[%s6420_s3 + $0x138] sm:$0xff]   ;;  %4409 = vmatprep.subr.bf16.mxu0 %v4837_v38 }
  0x4e   : > { %v818_v19 = vor.u32 %v817_v13, %v813_v1 }
  0x4f   : > { %2602 = vmatmul.mubr.bf16.gmra.mrb[20].mxu0 %v3798_v29  ;;  %2731 = vmatmul.mubr.bf16.gmra.mrb[20].mxu1 %v966_v60  ;;  %v5336_v29 = vld [vmem:[%s5064_s22 + $0x64] sm:$0xf]  ;;  %v5377_v60 = vcombine.low %v439_v47, %v5357_v48 }
  0x50   : > { %2738 = vmatprep.mubr.bf16.mxu1 %v5302_v61  ;;  %2609 = vmatprep.mubr.bf16.mxu0 %v787_v5  ;;  %v5342_v31 = vcombine.low %v383_v28, %v5336_v29  ;;  %v387_v5 = vld [vmem:[%s5064_s22 + $0x78] sm:$0xf]  ;;  %v823_v32 = vsel %vm703_vm0, %v818_v19, %v822_v20  ;;  %v422_v19 = vld [vmem:[%s5064_s22 + $0x54] sm:$0xe] }
  0x51   : > { %4512 = vmatpush3.bf16.msra.mxu1 %v4822_v37  ;;  %v5395_v17 = vcombine.low %v387_v5, %v5389_v2  ;;  %v4836_v37 = vld [vmem:[%s6420_s3 + $0x198] sm:$0xff]   ;;  %4410 = vmatpush3.bf16.msra.mxu0 %v4838_v40  ;;  %v4850_v5 = vld [vmem:[%s6420_s3 + $0x1a0] sm:$0xff]   ;;  %v480_v40 = vld [vmem:[%s5208_s15 + $0xc] sm:$0xe] }
  0x52   : > { %v801_v44 = vshrl.u32 %v5342_v31, 16  ;;  %v803_v45 = vshll.u32 %v5342_v31, 16  ;;  %4513 = vmatprep.subr.bf16.mxu1 %v4835_v23  ;;  %4643 = vmatprep.subr.bf16.mxu0 %v5454_v62 }
  0x53   : > { %v827_v12 = vshll.u32 %v5395_v17, 16  ;;  %v825_v28 = vshrl.u32 %v5395_v17, 16 }
  0x55   : > { %v829_v26 = vrot.slane %v827_v12, 1  ;;  %4514 = vmatpush3.bf16.msra.mxu1 %v4836_v37  ;;  %v5475_v12 = vcombine.low %v445_v6, %v5469_v51  ;;  %v423_v37 = vld [vmem:[%s5064_s22 + $0x60] sm:$0xe] }
  0x56   : > { %4515 = vmatprep.subr.bf16.mxu1 %v4848_v39 }
  0x57   : > { %2610 = vmatmul.mubr.bf16.gmra.mrb[24].mxu0 %v3799_v50  ;;  %2739 = vmatmul.mubr.bf16.gmra.mrb[24].mxu1 %v969_v25  ;;  %v805_v50 = vrot.slane %v803_v45, 1  ;;  %v977_v25 = vrot.slane %v5260_v30, 1  ;;  %v976_v30 = vrot.slane %v3830_v22, 1  ;;  %v443_v45 = vld [vmem:[%s5208_s15 + $0x48] sm:$0xf]  ;;  %v3832_v22 = vcombine.low %v422_v19, %v5308_v7 }
  0x58   : > { %2617 = vmatprep.mubr.bf16.mxu0 %v799_v41  ;;  %2746 = vmatprep.mubr.bf16.mxu1 %v5332_v27  ;;  %v389_v41 = vld [vmem:[%s5064_s22 + $0x84] sm:$0xf]  ;;  %v5448_v56 = vcombine.low %v443_v45, %v5433_v46  ;;  %v3833_v45 = vcombine.low %v423_v37, %v5336_v29  ;;  %v986_v29 = vrot.slane %v5345_v35, 1 }
  0x59   : > { %v806_v55 = vor.u32 %v805_v50, %v801_v44  ;;  %v5428_v44 = vld [vmem:[%s5064_s22 + $0x88] sm:$0xf]  ;;  %v5440_v50 = vld [vmem:[%s5064_s22 + $0x8c] ss:$0 sps:$4 sm:$0x11]   ;;  %4516 = vmatpush3.bf16.msra.mxu1 %v4850_v5  ;;  %v982_v7 = vrot.slane %v3832_v22, 1 }
  0x5a   : > { %v5436_v47 = vcombine.low %v389_v41, %v5428_v44  ;;  %v844_v3 = vshll.u32 %v5440_v50, 16  ;;  %v985_v39 = vrot.slane %v3833_v45, 1  ;;  %v4872_v5 = vld [vmem:[%s6420_s3 + $0x1b0] sm:$0xff]   ;;  %v4857_v22 = vld [vmem:[%s5208_s15 + $0x20] ss:$0 sps:$4 sm:$0x11]  }
  0x5b   : > { %v811_v0 = vsel %vm703_vm0, %v806_v55, %v810_v52  ;;  %v978_v55 = vsel %vm960_vm1, %v976_v30, %v977_v25  ;;  %v4859_v25 = vld [vmem:[%s6420_s3 + $0x1e8] sm:$0xff]  }
  0x5c   : > { %v839_v52 = vshll.u32 %v5436_v47, 16  ;;  %v837_v1 = vshrl.u32 %v5436_v47, 16  ;;  %v846_v14 = vrot.slane %v844_v3, 1  ;;  %4517 = vmatprep.subr.bf16.mxu1 %v4859_v25  ;;  %v4861_v30 = vld [vmem:[%s6420_s3 + $0x1a8] sm:$0xff]   ;;  %v481_v3 = vld [vmem:[%s5208_s15 + $0x18] sm:$0xe] }
  0x5d   : > { %4518 = vmatpush3.bf16.msra.mxu1 %v4861_v30  ;;  %v1196_v25 = vshll.u32 %v5302_v61, 16  ;;  %v482_v30 = vld [vmem:[%s5208_s15 + $0x24] sm:$0xe] }
  0x5e   : > { %v841_v63 = vrot.slane %v839_v52, 1  ;;  %v3874_v52 = vcombine.low %v480_v40, %v5267_v34  ;;  %v449_v34 = vld [vmem:[%s5208_s15 + $0x6c] sm:$0xf] }
  0x5f   : > { %2618 = vmatmul.mubr.bf16.gmra.mrb[28].mxu0 %v3800_v10  ;;  %2747 = vmatmul.mubr.bf16.gmra.mrb[28].mxu1 %v972_v59  ;;  %v5401_v10 = vld [vmem:[%s5064_s22 + $0x80] ss:$0 sps:$4 sm:$0x11]   ;;  %v3831_v59 = vcombine.low %v421_v36, %v5281_v42  ;;  %v479_v42 = vld [vmem:[%s5208_s15] sm:$0xe] }
  0x60   : > { %2625 = vmatprep.mubr.bf16.mxu0 %v811_v0  ;;  %2754 = vmatprep.mubr.bf16.mxu1 %v5377_v60  ;;  %v832_v33 = vshll.u32 %v5401_v10, 16  ;;  %v842_v16 = vor.u32 %v841_v63, %v837_v1  ;;  %v1184_v1 = vshll.u32 %v5273_v43, 16  ;;  %v5514_v63 = vld [vmem:[%s5208_s15 + $0x70] sm:$0xf] }
  0x61   : > { %v979_v13 = vrot.slane %v3831_v59, 1  ;;  %v4864_v40 = vld [vmem:[%s5208_s15 + $0x2c] ss:$0 sps:$4 sm:$0x11]  }
  0x62   : > { %v834_v49 = vrot.slane %v832_v33, 1  ;;  %v847_v23 = vsel %vm703_vm0, %v842_v16, %v846_v14  ;;  %v1182_v14 = vshrl.u32 %v5273_v43, 16  ;;  %v1186_v19 = vrot.slane %v1184_v1, 1  ;;  %v5537_v43 = vld [vmem:[%s5208_s15 + $0x7c] sm:$0xf] }
  0x63   : > { %v981_v20 = vsel %vm960_vm1, %v979_v13, %v980_v4  ;;  %v1428_v4 = vrot.slane %v3874_v52, 1  ;;  %v5521_v13 = vcombine.low %v449_v34, %v5514_v63  ;;  %v1201_v52 = vshll.u32 %v4857_v22, 16  ;;  %v426_v1 = vld [vmem:[%s5064_s22 + $0x84] sm:$0xe]  ;;  %v5572_v34 = vld [vmem:[%s5208_s15 + $0x88] sm:$0xf] }
  0x67   : > { %2626 = vmatmul.mubr.bf16.gmra.mrb[32].mxu0 %v5342_v31  ;;  %2755 = vmatmul.mubr.bf16.gmra.mrb[32].mxu1 %v975_v9  ;;  %v830_v31 = vor.u32 %v829_v26, %v825_v28  ;;  %v4846_v9 = vld [vmem:[%s5208_s15 + $0x8] ss:$0 sps:$4 sm:$0x11]   ;;  %v1172_v28 = vshll.u32 %v5232_v15, 16  ;;  %v5488_v26 = vld [vmem:[%s5208_s15 + $0x64] sm:$0xf] }
  0x68   : > { %2633 = vmatprep.mubr.bf16.mxu0 %v823_v32  ;;  %2762 = vmatprep.mubr.bf16.mxu1 %v5410_v24  ;;  %v447_v32 = vld [vmem:[%s5208_s15 + $0x60] sm:$0xf]  ;;  %v1426_v38 = vrot.slane %v4846_v9, 1  ;;  %v1177_v41 = vshll.u32 %v4846_v9, 16 }
  0x69   : > { %v835_v0 = vsel %vm703_vm0, %v830_v31, %v834_v49  ;;  %v5500_v49 = vcombine.low %v447_v32, %v5488_v26 }
  0x6a   : > { %v1179_v59 = vrot.slane %v1177_v41, 1  ;;  %v4883_v41 = vld [vmem:[%s6420_s3 + $0x1b8] sm:$0xff]  }
  0x6f   : > { %2634 = vmatmul.mubr.bf16.gmra.mrb[36].mxu0 %v5370_v57  ;;  %2763 = vmatmul.mubr.bf16.gmra.mrb[36].mxu1 %v978_v55  ;;  %v3873_v57 = vcombine.low %v479_v42, %v5228_v8  ;;  %v983_v8 = vrot.slane %v5312_v11, 1  ;;  %v1170_v11 = vshrl.u32 %v5232_v15, 16  ;;  %v4853_v15 = vld [vmem:[%s5208_s15 + $0x14] ss:$0 sps:$4 sm:$0x11]   ;;  %v987_v42 = vsel %vm960_vm1, %v985_v39, %v986_v29 }
  0x70   : > { %2641 = vmatprep.mubr.bf16.mxu0 %v835_v0  ;;  %2770 = vmatprep.mubr.bf16.mxu1 %v5448_v56  ;;  %v4870_v0 = vld [vmem:[%s6420_s3 + $0x1f0] sm:$0xff]   ;;  %v1429_v35 = vrot.slane %v4853_v15, 1  ;;  %v992_v29 = vrot.slane %v5401_v10, 1 }
  0x71   : > { %v1425_v33 = vrot.slane %v3873_v57, 1  ;;  %v984_v31 = vsel %vm960_vm1, %v982_v7, %v983_v8  ;;  %4519 = vmatprep.subr.bf16.mxu1 %v4870_v0  ;;  %v1189_v57 = vshll.u32 %v4853_v15, 16  ;;  %v1187_v8 = vor.u32 %v1186_v19, %v1182_v14  ;;  %v425_v7 = vld [vmem:[%s5064_s22 + $0x78] sm:$0xe]  ;;  %v453_v0 = vld [vmem:[%s5208_s15 + $0x84] sm:$0xf] }
  0x72   : > { %4520 = vmatpush3.bf16.msra.mxu1 %v4872_v5  ;;  %v1430_v9 = vsel %vm960_vm1, %v1428_v4, %v1429_v35  ;;  %v483_v4 = vld [vmem:[%s5208_s15 + $0x30] sm:$0xe]  ;;  %v3836_v35 = vcombine.low %v426_v1, %v5428_v44  ;;  %v5586_v5 = vcombine.low %v453_v0, %v5572_v34  ;;  %v1213_v14 = vshll.u32 %v4864_v40, 16  ;;  %v4868_v19 = vld [vmem:[%s5208_s15 + $0x38] ss:$0 sps:$4 sm:$0x11]  }
  0x73   : > { %v1427_v36 = vsel %vm960_vm1, %v1425_v33, %v1426_v38  ;;  %v1191_v32 = vrot.slane %v1189_v57, 1  ;;  %v4881_v33 = vld [vmem:[%s6420_s3 + $0x1f8] sm:$0xff]   ;;  %v1432_v38 = vrot.slane %v4857_v22, 1  ;;  %v4891_v57 = vld [vmem:[%s6420_s3 + $0x220] sm:$0xff]   ;;  %v995_v22 = vrot.slane %v5440_v50, 1  ;;  %v4898_v50 = vld [vmem:[%s6420_s3 + $0x228] sm:$0xff]  }
  0x74   : > { %4521 = vmatprep.subr.bf16.mxu1 %v4881_v33  ;;  %v4912_v0 = vld [vmem:[%s6420_s3 + $0x238] sm:$0xff]  }
  0x76   : > { %4522 = vmatpush3.bf16.msra.mxu1 %v4883_v41  ;;  %v4875_v41 = vld [vmem:[%s5208_s15 + $0x44] ss:$0 sps:$4 sm:$0x11]  }
  0x77   : > { %2642 = vmatmul.mubr.bf16.gmra.mrb[40].mxu0 %v5395_v17  ;;  %2771 = vmatmul.mubr.bf16.gmra.mrb[40].mxu1 %v981_v20  ;;  %v1174_v17 = vrot.slane %v1172_v28, 1  ;;  %v3875_v20 = vcombine.low %v481_v3, %v5290_v53  ;;  %v989_v28 = vrot.slane %v5373_v58, 1  ;;  %v1435_v3 = vrot.slane %v4864_v40, 1 }
  0x78   : > { %2649 = vmatprep.mubr.bf16.mxu0 %v847_v23  ;;  %2778 = vmatprep.mubr.bf16.mxu1 %v5475_v12  ;;  %v4860_v23 = vld [vmem:[%s6420_s3 + $0x208] sm:$0xff]   ;;  %v1225_v40 = vshll.u32 %v4868_v19, 16 }
  0x79   : > { %v1175_v55 = vor.u32 %v1174_v17, %v1170_v11  ;;  %v1431_v37 = vrot.slane %v3875_v20, 1  ;;  %v1194_v11 = vshrl.u32 %v5302_v61, 16  ;;  %v3835_v17 = vcombine.low %v425_v7, %v5389_v2  ;;  %v4882_v2 = vld [vmem:[%s6420_s3 + $0x218] sm:$0xff]  }
  0x7a   : > { %v3876_v61 = vcombine.low %v482_v30, %v5322_v18  ;;  %v3877_v20 = vcombine.low %v483_v4, %v5357_v48 }
  0x7b   : > { %v1180_v6 = vsel %vm703_vm0, %v1175_v55, %v1179_v59  ;;  %v1433_v15 = vsel %vm960_vm1, %v1431_v37, %v1432_v38  ;;  %v991_v39 = vrot.slane %v3835_v17, 1  ;;  %v1208_v55 = vshll.u32 %v5332_v27, 16  ;;  %v4948_v37 = vld [vmem:[%s5064_s22 + $0x94] sm:$0xf] }
  0x7c   : > { %v1203_v59 = vrot.slane %v1201_v52, 1  ;;  %v4949_v52 = vld [vmem:[%s5064_s22 + $0x98] ss:$0 sps:$4 sm:$0x11]  }
  0x7d   : > { %v993_v10 = vsel %vm960_vm1, %v991_v39, %v992_v29  ;;  %v5624_v39 = vld [vmem:[%s5208_s15 + $0xa0] sm:$0xf] }
  0x7f   : > { %2650 = vmatmul.mubr.bf16.gmra.mrb[44].mxu0 %v5436_v47  ;;  %2779 = vmatmul.mubr.bf16.gmra.mrb[44].mxu1 %v984_v31  ;;  %v424_v47 = vld [vmem:[%s5064_s22 + $0x6c] sm:$0xe]  ;;  %v1192_v31 = vsel %vm703_vm0, %v1187_v8, %v1191_v32  ;;  %v1438_v8 = vrot.slane %v4868_v19, 1  ;;  %v484_v32 = vld [vmem:[%s5208_s15 + $0x3c] sm:$0xe] }
  0x80   : > { %2786 = vmatprep.mubr.bf16.mxu1 %v5500_v49  ;;  %2883 = vmatprep.mubr.bf16.mxu0 %v1427_v36  ;;  %v3834_v16 = vcombine.low %v424_v47, %v5366_v54  ;;  %v451_v54 = vld [vmem:[%s5208_s15 + $0x78] sm:$0xf]  ;;  %v1198_v36 = vrot.slane %v1196_v25, 1  ;;  %v1434_v47 = vrot.slane %v3876_v61, 1  ;;  %v1220_v25 = vshll.u32 %v5377_v60, 16 }
  0x81   : > { %v5552_v58 = vcombine.low %v451_v54, %v5537_v43  ;;  %v1215_v54 = vrot.slane %v1213_v14, 1  ;;  %v998_v61 = vrot.slane %v4949_v52, 1  ;;  %v4879_v19 = vld [vmem:[%s5208_s15 + $0x50] ss:$0 sps:$4 sm:$0x11]  }
  0x82   : > { %v988_v53 = vrot.slane %v3834_v16, 1  ;;  %v1199_v18 = vor.u32 %v1198_v36, %v1194_v11  ;;  %v1210_v16 = vrot.slane %v1208_v55, 1  ;;  %v1436_v44 = vsel %vm960_vm1, %v1434_v47, %v1435_v3 }
  0x83   : > { %v1218_v11 = vshrl.u32 %v5377_v60, 16  ;;  %v1222_v17 = vrot.slane %v1220_v25, 1  ;;  %v1232_v60 = vshll.u32 %v5410_v24, 16  ;;  %v1441_v55 = vrot.slane %v4875_v41, 1 }
  0x84   : > { %v990_v45 = vsel %vm960_vm1, %v988_v53, %v989_v28  ;;  %v427_v53 = vld [vmem:[%s5064_s22 + $0x90] sm:$0xe]  ;;  %v1437_v28 = vrot.slane %v3877_v20, 1  ;;  %v1230_v3 = vshrl.u32 %v5410_v24, 16  ;;  %v486_v24 = vld [vmem:[%s5208_s15 + $0x54] sm:$0xe] }
  0x85   : > { %v3837_v38 = vcombine.low %v427_v53, %v4948_v37  ;;  %v4951_v20 = vld [vmem:[%s5064_s22 + $0xa4] ss:$0 sps:$4 sm:$0x11]   ;;  %v1444_v53 = vrot.slane %v4879_v19, 1 }
  0x87   : > { %2787 = vmatmul.mubr.bf16.gmra.mrb[48].mxu1 %v987_v42  ;;  %2884 = vmatmul.mubr.bf16.vlgmr.msra.gmra.mrb[48].mxu0 %v1180_v6  ;;  %v1206_v42 = vshrl.u32 %v5332_v27, 16  ;;  %v1204_v6 = vsel %vm703_vm0, %v1199_v18, %v1203_v59  ;;  %v994_v27 = vrot.slane %v3836_v35, 1  ;;  %v997_v36 = vrot.slane %v3837_v38, 1  ;;  %v428_v18 = vld [vmem:[%s5064_s22 + $0x9c] sm:$0xe] }
  0x88   : > { %4644 = vmatpush3.bf16.msra.mxu0 %v5454_v62  ;;  %2794 = vmatprep.mubr.bf16.mxu1 %v5521_v13  ;;  %v4871_v62 = vld [vmem:[%s6420_s3 + $0x210] sm:$0xff]   ;;  %v485_v59 = vld [vmem:[%s5208_s15 + $0x48] sm:$0xe]  ;;  %v1249_v38 = vshll.u32 %v4879_v19, 16 }
  0x89   : > { %2891 = vmatprep.mubr.bf16.mxu0 %v1430_v9  ;;  %4645 = vmatprep.subr.bf16.mxu0 %v4860_v23  ;;  %v5597_v9 = vld [vmem:[%s5208_s15 + $0x94] sm:$0xf]  ;;  %v1211_v48 = vor.u32 %v1210_v16, %v1206_v42  ;;  %v996_v7 = vsel %vm960_vm1, %v994_v27, %v995_v22  ;;  %v999_v1 = vsel %vm960_vm1, %v997_v36, %v998_v61  ;;  %v1234_v42 = vrot.slane %v1232_v60, 1  ;;  %v459_v27 = vld [vmem:[%s5208_s15 + $0xa8] sm:$0xf] }
  0x8a   : > { %v3879_v16 = vcombine.low %v485_v59, %v5433_v46  ;;  %v5646_v22 = vld [vmem:[%s5208_s15 + $0xac] sm:$0xf]  ;;  %v4953_v36 = vld [vmem:[%s5064_s22 + $0xb0] ss:$0 sps:$4 sm:$0x11]   ;;  %v1251_v60 = vrot.slane %v1249_v38, 1 }
  0x8b   : > { %v1216_v30 = vsel %vm703_vm0, %v1211_v48, %v1215_v54  ;;  %v1235_v25 = vor.u32 %v1234_v42, %v1230_v3  ;;  %v1004_v52 = vrot.slane %v4953_v36, 1  ;;  %v1254_v59 = vshrl.u32 %v5475_v12, 16  ;;  %v497_v3 = vld [vmem:[%s5579_s10 + $0xc] sm:$0xf] }
  0x8c   : > { %4646 = vmatpush3.bf16.msra.mxu0 %v4860_v23  ;;  %v455_v23 = vld [vmem:[%s5208_s15 + $0x90] sm:$0xf]  ;;  %v1443_v54 = vrot.slane %v3879_v16, 1  ;;  %v4888_v16 = vld [vmem:[%s5208_s15 + $0x68] ss:$0 sps:$4 sm:$0x11]  }
  0x8d   : > { %4647 = vmatprep.subr.bf16.mxu0 %v4871_v62  ;;  %v5608_v33 = vcombine.low %v455_v23, %v5597_v9  ;;  %v429_v23 = vld [vmem:[%s5064_s22 + $0xa8] sm:$0xe] }
  0x8f   : > { %2795 = vmatmul.mubr.bf16.gmra.mrb[52].mxu1 %v990_v45  ;;  %2892 = vmatmul.mubr.bf16.gmra.mrb[52].mxu0 %v1192_v31  ;;  %v3878_v45 = vcombine.low %v484_v32, %v5398_v21  ;;  %v1439_v31 = vsel %vm960_vm1, %v1437_v28, %v1438_v8  ;;  %v457_v21 = vld [vmem:[%s5208_s15 + $0x9c] sm:$0xf]  ;;  %v495_v28 = vld [vmem:[%s5579_s10] sm:$0xf]  ;;  %v5652_v8 = vld [vmem:[%s5579_s10 + $0x4] sm:$0xf]  ;;  %v3880_v32 = vcombine.low %v486_v24, %v5469_v51 }
  0x90   : > { %2802 = vmatprep.mubr.bf16.mxu1 %v5552_v58  ;;  %2899 = vmatprep.mubr.bf16.mxu0 %v1433_v15  ;;  %v1223_v15 = vor.u32 %v1222_v17, %v1218_v11  ;;  %v5633_v47 = vcombine.low %v457_v21, %v5624_v39  ;;  %v1242_v11 = vshrl.u32 %v5448_v56, 16  ;;  %v1445_v51 = vsel %vm960_vm1, %v1443_v54, %v1444_v53 }
  0x91   : > { %4648 = vmatpush3.bf16.msra.mxu0 %v4871_v62  ;;  %v4905_v62 = vld [vmem:[%s6420_s3 + $0x230] sm:$0xff]   ;;  %v1440_v29 = vrot.slane %v3878_v45, 1  ;;  %v5666_v45 = vcombine.low %v495_v28, %v5652_v8 }
  0x92   : > { %4649 = vmatprep.subr.bf16.mxu0 %v4882_v2 }
  0x93   : > { %v1442_v14 = vsel %vm960_vm1, %v1440_v29, %v1441_v55  ;;  %v1446_v29 = vrot.slane %v3880_v32, 1  ;;  %v4890_v55 = vld [vmem:[%s5579_s10 + $0x8] ss:$0 sps:$4 sm:$0x11]   ;;  %v1450_v32 = vrot.slane %v4888_v16, 1 }
  0x94   : > { %v1890_v36 = vrot.slane %v4890_v55, 1 }
  0x95   : > { %4650 = vmatpush3.bf16.msra.mxu0 %v4882_v2  ;;  %v1227_v2 = vrot.slane %v1225_v40, 1  ;;  %v1256_v40 = vshll.u32 %v5475_v12, 16  ;;  %v1641_v12 = vshll.u32 %v4890_v55, 16 }
  0x96   : > { %4651 = vmatprep.subr.bf16.mxu0 %v4891_v57 }
  0x97   : > { %2803 = vmatmul.mubr.bf16.gmra.mrb[56].mxu1 %v993_v10  ;;  %2900 = vmatmul.mubr.bf16.gmra.mrb[56].mxu0 %v1204_v6  ;;  %v1228_v4 = vsel %vm703_vm0, %v1223_v15, %v1227_v2  ;;  %v4950_v10 = vld [vmem:[%s5064_s22 + $0xa0] sm:$0xf]  ;;  %v1237_v6 = vshll.u32 %v4875_v41, 16  ;;  %v4886_v41 = vld [vmem:[%s5208_s15 + $0x5c] ss:$0 sps:$4 sm:$0x11]  }
  0x98   : > { %2810 = vmatprep.mubr.bf16.mxu1 %v5586_v5  ;;  %2907 = vmatprep.mubr.bf16.mxu0 %v1436_v44  ;;  %v3838_v35 = vcombine.low %v428_v18, %v4950_v10  ;;  %v1001_v44 = vrot.slane %v4951_v20, 1  ;;  %v5672_v15 = vld [vmem:[%s5208_s15 + $0xb8] sm:$0xf]  ;;  %v430_v2 = vld [vmem:[%s5064_s22 + $0xb4] sm:$0xe]  ;;  %v1447_v18 = vrot.slane %v4886_v41, 1 }
  0x99   : > { %4652 = vmatpush3.bf16.msra.mxu0 %v4891_v57  ;;  %v1244_v57 = vshll.u32 %v5448_v56, 16  ;;  %v1239_v48 = vrot.slane %v1237_v6, 1  ;;  %v461_v56 = vld [vmem:[%s5208_s15 + $0xb4] sm:$0xf]  ;;  %v1261_v6 = vshll.u32 %v4886_v41, 16  ;;  %v1634_v20 = vshrl.u32 %v5666_v45, 16 }
  0x9a   : > { %4653 = vmatprep.subr.bf16.mxu0 %v4898_v50  ;;  %v1000_v46 = vrot.slane %v3838_v35, 1  ;;  %v498_v35 = vld [vmem:[%s5579_s10 + $0x10] sm:$0xf]  ;;  %v1448_v24 = vsel %vm960_vm1, %v1446_v29, %v1447_v18  ;;  %v5705_v41 = vld [vmem:[%s5579_s10 + $0x1c] sm:$0xf] }
  0x9b   : > { %v1246_v17 = vrot.slane %v1244_v57, 1  ;;  %v5687_v57 = vcombine.low %v461_v56, %v5672_v15  ;;  %v1263_v53 = vrot.slane %v1261_v6, 1  ;;  %v1273_v56 = vshll.u32 %v4888_v16, 16 }
  0x9d   : > { %4654 = vmatpush3.bf16.msra.mxu0 %v4898_v50  ;;  %v5656_v50 = vcombine.low %v459_v27, %v5646_v22  ;;  %v1247_v21 = vor.u32 %v1246_v17, %v1242_v11  ;;  %v5691_v27 = vcombine.low %v497_v3, %v498_v35  ;;  %v499_v17 = vld [vmem:[%s5579_s10 + $0x18] sm:$0xf] }
  0x9e   : > { %4655 = vmatprep.subr.bf16.mxu0 %v4905_v62 }
  0x9f   : > { %2811 = vmatmul.mubr.bf16.gmra.mrb[60].mxu1 %v996_v7  ;;  %2908 = vmatmul.mubr.bf16.gmra.mrb[60].mxu0 %v1216_v30  ;;  %v4952_v7 = vld [vmem:[%s5064_s22 + $0xac] sm:$0xf]  ;;  %v1240_v30 = vsel %vm703_vm0, %v1235_v25, %v1239_v48  ;;  %v1252_v19 = vsel %vm703_vm0, %v1247_v21, %v1251_v60  ;;  %v4955_v25 = vld [vmem:[%s5064_s22 + $0xbc] ss:$0 sps:$4 sm:$0x11]   ;;  %v1648_v11 = vshll.u32 %v5691_v27, 16 }
  0xa0   : > { %2818 = vmatprep.mubr.bf16.mxu1 %v5608_v33  ;;  %2915 = vmatprep.mubr.bf16.mxu0 %v1439_v31  ;;  %v3839_v37 = vcombine.low %v429_v23, %v4952_v7  ;;  %v487_v31 = vld [vmem:[%s5208_s15 + $0x60] sm:$0xe]  ;;  %v488_v23 = vld [vmem:[%s5208_s15 + $0x6c] sm:$0xe]  ;;  %v1007_v48 = vrot.slane %v4955_v25, 1  ;;  %v1643_v7 = vrot.slane %v1641_v12, 1 }
  0xa1   : > { %4656 = vmatpush3.bf16.msra.mxu0 %v4905_v62  ;;  %v1002_v62 = vsel %vm960_vm1, %v1000_v46, %v1001_v44  ;;  %v3881_v42 = vcombine.low %v487_v31, %v5488_v26  ;;  %v1268_v26 = vshll.u32 %v5500_v49, 16  ;;  %v3882_v38 = vcombine.low %v488_v23, %v5514_v63 }
  0xa2   : > { %4657 = vmatprep.subr.bf16.mxu0 %v4912_v0  ;;  %v1003_v61 = vrot.slane %v3839_v37, 1  ;;  %v543_v37 = vld [vmem:[%s5579_s10] sm:$0xe]  ;;  %v1646_v21 = vshrl.u32 %v5691_v27, 16  ;;  %v1278_v23 = vshrl.u32 %v5521_v13, 16 }
  0xa3   : > { %v1449_v28 = vrot.slane %v3881_v42, 1  ;;  %v3921_v31 = vcombine.low %v543_v37, %v5652_v8  ;;  %v1270_v60 = vrot.slane %v1268_v26, 1  ;;  %v5715_v8 = vcombine.low %v499_v17, %v5705_v41  ;;  %v5731_v26 = vld [vmem:[%s5579_s10 + $0x28] sm:$0xf] }
  0xa4   : > { %v1275_v42 = vrot.slane %v1273_v56, 1  ;;  %v1452_v6 = vrot.slane %v3882_v38, 1 }
  0xa5   : > { %4658 = vmatpush3.bf16.msra.mxu0 %v4912_v0  ;;  %v1258_v0 = vrot.slane %v1256_v40, 1  ;;  %v1451_v63 = vsel %vm960_vm1, %v1449_v28, %v1450_v32  ;;  %v1889_v29 = vrot.slane %v3921_v31, 1  ;;  %v4895_v28 = vld [vmem:[%s5208_s15 + $0x80] ss:$0 sps:$4 sm:$0x11]   ;;  %v1658_v32 = vshrl.u32 %v5715_v8, 16 }
  0xa6   : > { %v1297_v56 = vshll.u32 %v4895_v28, 16 }
  0xa7   : > { %2819 = vmatmul.mubr.bf16.gmra.mrb[64].mxu1 %v999_v1  ;;  %2916 = vmatmul.mubr.bf16.gmra.mrb[64].mxu0 %v1228_v4  ;;  %v1636_v1 = vshll.u32 %v5666_v45, 16  ;;  %v4954_v4 = vld [vmem:[%s5064_s22 + $0xb8] sm:$0xf]  ;;  %v1259_v54 = vor.u32 %v1258_v0, %v1254_v59  ;;  %v1650_v0 = vrot.slane %v1648_v11, 1  ;;  %v5718_v55 = vsel %vm960_vm1, %v1889_v29, %v1890_v36  ;;  %s4043_s22 = sshll.u32 %s6428_s18, 7 }
  0xa8   : > { %2826 = vmatprep.mubr.bf16.mxu1 %v5633_v47  ;;  %2923 = vmatprep.mubr.bf16.mxu0 %v1442_v14  ;;  %v3840_v10 = vcombine.low %v430_v2, %v4954_v4  ;;  %v1005_v14 = vsel %vm960_vm1, %v1003_v61, %v1004_v52  ;;  %v544_v52 = vld [vmem:[%s5579_s10 + $0xc] sm:$0xe]  ;;  %v4892_v2 = vld [vmem:[%s5208_s15 + $0x74] ss:$0 sps:$4 sm:$0x11]   ;;  %v1280_v4 = vshll.u32 %v5521_v13, 16  ;;  %s6339_s26 = scalar_lea.vmem %s6421_s4, %s4043_s22 }
  0xa9   : > { %v1638_v44 = vrot.slane %v1636_v1, 1  ;;  %v1264_v61 = vsel %vm703_vm0, %v1259_v54, %v1263_v53  ;;  %v3922_v18 = vcombine.low %v544_v52, %v498_v35  ;;  %v1453_v16 = vrot.slane %v4892_v2, 1  ;;  %v5748_v36 = vld [vmem:[%s5579_s10 + $0x2c] ss:$0 sps:$4 sm:$0x11]  }
  0xaa   : > { %v1006_v46 = vrot.slane %v3840_v10, 1  ;;  %v489_v10 = vld [vmem:[%s5208_s15 + $0x78] sm:$0xe]  ;;  %v1285_v25 = vshll.u32 %v4892_v2, 16 }
  0xab   : > { %v1892_v3 = vrot.slane %v3922_v18, 1  ;;  %v1454_v53 = vsel %vm960_vm1, %v1452_v6, %v1453_v16  ;;  %v4899_v18 = vld [vmem:[%s5208_s15 + $0x8c] ss:$0 sps:$4 sm:$0x11]  }
  0xac   : > { %v1008_v40 = vsel %vm960_vm1, %v1006_v46, %v1007_v48  ;;  %v1282_v46 = vrot.slane %v1280_v4, 1  ;;  %v3883_v48 = vcombine.low %v489_v10, %v5537_v43  ;;  %v1292_v43 = vshll.u32 %v5552_v58, 16 }
  0xad   : > { %v1287_v11 = vrot.slane %v1285_v25, 1  ;;  %v1299_v10 = vrot.slane %v1297_v56, 1 }
  0xae   : > { %v1455_v17 = vrot.slane %v3883_v48, 1 }
  0xaf   : > { %2827 = vmatmul.mubr.bf16.gmra.mrb[68].mxu1 %v1002_v62  ;;  %2924 = vmatmul.mubr.bf16.gmra.mrb[68].mxu0 %v1240_v30  ;;  %v1639_v62 = vor.u32 %v1638_v44, %v1634_v20  ;;  %v4894_v30 = vld [vmem:[%s5579_s10 + $0x14] ss:$0 sps:$4 sm:$0x11]   ;;  %v1660_v20 = vshll.u32 %v5715_v8, 16  ;;  %v501_v44 = vld [vmem:[%s5579_s10 + $0x24] sm:$0xf] }
  0xb0   : > { %2834 = vmatprep.mubr.bf16.mxu1 %v5656_v50  ;;  %2931 = vmatprep.mubr.bf16.mxu0 %v1445_v51  ;;  %v1266_v51 = vshrl.u32 %v5500_v49, 16  ;;  %v1893_v59 = vrot.slane %v4894_v30, 1  ;;  %v1653_v1 = vshll.u32 %v4894_v30, 16  ;;  %v5742_v13 = vcombine.low %v501_v44, %v5731_v26  ;;  %v5775_v44 = vld [vmem:[%s5579_s10 + $0x40] sm:$0xf] }
  0xb1   : > { %v1644_v49 = vsel %vm703_vm0, %v1639_v62, %v1643_v7  ;;  %v1662_v37 = vrot.slane %v1660_v20, 1  ;;  %v490_v62 = vld [vmem:[%s5208_s15 + $0x84] sm:$0xe]  ;;  %v1283_v30 = vor.u32 %v1282_v46, %v1278_v23  ;;  %v505_v20 = vld [vmem:[%s5579_s10 + $0x3c] sm:$0xf]  ;;  %v1302_v23 = vshrl.u32 %v5586_v5, 16 }
  0xb2   : > { %v1271_v35 = vor.u32 %v1270_v60, %v1266_v51  ;;  %v1655_v12 = vrot.slane %v1653_v1, 1  ;;  %v1672_v52 = vshll.u32 %v5742_v13, 16  ;;  %v1290_v60 = vshrl.u32 %v5552_v58, 16 }
  0xb3   : > { %v1663_v51 = vor.u32 %v1662_v37, %v1658_v32  ;;  %v3884_v2 = vcombine.low %v490_v62, %v5572_v34  ;;  %v1677_v1 = vshll.u32 %v5748_v36, 16  ;;  %v1304_v34 = vshll.u32 %v5586_v5, 16 }
  0xb4   : > { %v1276_v54 = vsel %vm703_vm0, %v1271_v35, %v1275_v42  ;;  %v1459_v42 = vrot.slane %v4899_v18, 1  ;;  %v1309_v46 = vshll.u32 %v4899_v18, 16  ;;  %v5786_v5 = vcombine.low %v505_v20, %v5775_v44  ;;  %v5819_v20 = vld [vmem:[%s5579_s10 + $0x58] sm:$0xf] }
  0xb5   : > { %v1458_v35 = vrot.slane %v3884_v2, 1  ;;  %v1679_v16 = vrot.slane %v1677_v1, 1  ;;  %v1316_v62 = vshll.u32 %v5608_v33, 16  ;;  %v493_v1 = vld [vmem:[%s5208_s15 + $0xa8] sm:$0xe] }
  0xb7   : > { %2835 = vmatmul.mubr.bf16.gmra.mrb[72].mxu1 %v1005_v14  ;;  %2932 = vmatmul.mubr.bf16.gmra.mrb[72].mxu0 %v1252_v19  ;;  %v5723_v14 = vsel %vm960_vm1, %v1892_v3, %v1893_v59  ;;  %v1651_v19 = vor.u32 %v1650_v0, %v1646_v21  ;;  %v1288_v21 = vsel %vm703_vm0, %v1283_v30, %v1287_v11  ;;  %v1670_v59 = vshrl.u32 %v5742_v13, 16  ;;  %v491_v3 = vld [vmem:[%s5208_s15 + $0x90] sm:$0xe] }
  0xb8   : > { %2842 = vmatprep.mubr.bf16.mxu1 %v5687_v57  ;;  %2939 = vmatprep.mubr.bf16.mxu0 %v1448_v24  ;;  %v5726_v24 = vld [vmem:[%s5579_s10 + $0x20] ss:$0 sps:$4 sm:$0x11]   ;;  %v1674_v0 = vrot.slane %v1672_v52, 1  ;;  %v3885_v25 = vcombine.low %v491_v3, %v5597_v9  ;;  %v507_v52 = vld [vmem:[%s5579_s10 + $0x48] sm:$0xf] }
  0xb9   : > { %v1656_v7 = vsel %vm703_vm0, %v1651_v19, %v1655_v12  ;;  %v1665_v38 = vshll.u32 %v5726_v24, 16  ;;  %v5770_v19 = vld [vmem:[%s5579_s10 + $0x38] ss:$0 sps:$4 sm:$0x11]   ;;  %v1318_v2 = vrot.slane %v1316_v62, 1 }
  0xba   : > { %v1675_v6 = vor.u32 %v1674_v0, %v1670_v59  ;;  %v1689_v37 = vshll.u32 %v5770_v19, 16  ;;  %v1461_v30 = vrot.slane %v3885_v25, 1  ;;  %v4906_v59 = vld [vmem:[%s5208_s15 + $0xa4] ss:$0 sps:$4 sm:$0x11]  }
  0xbb   : > { %v1667_v31 = vrot.slane %v1665_v38, 1  ;;  %v492_v38 = vld [vmem:[%s5208_s15 + $0x9c] sm:$0xe] }
  0xbc   : > { %v1680_v32 = vsel %vm703_vm0, %v1675_v6, %v1679_v16 }
  0xbf   : > { %2843 = vmatmul.mubr.bf16.gmra.mrb[76].mxu1 %v1008_v40  ;;  %2940 = vmatmul.mubr.bf16.gmra.mrb[76].mxu0 %v1264_v61  ;;  %v1456_v40 = vrot.slane %v4895_v28, 1  ;;  %v503_v61 = vld [vmem:[%s5579_s10 + $0x30] sm:$0xf] }
  0xc0   : > { %2947 = vmatprep.mubr.bf16.mxu0 %v1451_v63  ;;  %3044 = vmatprep.mubr.bf16.mxu1 %v1644_v49  ;;  %v5753_v63 = vld [vmem:[%s5579_s10 + $0x34] sm:$0xf]  ;;  %v1668_v49 = vsel %vm703_vm0, %v1663_v51, %v1667_v31  ;;  %v1691_v51 = vrot.slane %v1689_v37, 1  ;;  %v1696_v31 = vshll.u32 %v5786_v5, 16 }
  0xc1   : > { %v1457_v29 = vsel %vm960_vm1, %v1455_v17, %v1456_v40  ;;  %v5764_v58 = vcombine.low %v503_v61, %v5753_v63  ;;  %v5792_v17 = vld [vmem:[%s5579_s10 + $0x44] ss:$0 sps:$4 sm:$0x11]   ;;  %v5797_v61 = vld [vmem:[%s5579_s10 + $0x4c] sm:$0xf] }
  0xc2   : > { %v1698_v0 = vrot.slane %v1696_v31, 1  ;;  %v511_v31 = vld [vmem:[%s5579_s10 + $0x60] sm:$0xf] }
  0xc3   : > { %v1684_v12 = vshll.u32 %v5764_v58, 16  ;;  %v1682_v28 = vshrl.u32 %v5764_v58, 16 }
  0xc7   : > { %2948 = vmatmul.mubr.bf16.gmra.mrb[80].mxu0 %v1276_v54  ;;  %3045 = vmatmul.mubr.bf16.vlgmr.msra.gmra.mrb[80].mxu1 %v5666_v45  ;;  %v1294_v45 = vrot.slane %v1292_v43, 1  ;;  %v1460_v54 = vsel %vm960_vm1, %v1458_v35, %v1459_v42  ;;  %v1311_v43 = vrot.slane %v1309_v46, 1  ;;  %v1465_v42 = vrot.slane %v4906_v59, 1 }
  0xc8   : > { %2955 = vmatprep.mubr.bf16.mxu0 %v1454_v53  ;;  %3052 = vmatprep.mubr.bf16.mxu1 %v1656_v7  ;;  %v4902_v53 = vld [vmem:[%s5208_s15 + $0x98] ss:$0 sps:$4 sm:$0x11]   ;;  %v1686_v7 = vrot.slane %v1684_v12, 1  ;;  %v509_v12 = vld [vmem:[%s5579_s10 + $0x54] sm:$0xf] }
  0xc9   : > { %v1295_v4 = vor.u32 %v1294_v45, %v1290_v60  ;;  %v1462_v11 = vrot.slane %v4902_v53, 1  ;;  %v1314_v45 = vshrl.u32 %v5608_v33, 16  ;;  %v1328_v33 = vshll.u32 %v5633_v47, 16 }
  0xca   : > { %v1687_v40 = vor.u32 %v1686_v7, %v1682_v28  ;;  %v1333_v46 = vshll.u32 %v4906_v59, 16 }
  0xcb   : > { %v1300_v48 = vsel %vm703_vm0, %v1295_v4, %v1299_v10  ;;  %v1463_v56 = vsel %vm960_vm1, %v1461_v30, %v1462_v11  ;;  %v5814_v4 = vld [vmem:[%s5579_s10 + $0x50] ss:$0 sps:$4 sm:$0x11]   ;;  %v494_v11 = vld [vmem:[%s5208_s15 + $0xb4] sm:$0xe] }
  0xcc   : > { %v1692_v18 = vsel %vm703_vm0, %v1687_v40, %v1691_v51  ;;  %v1713_v28 = vshll.u32 %v5814_v4, 16  ;;  %v5836_v40 = vld [vmem:[%s5579_s10 + $0x5c] ss:$0 sps:$4 sm:$0x11]  }
  0xce   : > { %v1715_v30 = vrot.slane %v1713_v28, 1 }
  0xcf   : > { %2956 = vmatmul.mubr.bf16.gmra.mrb[84].mxu0 %v1288_v21  ;;  %3053 = vmatmul.mubr.bf16.gmra.mrb[84].mxu1 %v5691_v27  ;;  %v1306_v27 = vrot.slane %v1304_v34, 1  ;;  %v1321_v21 = vshll.u32 %v4902_v53, 16  ;;  %v1319_v34 = vor.u32 %v1318_v2, %v1314_v45  ;;  %v3888_v45 = vcombine.low %v494_v11, %v5672_v15 }
  0xd0   : > { %2963 = vmatprep.mubr.bf16.mxu0 %v1457_v29  ;;  %3060 = vmatprep.mubr.bf16.mxu1 %v1668_v49  ;;  %v5804_v29 = vcombine.low %v507_v52, %v5797_v61  ;;  %v1694_v49 = vshrl.u32 %v5786_v5, 16  ;;  %v5841_v52 = vld [vmem:[%s5579_s10 + $0x64] sm:$0xf] }
  0xd1   : > { %v1307_v9 = vor.u32 %v1306_v27, %v1302_v23  ;;  %v1323_v3 = vrot.slane %v1321_v21, 1  ;;  %v3887_v23 = vcombine.low %v493_v1, %v5646_v22  ;;  %v1330_v27 = vrot.slane %v1328_v33, 1 }
  0xd2   : > { %v1708_v10 = vshll.u32 %v5804_v29, 16  ;;  %v1699_v6 = vor.u32 %v1698_v0, %v1694_v49  ;;  %v5830_v22 = vcombine.low %v509_v12, %v5819_v20  ;;  %v1725_v0 = vshll.u32 %v5836_v40, 16 }
  0xd3   : > { %v1312_v60 = vsel %vm703_vm0, %v1307_v9, %v1311_v43  ;;  %v1324_v25 = vsel %vm703_vm0, %v1319_v34, %v1323_v3  ;;  %v1467_v9 = vrot.slane %v3887_v23, 1  ;;  %v1352_v33 = vshll.u32 %v5687_v57, 16 }
  0xd4   : > { %v1710_v53 = vrot.slane %v1708_v10, 1  ;;  %v1720_v51 = vshll.u32 %v5830_v22, 16  ;;  %v1718_v59 = vshrl.u32 %v5830_v22, 16  ;;  %v1470_v1 = vrot.slane %v3888_v45, 1 }
  0xd5   : > { %v1727_v10 = vrot.slane %v1725_v0, 1 }
  0xd6   : > { %v1722_v49 = vrot.slane %v1720_v51, 1 }
  0xd7   : > { %2964 = vmatmul.mubr.bf16.gmra.mrb[88].mxu0 %v1300_v48  ;;  %3061 = vmatmul.mubr.bf16.gmra.mrb[88].mxu1 %v5715_v8  ;;  %v3886_v8 = vcombine.low %v492_v38, %v5624_v39  ;;  %v1701_v39 = vshll.u32 %v5792_v17, 16  ;;  %v4909_v48 = vld [vmem:[%s5208_s15 + $0xb0] ss:$0 sps:$4 sm:$0x11]   ;;  %v1335_v38 = vrot.slane %v1333_v46, 1 }
  0xd8   : > { %2971 = vmatprep.mubr.bf16.mxu0 %v1460_v54  ;;  %3068 = vmatprep.mubr.bf16.mxu1 %v1680_v32  ;;  %v1706_v54 = vshrl.u32 %v5804_v29, 16  ;;  %v1468_v43 = vrot.slane %v4909_v48, 1  ;;  %v1723_v3 = vor.u32 %v1722_v49, %v1718_v59 }
  0xd9   : > { %v1464_v35 = vrot.slane %v3886_v8, 1  ;;  %v1703_v16 = vrot.slane %v1701_v39, 1  ;;  %v1338_v8 = vshrl.u32 %v5656_v50, 16 }
  0xda   : > { %v1711_v62 = vor.u32 %v1710_v53, %v1706_v54  ;;  %v1469_v2 = vsel %vm960_vm1, %v1467_v9, %v1468_v43 }
  0xdb   : > { %v1466_v32 = vsel %vm960_vm1, %v1464_v35, %v1465_v42  ;;  %v1704_v7 = vsel %vm703_vm0, %v1699_v6, %v1703_v16  ;;  %v5857_v35 = vld [vmem:[%s5579_s10 + $0x68] ss:$0 sps:$4 sm:$0x11]   ;;  %v513_v6 = vld [vmem:[%s5579_s10 + $0x6c] sm:$0xf] }
  0xdc   : > { %v1716_v21 = vsel %vm703_vm0, %v1711_v62, %v1715_v30  ;;  %v5862_v16 = vld [vmem:[%s5579_s10 + $0x70] sm:$0xf]  ;;  %v1737_v54 = vshll.u32 %v5857_v35, 16  ;;  %v515_v62 = vld [vmem:[%s5579_s10 + $0x78] sm:$0xf] }
  0xdd   : > { %v5871_v53 = vcombine.low %v513_v6, %v5862_v16  ;;  %v5881_v30 = vld [vmem:[%s5579_s10 + $0x7c] sm:$0xf] }
  0xde   : > { %v5893_v49 = vcombine.low %v515_v62, %v5881_v30 }
  0xdf   : > { %2972 = vmatmul.mubr.bf16.gmra.mrb[92].mxu0 %v1312_v60  ;;  %3069 = vmatmul.mubr.bf16.gmra.mrb[92].mxu1 %v5742_v13  ;;  %v1326_v13 = vshrl.u32 %v5633_v47, 16  ;;  %v1340_v47 = vshll.u32 %v5656_v50, 16  ;;  %v1345_v60 = vshll.u32 %v4909_v48, 16  ;;  %v5852_v50 = vcombine.low %v511_v31, %v5841_v52 }
  0xe0   : > { %2979 = vmatprep.mubr.bf16.mxu0 %v1463_v56  ;;  %3076 = vmatprep.mubr.bf16.mxu1 %v1692_v18  ;;  %v4913_v18 = vld [vmem:[%s5208_s15 + $0xbc] ss:$0 sps:$4 sm:$0x11]   ;;  %v1756_v6 = vshll.u32 %v5893_v49, 16 }
  0xe1   : > { %v1331_v37 = vor.u32 %v1330_v27, %v1326_v13  ;;  %v1347_v39 = vrot.slane %v1345_v60, 1  ;;  %v1471_v34 = vrot.slane %v4913_v18, 1  ;;  %v1732_v42 = vshll.u32 %v5852_v50, 16 }
  0xe2   : > { %v1354_v13 = vrot.slane %v1352_v33, 1  ;;  %v1357_v27 = vshll.u32 %v4913_v18, 16  ;;  %v1730_v46 = vshrl.u32 %v5852_v50, 16  ;;  %v1896_v33 = vrot.slane %v5726_v24, 1 }
  0xe3   : > { %v1336_v56 = vsel %vm703_vm0, %v1331_v37, %v1335_v38  ;;  %v1472_v23 = vsel %vm960_vm1, %v1470_v1, %v1471_v34  ;;  %v1734_v48 = vrot.slane %v1732_v42, 1  ;;  %v5876_v37 = vld [vmem:[%s5579_s10 + $0x74] ss:$0 sps:$4 sm:$0x11]   ;;  %v1744_v38 = vshll.u32 %v5871_v53, 16 }
  0xe4   : > { %v1359_v28 = vrot.slane %v1357_v27, 1  ;;  %v546_v1 = vld [vmem:[%s5579_s10 + $0x24] sm:$0xe]  ;;  %v547_v34 = vld [vmem:[%s5579_s10 + $0x30] sm:$0xe] }
  0xe5   : > { %v1746_v59 = vrot.slane %v1744_v38, 1  ;;  %v5905_v42 = vld [vmem:[%s5579_s10 + $0x80] ss:$0 sps:$4 sm:$0x11]   ;;  %v1758_v38 = vrot.slane %v1756_v6, 1 }
  0xe7   : > { %2980 = vmatmul.mubr.bf16.gmra.mrb[96].mxu0 %v1324_v25  ;;  %3077 = vmatmul.mubr.bf16.gmra.mrb[96].mxu1 %v5764_v58  ;;  %v1342_v58 = vrot.slane %v1340_v47, 1  ;;  %v1728_v25 = vsel %vm703_vm0, %v1723_v3, %v1727_v10  ;;  %v1739_v47 = vrot.slane %v1737_v54, 1 }
  0xe8   : > { %2987 = vmatprep.mubr.bf16.mxu0 %v1466_v32  ;;  %3084 = vmatprep.mubr.bf16.mxu1 %v1704_v7  ;;  %v545_v32 = vld [vmem:[%s5579_s10 + $0x18] sm:$0xe]  ;;  %v1735_v7 = vor.u32 %v1734_v48, %v1730_v46  ;;  %v3924_v46 = vcombine.low %v546_v1, %v5731_v26 }
  0xe9   : > { %v1343_v15 = vor.u32 %v1342_v58, %v1338_v8 }
  0xea   : > { %v1740_v18 = vsel %vm703_vm0, %v1735_v7, %v1739_v47 }
  0xeb   : > { %v1348_v12 = vsel %vm703_vm0, %v1343_v15, %v1347_v39 }
  0xef   : > { %2988 = vmatmul.mubr.bf16.gmra.mrb[100].mxu0 %v1336_v56  ;;  %3085 = vmatmul.mubr.bf16.gmra.mrb[100].mxu1 %v5786_v5  ;;  %v1350_v5 = vshrl.u32 %v5687_v57, 16  ;;  %v1742_v56 = vshrl.u32 %v5871_v53, 16 }
  0xf0   : > { %2995 = vmatprep.mubr.bf16.mxu0 %v1469_v2  ;;  %3092 = vmatprep.mubr.bf16.mxu1 %v1716_v21 }
  0xf1   : > { %v1355_v57 = vor.u32 %v1354_v13, %v1350_v5  ;;  %v1747_v3 = vor.u32 %v1746_v59, %v1742_v56  ;;  %v5910_v13 = vld [vmem:[%s5579_s10 + $0x88] sm:$0xf]  ;;  %v5941_v59 = vld [vmem:[%s5579_s10 + $0x94] sm:$0xf] }
  0xf3   : > { %v1360_v45 = vsel %vm703_vm0, %v1355_v57, %v1359_v28  ;;  %v1754_v57 = vshrl.u32 %v5893_v49, 16  ;;  %v3925_v28 = vcombine.low %v547_v34, %v5753_v63  ;;  %v1898_v63 = vrot.slane %v3924_v46, 1 }
  0xf7   : > { %2996 = vmatmul.mubr.bf16.gmra.mrb[104].mxu0 %v1348_v12  ;;  %3093 = vmatmul.mubr.bf16.gmra.mrb[104].mxu1 %v5804_v29  ;;  %v3923_v29 = vcombine.low %v545_v32, %v5705_v41  ;;  %v1749_v41 = vshll.u32 %v5876_v37, 16 }
  0xf8   : > { %3003 = vmatprep.mubr.bf16.mxu0 %v1472_v23  ;;  %3100 = vmatprep.mubr.bf16.mxu1 %v1728_v25  ;;  %v517_v23 = vld [vmem:[%s5579_s10 + $0x84] sm:$0xf] }
  0xf9   : > { %v1895_v39 = vrot.slane %v3923_v29, 1  ;;  %v1751_v10 = vrot.slane %v1749_v41, 1  ;;  %v5923_v26 = vcombine.low %v517_v23, %v5910_v13  ;;  %v1902_v29 = vrot.slane %v5770_v19, 1 }
  0xfa   : > { %v4187_v9 = vpop.f32.mrb[0].mxu0  ;;  %v4259_v43 = vpop.f32.mrb[0].mxu1 }
  0xfb   : > { %v4188_v11 = vpop.f32.mrb[1].mxu0  ;;  %v4260_v51 = vpop.f32.mrb[1].mxu1  ;;  %v1897_v24 = vsel %vm960_vm1, %v1895_v39, %v1896_v33  ;;  %v1752_v47 = vsel %vm703_vm0, %v1747_v3, %v1751_v10 }
  0xfc   : > { %v5884_v31 = vadd.f32 %v4188_v11, %v4187_v9  ;;  %v5886_v8 = vadd.f32 %v4260_v51, %v4259_v43  ;;  %v4190_v58 = vpop.f32.mrb[2].mxu0  ;;  %v4262_v60 = vpop.f32.mrb[2].mxu1  ;;  %v1761_v9 = vshll.u32 %v5905_v42, 16  ;;  %v1899_v11 = vrot.slane %v5748_v36, 1 }
  0xfd   : > { %v4191_v2 = vpop.f32.mrb[3].mxu0  ;;  %v4263_v21 = vpop.f32.mrb[3].mxu1  ;;  %v1901_v51 = vrot.slane %v3925_v28, 1  ;;  %v1908_v28 = vrot.slane %v5814_v4, 1 }
  0xfe   : > { %v5895_v0 = vadd.f32 %v4191_v2, %v4190_v58  ;;  %v5897_v15 = vadd.f32 %v4263_v21, %v4262_v60  ;;  %v548_v58 = vld [vmem:[%s5579_s10 + $0x3c] sm:$0xe]  ;;  %v549_v60 = vld [vmem:[%s5579_s10 + $0x48] sm:$0xe]  ;;  %v1763_v56 = vrot.slane %v1761_v9, 1  ;;  %v1900_v39 = vsel %vm960_vm1, %v1898_v63, %v1899_v11 }
  0xff   : > { %3004 = vmatmul.mubr.bf16.gmra.mrb[108].mxu0 %v1360_v45  ;;  %3101 = vmatmul.mubr.bf16.gmra.mrb[108].mxu1 %v5830_v22  ;;  %v1759_v45 = vor.u32 %v1758_v38, %v1754_v57  ;;  %v5936_v2 = vld [vmem:[%s5579_s10 + $0x8c] ss:$0 sps:$4 sm:$0x11]   ;;  %v3926_v33 = vcombine.low %v548_v58, %v5775_v44  ;;  %v3927_v19 = vcombine.low %v549_v60, %v5797_v61  ;;  %v5967_v9 = vld [vmem:[%s5579_s10 + $0x98] ss:$0 sps:$4 sm:$0x11]  }
 0x100   : > { %3108 = vmatprep.mubr.bf16.mxu1 %v1740_v18  ;;  %4659 = vmatprep.mubr.bf16.mxu0 %v5718_v55  ;;  %v1903_v6 = vsel %vm960_vm1, %v1901_v51, %v1902_v29  ;;  %v1773_v44 = vshll.u32 %v5936_v2, 16  ;;  %v521_v51 = vld [vmem:[%s5579_s10 + $0x9c] sm:$0xf]  ;;  %v5972_v29 = vld [vmem:[%s5579_s10 + $0xa0] sm:$0xf] }
 0x101   : > { %v1907_v57 = vrot.slane %v3927_v19, 1 }
 0x102   : > { %v4193_v12 = vpop.f32.mrb[4].mxu0  ;;  %v4265_v5 = vpop.f32.mrb[4].mxu1  ;;  %v1775_v38 = vrot.slane %v1773_v44, 1 }
 0x103   : > { %v4194_v22 = vpop.f32.mrb[5].mxu0  ;;  %v4266_v27 = vpop.f32.mrb[5].mxu1  ;;  %v1909_v4 = vsel %vm960_vm1, %v1907_v57, %v1908_v28 }
 0x104   : > { %v5914_v55 = vadd.f32 %v4194_v22, %v4193_v12  ;;  %v5916_v25 = vadd.f32 %v4266_v27, %v4265_v5  ;;  %v4196_v48 = vpop.f32.mrb[6].mxu0  ;;  %v4268_v54 = vpop.f32.mrb[6].mxu1  ;;  %v1766_v12 = vshrl.u32 %v5923_v26, 16  ;;  %v1764_v22 = vsel %vm703_vm0, %v1759_v45, %v1763_v56 }
 0x105   : > { %v4197_v32 = vpop.f32.mrb[7].mxu0  ;;  %v4269_v7 = vpop.f32.mrb[7].mxu1 }
 0x106   : > { %v5925_v43 = vadd.f32 %v4197_v32, %v4196_v48  ;;  %v5927_v62 = vadd.f32 %v4269_v7, %v4268_v54  ;;  %v1904_v48 = vrot.slane %v3926_v33, 1  ;;  %v1905_v54 = vrot.slane %v5792_v17, 1  ;;  %v550_v32 = vld [vmem:[%s5579_s10 + $0x54] sm:$0xe]  ;;  %v551_v7 = vld [vmem:[%s5579_s10 + $0x60] sm:$0xe] }
 0x107   : > { %3109 = vmatmul.mubr.bf16.gmra.mrb[112].mxu1 %v5852_v50  ;;  %4660 = vmatmul.mubr.bf16.vlgmr.msra.gmra.mrb[112].mxu0 %v5723_v14  ;;  %v1768_v50 = vshll.u32 %v5923_v26, 16  ;;  %v519_v14 = vld [vmem:[%s5579_s10 + $0x90] sm:$0xf]  ;;  %v3928_v45 = vcombine.low %v550_v32, %v5819_v20  ;;  %v5986_v20 = vcombine.low %v521_v51, %v5972_v29  ;;  %v523_v32 = vld [vmem:[%s5579_s10 + $0xa8] sm:$0xf] }
 0x108   : > { %3116 = vmatprep.mubr.bf16.mxu1 %v1752_v47  ;;  %4663 = vmatprep.mubr.bf16.mxu0 %v1897_v24  ;;  %v5955_v61 = vcombine.low %v519_v14, %v5941_v59  ;;  %v1906_v60 = vsel %vm960_vm1, %v1904_v48, %v1905_v54  ;;  %v5998_v54 = vld [vmem:[%s5579_s10 + $0xa4] ss:$0 sps:$4 sm:$0x11]  }
 0x109   : > { %v1770_v27 = vrot.slane %v1768_v50, 1  ;;  %v1792_v57 = vshll.u32 %v5986_v20, 16 }
 0x10a   : > { %v4199_v21 = vpop.f32.mrb[8].mxu0  ;;  %v4271_v18 = vpop.f32.mrb[8].mxu1  ;;  %v1780_v63 = vshll.u32 %v5955_v61, 16  ;;  %v1778_v14 = vshrl.u32 %v5955_v61, 16 }
 0x10b   : > { %v4200_v41 = vpop.f32.mrb[9].mxu0  ;;  %v4272_v36 = vpop.f32.mrb[9].mxu1  ;;  %v1771_v47 = vor.u32 %v1770_v27, %v1766_v12  ;;  %v1911_v12 = vrot.slane %v5836_v40, 1  ;;  %v553_v27 = vld [vmem:[%s5579_s10 + $0x78] sm:$0xe] }
 0x10c   : > { %v5946_v1 = vadd.f32 %v4200_v41, %v4199_v21  ;;  %v5948_v34 = vadd.f32 %v4272_v36, %v4271_v18  ;;  %v4202_v3 = vpop.f32.mrb[10].mxu0  ;;  %v4274_v10 = vpop.f32.mrb[10].mxu1  ;;  %v3929_v41 = vcombine.low %v551_v7, %v5841_v52  ;;  %v1782_v19 = vrot.slane %v1780_v63, 1  ;;  %v6003_v7 = vld [vmem:[%s5579_s10 + $0xac] sm:$0xf] }
 0x10d   : > { %v4203_v5 = vpop.f32.mrb[11].mxu0  ;;  %v4275_v23 = vpop.f32.mrb[11].mxu1  ;;  %v1776_v33 = vsel %vm703_vm0, %v1771_v47, %v1775_v38  ;;  %v1910_v52 = vrot.slane %v3928_v45, 1 }
 0x10e   : > { %v5957_v24 = vadd.f32 %v4203_v5, %v4202_v3  ;;  %v5959_v46 = vadd.f32 %v4275_v23, %v4274_v10  ;;  %v1785_v3 = vshll.u32 %v5967_v9, 16  ;;  %v1913_v5 = vrot.slane %v3929_v41, 1 }
 0x10f   : > { %3117 = vmatmul.mubr.bf16.gmra.mrb[116].mxu1 %v5871_v53  ;;  %4664 = vmatmul.mubr.bf16.gmra.mrb[116].mxu0 %v1900_v39  ;;  %v1914_v23 = vrot.slane %v5857_v35, 1  ;;  %v1783_v44 = vor.u32 %v1782_v19, %v1778_v14  ;;  %v1912_v38 = vsel %vm960_vm1, %v1910_v52, %v1911_v12  ;;  %v3931_v35 = vcombine.low %v553_v27, %v5881_v30  ;;  %v555_v12 = vld [vmem:[%s5579_s10 + $0x90] sm:$0xe] }
 0x110   : > { %3124 = vmatprep.mubr.bf16.mxu1 %v1764_v22  ;;  %4667 = vmatprep.mubr.bf16.mxu0 %v1903_v6  ;;  %v552_v22 = vld [vmem:[%s5579_s10 + $0x6c] sm:$0xe]  ;;  %v1787_v48 = vrot.slane %v1785_v3, 1  ;;  %v6015_v30 = vcombine.low %v523_v32, %v6003_v7  ;;  %v1920_v3 = vrot.slane %v5905_v42, 1 }
 0x111   : > { %v3930_v63 = vcombine.low %v552_v22, %v5862_v16  ;;  %v1797_v16 = vshll.u32 %v5998_v54, 16  ;;  %v1919_v19 = vrot.slane %v3931_v35, 1  ;;  %v6031_v22 = vld [vmem:[%s5579_s10 + $0xb0] ss:$0 sps:$4 sm:$0x11]   ;;  %v3933_v35 = vcombine.low %v555_v12, %v5941_v59 }
 0x112   : > { %v4205_v53 = vpop.f32.mrb[12].mxu0  ;;  %v4277_v11 = vpop.f32.mrb[12].mxu1 }
 0x113   : > { %v4206_v58 = vpop.f32.mrb[13].mxu0  ;;  %v4278_v17 = vpop.f32.mrb[13].mxu1 }
 0x114   : > { %v5977_v56 = vadd.f32 %v4206_v58, %v4205_v53  ;;  %v5979_v50 = vadd.f32 %v4278_v17, %v4277_v11  ;;  %v4208_v21 = vpop.f32.mrb[14].mxu0  ;;  %v4280_v18 = vpop.f32.mrb[14].mxu1  ;;  %v1915_v17 = vsel %vm960_vm1, %v1913_v5, %v1914_v23  ;;  %v1799_v23 = vrot.slane %v1797_v16, 1 }
 0x115   : > { %v4209_v36 = vpop.f32.mrb[15].mxu0  ;;  %v4281_v39 = vpop.f32.mrb[15].mxu1 }
 0x116   : > { %v5988_v10 = vadd.f32 %v4209_v36, %v4208_v21  ;;  %v5990_v6 = vadd.f32 %v4281_v39, %v4280_v18  ;;  %v1788_v21 = vsel %vm703_vm0, %v1783_v44, %v1787_v48  ;;  %v1794_v18 = vrot.slane %v1792_v57, 1  ;;  %v525_v48 = vld [vmem:[%s5579_s10 + $0xb4] sm:$0xf] }
 0x117   : > { %3125 = vmatmul.mubr.bf16.gmra.mrb[120].mxu1 %v5893_v49  ;;  %4668 = vmatmul.mubr.bf16.gmra.mrb[120].mxu0 %v1906_v60  ;;  %v1790_v60 = vshrl.u32 %v5986_v20, 16  ;;  %v1916_v39 = vrot.slane %v3930_v63, 1  ;;  %v1802_v63 = vshrl.u32 %v6015_v30, 16 }
 0x118   : > { %3132 = vmatprep.mubr.bf16.mxu1 %v1776_v33  ;;  %4671 = vmatprep.mubr.bf16.mxu0 %v1909_v4  ;;  %v1917_v33 = vrot.slane %v5876_v37, 1  ;;  %v6036_v37 = vld [vmem:[%s5579_s10 + $0xb8] sm:$0xf] }
 0x119   : > { %v1795_v5 = vor.u32 %v1794_v18, %v1790_v60  ;;  %v1809_v60 = vshll.u32 %v6031_v22, 16  ;;  %v1923_v18 = vrot.slane %v5936_v2, 1 }
 0x11a   : > { %v4211_v49 = vpop.f32.mrb[16].mxu0  ;;  %v4299_v28 = vpop.f32.mrb[16].mxu1 }
 0x11b   : > { %v4212_v47 = vpop.f32.mrb[17].mxu0  ;;  %v4300_v40 = vpop.f32.mrb[17].mxu1 }
 0x11c   : > { %v6008_v53 = vadd.f32 %v4212_v47, %v4211_v49  ;;  %v4301_v11 = vadd.f32 %v4300_v40, %v4299_v28  ;;  %v4214_v51 = vpop.f32.mrb[18].mxu0  ;;  %v4302_v58 = vpop.f32.mrb[18].mxu1  ;;  %v1921_v49 = vsel %vm960_vm1, %v1919_v19, %v1920_v3  ;;  %v1811_v3 = vrot.slane %v1809_v60, 1 }
 0x11d   : > { %v4215_v4 = vpop.f32.mrb[19].mxu0  ;;  %v4303_v45 = vpop.f32.mrb[19].mxu1 }
 0x11e   : > { %v6018_v14 = vadd.f32 %v4301_v11, %v5884_v31  ;;  %v6020_v41 = vadd.f32 %v4215_v4, %v4214_v51  ;;  %v4304_v36 = vadd.f32 %v4303_v45, %v4302_v58  ;;  %v554_v31 = vld [vmem:[%s5579_s10 + $0x84] sm:$0xe]  ;;  %v1800_v58 = vsel %vm703_vm0, %v1795_v5, %v1799_v23 }
 0x11f   : > { %3133 = vmatmul.mubr.bf16.gmra.mrb[124].mxu1 %v5923_v26  ;;  %4672 = vmatmul.mubr.bf16.gmra.mrb[124].mxu0 %v1912_v38  ;;  %v1804_v26 = vshll.u32 %v6015_v30, 16  ;;  %v3932_v28 = vcombine.low %v554_v31, %v5910_v13  ;;  %v6048_v13 = vcombine.low %v525_v48, %v6036_v37  ;;  %v6064_v31 = vld [vmem:[%s5579_s10 + $0xbc] ss:$0 sps:$4 sm:$0x11]  }
 0x120   : > { %v6026_v52 = vadd.f32 %v4304_v36, %v5895_v0  ;;  %3140 = vmatprep.mubr.bf16.mxu1 %v1788_v21  ;;  %4675 = vmatprep.mubr.bf16.mxu0 %v1915_v17  ;;  %v1918_v0 = vsel %vm960_vm1, %v1916_v39, %v1917_v33  ;;  %v1925_v36 = vrot.slane %v3933_v35, 1  ;;  %v1926_v39 = vrot.slane %v5967_v9, 1  ;;  %v557_v33 = vld [vmem:[%s5579_s10 + $0xa8] sm:$0xe] }
 0x121   : > { %v1806_v17 = vrot.slane %v1804_v26, 1  ;;  %v1922_v59 = vrot.slane %v3932_v28, 1 }
 0x122   : > { %v4217_v27 = vpop.f32.mrb[20].mxu0  ;;  %v4305_v44 = vpop.f32.mrb[20].mxu1 }
 0x123   : > { %v4218_v57 = vpop.f32.mrb[21].mxu0  ;;  %v4306_v42 = vpop.f32.mrb[21].mxu1  ;;  %v1807_v19 = vor.u32 %v1806_v17, %v1802_v63 }
 0x124   : > { %v6041_v32 = vadd.f32 %v4218_v57, %v4217_v27  ;;  %v4307_v47 = vadd.f32 %v4306_v42, %v4305_v44  ;;  %v4220_v40 = vpop.f32.mrb[22].mxu0  ;;  %v4308_v38 = vpop.f32.mrb[22].mxu1  ;;  %v1927_v57 = vsel %vm960_vm1, %v1925_v36, %v1926_v39  ;;  %v3935_v42 = vcombine.low %v557_v33, %v6003_v7 }
 0x125   : > { %v4221_v11 = vpop.f32.mrb[23].mxu0  ;;  %v4309_v51 = vpop.f32.mrb[23].mxu1  ;;  %v1812_v28 = vsel %vm703_vm0, %v1807_v19, %v1811_v3 }
 0x126   : > { %v6051_v4 = vadd.f32 %v4307_v47, %v5914_v55  ;;  %v6053_v45 = vadd.f32 %v4221_v11, %v4220_v40  ;;  %v4310_v21 = vadd.f32 %v4309_v51, %v4308_v38  ;;  %v556_v55 = vld [vmem:[%s5579_s10 + $0x9c] sm:$0xe]  ;;  %v1814_v47 = vshrl.u32 %v6048_v13, 16 }
 0x127   : > { %3141 = vmatmul.mubr.bf16.gmra.mrb[128].mxu1 %v5955_v61  ;;  %4676 = vmatmul.mubr.bf16.gmra.mrb[128].mxu0 %v1918_v0  ;;  %v1816_v61 = vshll.u32 %v6048_v13, 16  ;;  %v3934_v26 = vcombine.low %v556_v55, %v5972_v29  ;;  %v1821_v38 = vshll.u32 %v6064_v31, 16  ;;  %v1929_v51 = vrot.slane %v5998_v54, 1 }
 0x128   : > { %v6058_v16 = vadd.f32 %v4310_v21, %v5925_v43  ;;  %3148 = vmatprep.mubr.bf16.mxu1 %v1800_v58  ;;  %4679 = vmatprep.mubr.bf16.mxu0 %v1921_v49  ;;  %v1924_v43 = vsel %vm960_vm1, %v1922_v59, %v1923_v18  ;;  %v1931_v60 = vrot.slane %v3935_v42, 1  ;;  %v558_v21 = vld [vmem:[%s5579_s10 + $0xb4] sm:$0xe] }
 0x129   : > { %v1818_v40 = vrot.slane %v1816_v61, 1  ;;  %v1928_v11 = vrot.slane %v3934_v26, 1  ;;  %v1823_v17 = vrot.slane %v1821_v38, 1  ;;  %v3936_v3 = vcombine.low %v558_v21, %v6036_v37 }
 0x12a   : > { %v4223_v12 = vpop.f32.mrb[24].mxu0  ;;  %v4311_v5 = vpop.f32.mrb[24].mxu1  ;;  %v1935_v26 = vrot.slane %v6064_v31, 1 }
 0x12b   : > { %v4224_v23 = vpop.f32.mrb[25].mxu0  ;;  %v4312_v2 = vpop.f32.mrb[25].mxu1  ;;  %v1819_v58 = vor.u32 %v1818_v40, %v1814_v47  ;;  %v1930_v19 = vsel %vm960_vm1, %v1928_v11, %v1929_v51  ;;  %v1934_v37 = vrot.slane %v3936_v3, 1 }
 0x12c   : > { %v6069_v27 = vadd.f32 %v4224_v23, %v4223_v12  ;;  %v4313_v44 = vadd.f32 %v4312_v2, %v4311_v5  ;;  %v4226_v9 = vpop.f32.mrb[26].mxu0  ;;  %v4314_v48 = vpop.f32.mrb[26].mxu1 }
 0x12d   : > { %v4227_v0 = vpop.f32.mrb[27].mxu0  ;;  %v4315_v49 = vpop.f32.mrb[27].mxu1  ;;  %v1824_v12 = vsel %vm703_vm0, %v1819_v58, %v1823_v17 }
 0x12e   : > { %v6077_v29 = vadd.f32 %v4313_v44, %v5946_v1  ;;  %v6079_v63 = vadd.f32 %v4227_v0, %v4226_v9  ;;  %v4316_v35 = vadd.f32 %v4315_v49, %v4314_v48  ;;  %v1932_v1 = vrot.slane %v6031_v22, 1 }
 0x12f   : > { %3149 = vmatmul.mubr.bf16.gmra.mrb[132].mxu1 %v5986_v20  ;;  %4680 = vmatmul.mubr.bf16.gmra.mrb[132].mxu0 %v1924_v43 }
 0x130   : > { %v6083_v7 = vadd.f32 %v4316_v35, %v5957_v24  ;;  %3156 = vmatprep.mubr.bf16.mxu1 %v1812_v28  ;;  %4683 = vmatprep.mubr.bf16.mxu0 %v1927_v57  ;;  %v1933_v22 = vsel %vm960_vm1, %v1931_v60, %v1932_v1 }
 0x132   : > { %v4229_v59 = vpop.f32.mrb[28].mxu0  ;;  %v4317_v18 = vpop.f32.mrb[28].mxu1 }
 0x133   : > { %v4230_v36 = vpop.f32.mrb[29].mxu0  ;;  %v4318_v39 = vpop.f32.mrb[29].mxu1 }
 0x134   : > { %v6088_v20 = vadd.f32 %v4230_v36, %v4229_v59  ;;  %v4319_v55 = vadd.f32 %v4318_v39, %v4317_v18  ;;  %v4232_v24 = vpop.f32.mrb[30].mxu0  ;;  %v4320_v33 = vpop.f32.mrb[30].mxu1 }
 0x135   : > { %v4233_v54 = vpop.f32.mrb[31].mxu0  ;;  %v4321_v61 = vpop.f32.mrb[31].mxu1 }
 0x136   : > { %v6095_v5 = vadd.f32 %v4319_v55, %v5977_v56  ;;  %v6097_v23 = vadd.f32 %v4233_v54, %v4232_v24  ;;  %v4322_v2 = vadd.f32 %v4321_v61, %v4320_v33 }
 0x137   : > { %3157 = vmatmul.mubr.bf16.gmra.mrb[136].mxu1 %v6015_v30  ;;  %4684 = vmatmul.mubr.bf16.gmra.mrb[136].mxu0 %v1930_v19  ;;  %v1936_v30 = vsel %vm960_vm1, %v1934_v37, %v1935_v26 }
 0x138   : > { %v6101_v43 = vadd.f32 %v4322_v2, %v5988_v10  ;;  %3164 = vmatprep.mubr.bf16.mxu1 %v1824_v12  ;;  %4687 = vmatprep.mubr.bf16.mxu0 %v1933_v22 }
 0x13a   : > { %v4235_v44 = vpop.f32.mrb[32].mxu0  ;;  %v4323_v9 = vpop.f32.mrb[32].mxu1 }
 0x13b   : > { %v4236_v48 = vpop.f32.mrb[33].mxu0  ;;  %v4324_v57 = vpop.f32.mrb[33].mxu1 }
 0x13c   : > { %v6104_v56 = vadd.f32 %v4236_v48, %v4235_v44  ;;  %v4325_v42 = vadd.f32 %v4324_v57, %v4323_v9  ;;  %v4238_v0 = vpop.f32.mrb[34].mxu0  ;;  %v4326_v49 = vpop.f32.mrb[34].mxu1 }
 0x13d   : > { %v4239_v28 = vpop.f32.mrb[35].mxu0  ;;  %v4327_v47 = vpop.f32.mrb[35].mxu1 }
 0x13e   : > { %v6108_v10 = vadd.f32 %v4325_v42, %v6008_v53  ;;  %v4240_v40 = vadd.f32 %v4239_v28, %v4238_v0  ;;  %v4328_v38 = vadd.f32 %v4327_v47, %v4326_v49 }
 0x13f   : > { %3165 = vmatmul.mubr.bf16.gmra.mrb[140].mxu1 %v6048_v13  ;;  %4688 = vmatmul.mubr.bf16.gmra.mrb[140].mxu0 %v1936_v30 }
 0x140   : > { %v6112_v31 = vadd.f32 %v4328_v38, %v6020_v41 }
 0x142   : > { %v4241_v35 = vpop.f32.mrb[36].mxu0  ;;  %v4329_v11 = vpop.f32.mrb[36].mxu1 }
 0x143   : > { %v4242_v51 = vpop.f32.mrb[37].mxu0  ;;  %v4330_v58 = vpop.f32.mrb[37].mxu1 }
 0x144   : > { %v6114_v17 = vadd.f32 %v4242_v51, %v4241_v35  ;;  %v4331_v60 = vadd.f32 %v4330_v58, %v4329_v11  ;;  %v4244_v1 = vpop.f32.mrb[38].mxu0  ;;  %v4332_v21 = vpop.f32.mrb[38].mxu1 }
 0x145   : > { %v4245_v59 = vpop.f32.mrb[39].mxu0  ;;  %v4333_v53 = vpop.f32.mrb[39].mxu1 }
 0x146   : > { %v6117_v18 = vadd.f32 %v4331_v60, %v6041_v32  ;;  %v4246_v36 = vadd.f32 %v4245_v59, %v4244_v1  ;;  %v4334_v13 = vadd.f32 %v4333_v53, %v4332_v21 }
 0x148   : > { %v6120_v39 = vadd.f32 %v4334_v13, %v6053_v45 }
 0x14a   : > { %v4247_v41 = vpop.f32.mrb[40].mxu0  ;;  %v4335_v55 = vpop.f32.mrb[40].mxu1 }
 0x14b   : > { %v4248_v24 = vpop.f32.mrb[41].mxu0  ;;  %v4336_v33 = vpop.f32.mrb[41].mxu1 }
 0x14c   : > { %v6122_v19 = vadd.f32 %v4248_v24, %v4247_v41  ;;  %v4337_v3 = vadd.f32 %v4336_v33, %v4335_v55  ;;  %v4250_v54 = vpop.f32.mrb[42].mxu0  ;;  %v4338_v61 = vpop.f32.mrb[42].mxu1 }
 0x14d   : > { %v4251_v12 = vpop.f32.mrb[43].mxu0  ;;  %v4339_v22 = vpop.f32.mrb[43].mxu1 }
 0x14e   : > { %v6125_v2 = vadd.f32 %v4337_v3, %v6069_v27  ;;  %v6127_v32 = vadd.f32 %v4251_v12, %v4250_v54  ;;  %v4340_v37 = vadd.f32 %v4339_v22, %v4338_v61 }
 0x150   : > { %v6130_v45 = vadd.f32 %v4340_v37, %v6079_v63 }
 0x152   : > { %v4253_v26 = vpop.f32.mrb[44].mxu0  ;;  %v4341_v44 = vpop.f32.mrb[44].mxu1 }
 0x153   : > { %v4254_v9 = vpop.f32.mrb[45].mxu0  ;;  %v4342_v48 = vpop.f32.mrb[45].mxu1 }
 0x154   : > { %v6132_v57 = vadd.f32 %v4254_v9, %v4253_v26  ;;  %v4343_v42 = vadd.f32 %v4342_v48, %v4341_v44  ;;  %v4256_v0 = vpop.f32.mrb[46].mxu0  ;;  %v4344_v49 = vpop.f32.mrb[46].mxu1 }
 0x155   : > { %v4257_v30 = vpop.f32.mrb[47].mxu0  ;;  %v4345_v28 = vpop.f32.mrb[47].mxu1 }
 0x156   : > { %v6135_v27 = vadd.f32 %v4343_v42, %v6088_v20  ;;  %v6137_v47 = vadd.f32 %v4257_v30, %v4256_v0  ;;  %v4346_v38 = vadd.f32 %v4345_v28, %v4344_v49 }
 0x158   : > { %v6140_v63 = vadd.f32 %v4346_v38, %v6097_v23 }
 0x15a   : > { %v4347_v35 = vpop.f32.mrb[48].mxu1  ;;  %v4411_v11 = vpop.f32.mrb[48].mxu0 }
 0x15b   : > { %v4348_v51 = vpop.f32.mrb[49].mxu1  ;;  %v4412_v58 = vpop.f32.mrb[49].mxu0 }
 0x15c   : > { %v4349_v60 = vadd.f32 %v4348_v51, %v4347_v35  ;;  %v4413_v1 = vadd.f32 %v4412_v58, %v4411_v11  ;;  %v4350_v21 = vpop.f32.mrb[50].mxu1  ;;  %v4414_v59 = vpop.f32.mrb[50].mxu0 }
 0x15d   : > { %v4351_v53 = vpop.f32.mrb[51].mxu1  ;;  %v4415_v13 = vpop.f32.mrb[51].mxu0 }
 0x15e   : > { %v6143_v41 = vadd.f32 %v4349_v60, %v6104_v56  ;;  %v6146_v20 = vadd.f32 %v4413_v1, %v6018_v14  ;;  %v4352_v55 = vadd.f32 %v4351_v53, %v4350_v21  ;;  %v4416_v24 = vadd.f32 %v4415_v13, %v4414_v59 }
 0x160   : > { %v6148_v23 = vadd.f32 %v4352_v55, %v4240_v40  ;;  %v6151_v33 = vadd.f32 %v4416_v24, %v6026_v52 }
 0x162   : > { %v4353_v3 = vpop.f32.mrb[52].mxu1  ;;  %v4417_v54 = vpop.f32.mrb[52].mxu0 }
 0x163   : > { %v4354_v61 = vpop.f32.mrb[53].mxu1  ;;  %v4418_v12 = vpop.f32.mrb[53].mxu0 }
 0x164   : > { %v4355_v22 = vadd.f32 %v4354_v61, %v4353_v3  ;;  %v4419_v37 = vadd.f32 %v4418_v12, %v4417_v54  ;;  %v4356_v26 = vpop.f32.mrb[54].mxu1  ;;  %v4420_v44 = vpop.f32.mrb[54].mxu0 }
 0x165   : > { %v4357_v56 = vpop.f32.mrb[55].mxu1  ;;  %v4421_v9 = vpop.f32.mrb[55].mxu0 }
 0x166   : > { %v6154_v14 = vadd.f32 %v4355_v22, %v6114_v17  ;;  %v6157_v48 = vadd.f32 %v4419_v37, %v6051_v4  ;;  %v4358_v40 = vadd.f32 %v4357_v56, %v4356_v26  ;;  %v4422_v42 = vadd.f32 %v4421_v9, %v4420_v44 }
 0x168   : > { %v6159_v52 = vadd.f32 %v4358_v40, %v4246_v36  ;;  %v6162_v0 = vadd.f32 %v4422_v42, %v6058_v16 }
 0x16a   : > { %v4359_v49 = vpop.f32.mrb[56].mxu1  ;;  %v4423_v30 = vpop.f32.mrb[56].mxu0 }
 0x16b   : > { %v4360_v28 = vpop.f32.mrb[57].mxu1  ;;  %v4424_v38 = vpop.f32.mrb[57].mxu0 }
 0x16c   : > { %v4361_v35 = vadd.f32 %v4360_v28, %v4359_v49  ;;  %v4425_v11 = vadd.f32 %v4424_v38, %v4423_v30  ;;  %v4362_v51 = vpop.f32.mrb[58].mxu1  ;;  %v4426_v58 = vpop.f32.mrb[58].mxu0 }
 0x16d   : > { %v4363_v17 = vpop.f32.mrb[59].mxu1  ;;  %v4427_v60 = vpop.f32.mrb[59].mxu0 }
 0x16e   : > { %v6165_v4 = vadd.f32 %v4361_v35, %v6122_v19  ;;  %v6168_v1 = vadd.f32 %v4425_v11, %v6077_v29  ;;  %v4364_v36 = vadd.f32 %v4363_v17, %v4362_v51  ;;  %v4428_v21 = vadd.f32 %v4427_v60, %v4426_v58 }
 0x170   : > { %v6171_v16 = vadd.f32 %v4364_v36, %v6127_v32  ;;  %v6174_v59 = vadd.f32 %v4428_v21, %v6083_v7 }
 0x172   : > { %v4365_v53 = vpop.f32.mrb[60].mxu1  ;;  %v4429_v13 = vpop.f32.mrb[60].mxu0 }
 0x173   : > { %v4366_v55 = vpop.f32.mrb[61].mxu1  ;;  %v4430_v24 = vpop.f32.mrb[61].mxu0 }
 0x174   : > { %v4367_v3 = vadd.f32 %v4366_v55, %v4365_v53  ;;  %v4431_v54 = vadd.f32 %v4430_v24, %v4429_v13  ;;  %v4368_v61 = vpop.f32.mrb[62].mxu1  ;;  %v4432_v19 = vpop.f32.mrb[62].mxu0 }
 0x175   : > { %v4369_v12 = vpop.f32.mrb[63].mxu1  ;;  %v4433_v22 = vpop.f32.mrb[63].mxu0 }
 0x176   : > { %v6177_v29 = vadd.f32 %v4367_v3, %v6132_v57  ;;  %v6180_v37 = vadd.f32 %v4431_v54, %v6095_v5  ;;  %v4370_v32 = vadd.f32 %v4369_v12, %v4368_v61  ;;  %v4434_v26 = vadd.f32 %v4433_v22, %v4432_v19 }
 0x178   : > { %v6183_v7 = vadd.f32 %v4370_v32, %v6137_v47  ;;  %v6186_v44 = vadd.f32 %v4434_v26, %v6101_v43 }
 0x17a   : > { %v4371_v56 = vpop.f32.mrb[64].mxu1  ;;  %v4435_v9 = vpop.f32.mrb[64].mxu0 }
 0x17b   : > { %v4372_v40 = vpop.f32.mrb[65].mxu1  ;;  %v4436_v42 = vpop.f32.mrb[65].mxu0 }
 0x17c   : > { %v4373_v49 = vadd.f32 %v4372_v40, %v4371_v56  ;;  %v4437_v30 = vadd.f32 %v4436_v42, %v4435_v9  ;;  %v4374_v28 = vpop.f32.mrb[66].mxu1  ;;  %v4438_v57 = vpop.f32.mrb[66].mxu0 }
 0x17d   : > { %v4375_v38 = vpop.f32.mrb[67].mxu1  ;;  %v4439_v35 = vpop.f32.mrb[67].mxu0 }
 0x17e   : > { %v6189_v5 = vadd.f32 %v4373_v49, %v5886_v8  ;;  %v6192_v11 = vadd.f32 %v4437_v30, %v6108_v10  ;;  %v4376_v47 = vadd.f32 %v4375_v38, %v4374_v28  ;;  %v4440_v51 = vadd.f32 %v4439_v35, %v4438_v57 }
 0x180   : > { %v6195_v43 = vadd.f32 %v4376_v47, %v5897_v15  ;;  %v6198_v58 = vadd.f32 %v4440_v51, %v6112_v31 }
 0x182   : > { %v4377_v17 = vpop.f32.mrb[68].mxu1  ;;  %v4441_v60 = vpop.f32.mrb[68].mxu0 }
 0x183   : > { %v4378_v36 = vpop.f32.mrb[69].mxu1  ;;  %v4442_v21 = vpop.f32.mrb[69].mxu0 }
 0x184   : > { %v4379_v53 = vadd.f32 %v4378_v36, %v4377_v17  ;;  %v4443_v13 = vadd.f32 %v4442_v21, %v4441_v60  ;;  %v4380_v55 = vpop.f32.mrb[70].mxu1  ;;  %v4444_v8 = vpop.f32.mrb[70].mxu0 }
 0x185   : > { %v4381_v24 = vpop.f32.mrb[71].mxu1  ;;  %v4445_v3 = vpop.f32.mrb[71].mxu0 }
 0x186   : > { %v6201_v10 = vadd.f32 %v4379_v53, %v5916_v25  ;;  %v6204_v54 = vadd.f32 %v4443_v13, %v6117_v18  ;;  %v4382_v15 = vadd.f32 %v4381_v24, %v4380_v55  ;;  %v4446_v61 = vadd.f32 %v4445_v3, %v4444_v8 }
 0x188   : > { %v6207_v31 = vadd.f32 %v4382_v15, %v5927_v62  ;;  %v6210_v19 = vadd.f32 %v4446_v61, %v6120_v39 }
 0x18a   : > { %v4383_v12 = vpop.f32.mrb[72].mxu1  ;;  %v4447_v22 = vpop.f32.mrb[72].mxu0 }
 0x18b   : > { %v4384_v32 = vpop.f32.mrb[73].mxu1  ;;  %v4448_v26 = vpop.f32.mrb[73].mxu0 }
 0x18c   : > { %v4385_v56 = vadd.f32 %v4384_v32, %v4383_v12  ;;  %v4449_v9 = vadd.f32 %v4448_v26, %v4447_v22  ;;  %v4386_v40 = vpop.f32.mrb[74].mxu1  ;;  %v4450_v25 = vpop.f32.mrb[74].mxu0 }
 0x18d   : > { %v4387_v42 = vpop.f32.mrb[75].mxu1  ;;  %v4451_v49 = vpop.f32.mrb[75].mxu0 }
 0x18e   : > { %v6213_v18 = vadd.f32 %v4385_v56, %v5948_v34  ;;  %v6216_v30 = vadd.f32 %v4449_v9, %v6125_v2  ;;  %v4388_v62 = vadd.f32 %v4387_v42, %v4386_v40  ;;  %v4452_v28 = vadd.f32 %v4451_v49, %v4450_v25 }
 0x190   : > { %v6219_v39 = vadd.f32 %v4388_v62, %v5959_v46  ;;  %v6222_v57 = vadd.f32 %v4452_v28, %v6130_v45 }
 0x192   : > { %v4389_v38 = vpop.f32.mrb[76].mxu1  ;;  %v4453_v35 = vpop.f32.mrb[76].mxu0 }
 0x193   : > { %v4390_v47 = vpop.f32.mrb[77].mxu1  ;;  %v4454_v51 = vpop.f32.mrb[77].mxu0 }
 0x194   : > { %v4391_v17 = vadd.f32 %v4390_v47, %v4389_v38  ;;  %v4455_v60 = vadd.f32 %v4454_v51, %v4453_v35  ;;  %v4392_v36 = vpop.f32.mrb[78].mxu1  ;;  %v4456_v34 = vpop.f32.mrb[78].mxu0 }
 0x195   : > { %v4393_v21 = vpop.f32.mrb[79].mxu1  ;;  %v4457_v53 = vpop.f32.mrb[79].mxu0 }
 0x196   : > { %v6225_v2 = vadd.f32 %v4391_v17, %v5979_v50  ;;  %v6228_v13 = vadd.f32 %v4455_v60, %v6135_v27  ;;  %v4394_v46 = vadd.f32 %v4393_v21, %v4392_v36  ;;  %v4458_v55 = vadd.f32 %v4457_v53, %v4456_v34 }
 0x198   : > { %v6231_v45 = vadd.f32 %v4394_v46, %v5990_v6  ;;  %v6234_v8 = vadd.f32 %v4458_v55, %v6140_v63 }
 0x19a   : > { %v4459_v24 = vpop.f32.mrb[80].mxu0  ;;  %v4523_v3 = vpop.f32.mrb[80].mxu1 }
 0x19b   : > { %v4460_v15 = vpop.f32.mrb[81].mxu0  ;;  %v4524_v61 = vpop.f32.mrb[81].mxu1 }
 0x19c   : > { %v4461_v12 = vadd.f32 %v4460_v15, %v4459_v24  ;;  %v4525_v22 = vadd.f32 %v4524_v61, %v4523_v3  ;;  %v4462_v32 = vpop.f32.mrb[82].mxu0  ;;  %v4526_v50 = vpop.f32.mrb[82].mxu1 }
 0x19d   : > { %v4463_v26 = vpop.f32.mrb[83].mxu0  ;;  %v4527_v56 = vpop.f32.mrb[83].mxu1 }
 0x19e   : > { %v6237_v27 = vadd.f32 %v4461_v12, %v6143_v41  ;;  %v4464_v9 = vadd.f32 %v4463_v26, %v4462_v32  ;;  %v4528_v40 = vadd.f32 %v4527_v56, %v4526_v50  ;;  %v6240_v6 = vadd.f32 %v4525_v22, %v6146_v20 }
 0x1a0   : > { %v6243_v63 = vadd.f32 %v4464_v9, %v6148_v23  ;;  %v6246_v25 = vadd.f32 %v4528_v40, %v6151_v33 }
 0x1a2   : > { %v4465_v42 = vpop.f32.mrb[84].mxu0  ;;  %v4529_v49 = vpop.f32.mrb[84].mxu1 }
 0x1a3   : > { %v4466_v62 = vpop.f32.mrb[85].mxu0  ;;  %v4530_v28 = vpop.f32.mrb[85].mxu1 }
 0x1a4   : > { %v4467_v38 = vadd.f32 %v4466_v62, %v4465_v42  ;;  %v4531_v35 = vadd.f32 %v4530_v28, %v4529_v49  ;;  %v4468_v47 = vpop.f32.mrb[86].mxu0  ;;  %v4532_v41 = vpop.f32.mrb[86].mxu1 }
 0x1a5   : > { %v4469_v51 = vpop.f32.mrb[87].mxu0  ;;  %v4533_v17 = vpop.f32.mrb[87].mxu1 }
 0x1a6   : > { %v6249_v60 = vadd.f32 %v4467_v38, %v6154_v14  ;;  %v4470_v20 = vadd.f32 %v4469_v51, %v4468_v47  ;;  %v4534_v36 = vadd.f32 %v4533_v17, %v4532_v41  ;;  %v6252_v23 = vadd.f32 %v4531_v35, %v6157_v48 }
 0x1a8   : > { %v6255_v33 = vadd.f32 %v4470_v20, %v6159_v52  ;;  %v6258_v34 = vadd.f32 %v4534_v36, %v6162_v0 }
 0x1aa   : > { %v4471_v21 = vpop.f32.mrb[88].mxu0  ;;  %v4535_v53 = vpop.f32.mrb[88].mxu1 }
 0x1ab   : > { %v4472_v46 = vpop.f32.mrb[89].mxu0  ;;  %v4536_v55 = vpop.f32.mrb[89].mxu1 }
 0x1ac   : > { %v4473_v24 = vadd.f32 %v4472_v46, %v4471_v21  ;;  %v4537_v3 = vadd.f32 %v4536_v55, %v4535_v53  ;;  %v4474_v15 = vpop.f32.mrb[90].mxu0  ;;  %v4538_v14 = vpop.f32.mrb[90].mxu1 }
 0x1ad   : > { %v4475_v61 = vpop.f32.mrb[91].mxu0  ;;  %v4539_v12 = vpop.f32.mrb[91].mxu1 }
 0x1ae   : > { %v6261_v22 = vadd.f32 %v4473_v24, %v6165_v4  ;;  %v4476_v48 = vadd.f32 %v4475_v61, %v4474_v15  ;;  %v4540_v32 = vadd.f32 %v4539_v12, %v4538_v14  ;;  %v6264_v52 = vadd.f32 %v4537_v3, %v6168_v1 }
 0x1b0   : > { %v6267_v0 = vadd.f32 %v4476_v48, %v6171_v16  ;;  %v6270_v50 = vadd.f32 %v4540_v32, %v6174_v59 }
 0x1b2   : > { %v4477_v26 = vpop.f32.mrb[92].mxu0  ;;  %v4541_v56 = vpop.f32.mrb[92].mxu1 }
 0x1b3   : > { %v4478_v9 = vpop.f32.mrb[93].mxu0  ;;  %v4542_v40 = vpop.f32.mrb[93].mxu1 }
 0x1b4   : > { %v4479_v42 = vadd.f32 %v4478_v9, %v4477_v26  ;;  %v4543_v49 = vadd.f32 %v4542_v40, %v4541_v56  ;;  %v4480_v62 = vpop.f32.mrb[94].mxu0  ;;  %v4544_v4 = vpop.f32.mrb[94].mxu1 }
 0x1b5   : > { %v4481_v28 = vpop.f32.mrb[95].mxu0  ;;  %v4545_v38 = vpop.f32.mrb[95].mxu1 }
 0x1b6   : > { %v6273_v35 = vadd.f32 %v4479_v42, %v6177_v29  ;;  %v4482_v1 = vadd.f32 %v4481_v28, %v4480_v62  ;;  %v4546_v47 = vadd.f32 %v4545_v38, %v4544_v4  ;;  %v6276_v16 = vadd.f32 %v4543_v49, %v6180_v37 }
 0x1b8   : > { %v6279_v59 = vadd.f32 %v4482_v1, %v6183_v7  ;;  %v6282_v41 = vadd.f32 %v4546_v47, %v6186_v44 }
 0x1ba   : > { %v4483_v51 = vpop.f32.mrb[96].mxu0  ;;  %v4547_v17 = vpop.f32.mrb[96].mxu1 }
 0x1bb   : > { %v4484_v20 = vpop.f32.mrb[97].mxu0  ;;  %v4548_v36 = vpop.f32.mrb[97].mxu1 }
 0x1bc   : > { %v4485_v21 = vadd.f32 %v4484_v20, %v4483_v51  ;;  %v4549_v53 = vadd.f32 %v4548_v36, %v4547_v17  ;;  %v4486_v46 = vpop.f32.mrb[98].mxu0  ;;  %v4550_v29 = vpop.f32.mrb[98].mxu1 }
 0x1bd   : > { %v4487_v55 = vpop.f32.mrb[99].mxu0  ;;  %v4551_v24 = vpop.f32.mrb[99].mxu1 }
 0x1be   : > { %v6285_v3 = vadd.f32 %v4485_v21, %v6189_v5  ;;  %v4488_v37 = vadd.f32 %v4487_v55, %v4486_v46  ;;  %v4552_v15 = vadd.f32 %v4551_v24, %v4550_v29  ;;  %v6288_v7 = vadd.f32 %v4549_v53, %v6192_v11 }
 0x1c0   : > { %v6291_v44 = vadd.f32 %v4488_v37, %v6195_v43  ;;  %v6294_v14 = vadd.f32 %v4552_v15, %v6198_v58 }
 0x1c2   : > { %v4489_v61 = vpop.f32.mrb[100].mxu0  ;;  %v4553_v12 = vpop.f32.mrb[100].mxu1 }
 0x1c3   : > { %v4490_v48 = vpop.f32.mrb[101].mxu0  ;;  %v4554_v32 = vpop.f32.mrb[101].mxu1 }
 0x1c4   : > { %v4491_v26 = vadd.f32 %v4490_v48, %v4489_v61  ;;  %v4555_v56 = vadd.f32 %v4554_v32, %v4553_v12  ;;  %v4492_v9 = vpop.f32.mrb[102].mxu0  ;;  %v4556_v5 = vpop.f32.mrb[102].mxu1 }
 0x1c5   : > { %v4493_v40 = vpop.f32.mrb[103].mxu0  ;;  %v4557_v42 = vpop.f32.mrb[103].mxu1 }
 0x1c6   : > { %v6297_v49 = vadd.f32 %v4491_v26, %v6201_v10  ;;  %v4494_v11 = vadd.f32 %v4493_v40, %v4492_v9  ;;  %v4558_v62 = vadd.f32 %v4557_v42, %v4556_v5  ;;  %v6300_v43 = vadd.f32 %v4555_v56, %v6204_v54 }
 0x1c8   : > { %v6303_v58 = vadd.f32 %v4494_v11, %v6207_v31  ;;  %v6306_v4 = vadd.f32 %v4558_v62, %v6210_v19 }
 0x1ca   : > { %v4495_v28 = vpop.f32.mrb[104].mxu0  ;;  %v4559_v38 = vpop.f32.mrb[104].mxu1 }
 0x1cb   : > { %v4496_v1 = vpop.f32.mrb[105].mxu0  ;;  %v4560_v47 = vpop.f32.mrb[105].mxu1 }
 0x1cc   : > { %v4497_v51 = vadd.f32 %v4496_v1, %v4495_v28  ;;  %v4561_v17 = vadd.f32 %v4560_v47, %v4559_v38  ;;  %v4498_v20 = vpop.f32.mrb[106].mxu0  ;;  %v4562_v10 = vpop.f32.mrb[106].mxu1 }
 0x1cd   : > { %v4499_v36 = vpop.f32.mrb[107].mxu0  ;;  %v4563_v21 = vpop.f32.mrb[107].mxu1 }
 0x1ce   : > { %v6309_v53 = vadd.f32 %v4497_v51, %v6213_v18  ;;  %v4500_v54 = vadd.f32 %v4499_v36, %v4498_v20  ;;  %v4564_v46 = vadd.f32 %v4563_v21, %v4562_v10  ;;  %v6312_v31 = vadd.f32 %v4561_v17, %v6216_v30 }
 0x1d0   : > { %v6315_v19 = vadd.f32 %v4500_v54, %v6219_v39  ;;  %v6318_v29 = vadd.f32 %v4564_v46, %v6222_v57 }
 0x1d2   : > { %v4501_v55 = vpop.f32.mrb[108].mxu0  ;;  %v4565_v24 = vpop.f32.mrb[108].mxu1 }
 0x1d3   : > { %v4502_v37 = vpop.f32.mrb[109].mxu0  ;;  %v4566_v15 = vpop.f32.mrb[109].mxu1 }
 0x1d4   : > { %v4503_v61 = vadd.f32 %v4502_v37, %v4501_v55  ;;  %v4567_v12 = vadd.f32 %v4566_v15, %v4565_v24  ;;  %v4504_v18 = vpop.f32.mrb[110].mxu0  ;;  %v4568_v48 = vpop.f32.mrb[110].mxu1 }
 0x1d5   : > { %v4505_v32 = vpop.f32.mrb[111].mxu0  ;;  %v4569_v26 = vpop.f32.mrb[111].mxu1 }
 0x1d6   : > { %v6321_v30 = vadd.f32 %v4503_v61, %v6225_v2  ;;  %v4506_v56 = vadd.f32 %v4505_v32, %v4504_v18  ;;  %v4570_v39 = vadd.f32 %v4569_v26, %v4568_v48  ;;  %v6324_v9 = vadd.f32 %v4567_v12, %v6228_v13 }
 0x1d8   : > { %v6327_v57 = vadd.f32 %v4506_v56, %v6231_v45  ;;  %v6330_v5 = vadd.f32 %v4570_v39, %v6234_v8 }
 0x1da   : > { %v4571_v40 = vpop.f32.mrb[112].mxu1  ;;  %v4661_v42 = vpop.f32.mrb[112].mxu0 }
 0x1db   : > { %v3216_v11 = vadd.f32 %v4661_v42, %v6252_v23  ;;  %v4572_v62 = vpop.f32.mrb[113].mxu1  ;;  %v3207_v28 = vpop.f32.mrb[113].mxu0 }
 0x1dc   : > { %v4573_v2 = vadd.f32 %v4572_v62, %v4571_v40  ;;  %v3208_v38 = vadd.f32 %v3207_v28, %v6240_v6  ;;  %v4574_v1 = vpop.f32.mrb[114].mxu1  ;;  %v4662_v47 = vpop.f32.mrb[114].mxu0 }
 0x1dd   : > { %v3219_v13 = vadd.f32 %v4662_v47, %v6258_v34  ;;  %v4575_v51 = vpop.f32.mrb[115].mxu1  ;;  %v3210_v45 = vpop.f32.mrb[115].mxu0  ;;  %v3373_v54 = vmul.f32 %v3216_v11, %v3216_v11 }
 0x1de   : > { %v4576_v8 = vadd.f32 %v4575_v51, %v4574_v1  ;;  %v3211_v23 = vadd.f32 %v3210_v45, %v6246_v25  ;;  %v6343_v17 = vadd.f32 %v4573_v2, %v6237_v27  ;;  %v3371_v6 = vmul.f32 %v3208_v38, %v3208_v38 }
 0x1df   : > { %v4084_v20 = vpack.c.bf16 %v3219_v13, %v3216_v11  ;;  %v3374_v15 = vmul.f32 %v3219_v13, %v3219_v13 }
 0x1e0   : > { %v3334_v10 = vadd.f32 %v3211_v23, %v3208_v38  ;;  %v3372_v36 = vmul.f32 %v3211_v23, %v3211_v23  ;;  %v4079_v34 = vpack.c.bf16 %v3211_v23, %v3208_v38  ;;  %v6346_v21 = vadd.f32 %v4576_v8, %v6243_v63 }
 0x1e1   : > { %4156 = vst [vmem:[%s6339_s26 + $0x8] sm:$0xff] %v4084_v20  }
 0x1e2   : > { %v3335_v46 = vadd.f32 %v3334_v10, %v3216_v11  ;;  %v3403_v55 = vadd.f32 %v3372_v36, %v3371_v6  ;;  %4080 = vst [vmem:[%s6339_s26] sm:$0xff] %v4079_v34   ;;  %v4577_v24 = vpop.f32.mrb[116].mxu1  ;;  %v4665_v37 = vpop.f32.mrb[116].mxu0 }
 0x1e3   : > { %v3232_v25 = vadd.f32 %v4665_v37, %v6276_v16  ;;  %v4578_v27 = vpop.f32.mrb[117].mxu1  ;;  %v3223_v61 = vpop.f32.mrb[117].mxu0 }
 0x1e4   : > { %v3404_v12 = vadd.f32 %v3403_v55, %v3373_v54  ;;  %v4579_v18 = vadd.f32 %v4578_v27, %v4577_v24  ;;  %v3224_v48 = vadd.f32 %v3223_v61, %v6264_v52  ;;  %v3336_v32 = vadd.f32 %v3335_v46, %v3219_v13  ;;  %v4580_v63 = vpop.f32.mrb[118].mxu1  ;;  %v4666_v26 = vpop.f32.mrb[118].mxu0 }
 0x1e5   : > { %v3235_v56 = vadd.f32 %v4666_v26, %v6282_v41  ;;  %v4581_v39 = vpop.f32.mrb[119].mxu1  ;;  %v3226_v40 = vpop.f32.mrb[119].mxu0  ;;  %v3377_v8 = vmul.f32 %v3232_v25, %v3232_v25 }
 0x1e6   : > { %v3337_v42 = vadd.f32 %v3336_v32, %v3224_v48  ;;  %v3375_v11 = vmul.f32 %v3224_v48, %v3224_v48  ;;  %v3405_v62 = vadd.f32 %v3404_v12, %v3374_v15  ;;  %v4582_v28 = vadd.f32 %v4581_v39, %v4580_v63 }
 0x1e7   : > { %v4094_v16 = vpack.c.bf16 %v3235_v56, %v3232_v25  ;;  %v3227_v2 = vadd.f32 %v3226_v40, %v6270_v50  ;;  %v6355_v38 = vadd.f32 %v4579_v18, %v6249_v60  ;;  %v3378_v54 = vmul.f32 %v3235_v56, %v3235_v56 }
 0x1e8   : > { %v3406_v52 = vadd.f32 %v3405_v62, %v3375_v11  ;;  %v6358_v1 = vadd.f32 %v4582_v28, %v6255_v33 }
 0x1e9   : > { %4158 = vst [vmem:[%s6339_s26 + $0x18] sm:$0xff] %v4094_v16   ;;  %v3338_v47 = vadd.f32 %v3337_v42, %v3227_v2  ;;  %v3376_v41 = vmul.f32 %v3227_v2, %v3227_v2  ;;  %v4089_v13 = vpack.c.bf16 %v3227_v2, %v3224_v48 }
 0x1ea   : > { %v4583_v51 = vpop.f32.mrb[120].mxu1  ;;  %v4669_v45 = vpop.f32.mrb[120].mxu0 }
 0x1eb   : > { %v3339_v23 = vadd.f32 %v3338_v47, %v3232_v25  ;;  %v3407_v6 = vadd.f32 %v3406_v52, %v3376_v41  ;;  %4157 = vst [vmem:[%s6339_s26 + $0x10] sm:$0xff] %v4089_v13   ;;  %v3248_v20 = vadd.f32 %v4669_v45, %v6300_v43  ;;  %v4584_v50 = vpop.f32.mrb[121].mxu1  ;;  %v3239_v10 = vpop.f32.mrb[121].mxu0 }
 0x1ec   : > { %v4585_v60 = vadd.f32 %v4584_v50, %v4583_v51  ;;  %v3240_v36 = vadd.f32 %v3239_v10, %v6288_v7  ;;  %v4586_v34 = vpop.f32.mrb[122].mxu1  ;;  %v4670_v33 = vpop.f32.mrb[122].mxu0 }
 0x1ed   : > { %v3408_v46 = vadd.f32 %v3407_v6, %v3377_v8  ;;  %v3340_v55 = vadd.f32 %v3339_v23, %v3235_v56  ;;  %v3251_v24 = vadd.f32 %v4670_v33, %v6306_v4  ;;  %v4587_v37 = vpop.f32.mrb[123].mxu1  ;;  %v3242_v15 = vpop.f32.mrb[123].mxu0  ;;  %v3381_v40 = vmul.f32 %v3248_v20, %v3248_v20 }
 0x1ee   : > { %v3379_v25 = vmul.f32 %v3240_v36, %v3240_v36  ;;  %v4588_v27 = vadd.f32 %v4587_v37, %v4586_v34  ;;  %v3243_v43 = vadd.f32 %v3242_v15, %v6294_v14  ;;  %v6367_v61 = vadd.f32 %v4585_v60, %v6261_v22 }
 0x1ef   : > { %v3341_v12 = vadd.f32 %v3340_v55, %v3240_v36  ;;  %v3409_v7 = vadd.f32 %v3408_v46, %v3378_v54  ;;  %v4104_v18 = vpack.c.bf16 %v3251_v24, %v3248_v20 }
 0x1f0   : > { %v3380_v48 = vmul.f32 %v3243_v43, %v3243_v43  ;;  %v4099_v32 = vpack.c.bf16 %v3243_v43, %v3240_v36  ;;  %v6370_v63 = vadd.f32 %v4588_v27, %v6267_v0  ;;  %v3382_v0 = vmul.f32 %v3251_v24, %v3251_v24 }
 0x1f1   : > { %v3410_v26 = vadd.f32 %v3409_v7, %v3379_v25  ;;  %4160 = vst [vmem:[%s6339_s26 + $0x28] sm:$0xff] %v4104_v18   ;;  %v3342_v4 = vadd.f32 %v3341_v12, %v3243_v43 }
 0x1f2   : > { %4159 = vst [vmem:[%s6339_s26 + $0x20] sm:$0xff] %v4099_v32   ;;  %v4589_v56 = vpop.f32.mrb[124].mxu1  ;;  %v4673_v39 = vpop.f32.mrb[124].mxu0 }
 0x1f3   : > { %v3343_v42 = vadd.f32 %v3342_v4, %v3248_v20  ;;  %v3411_v14 = vadd.f32 %v3410_v26, %v3380_v48  ;;  %v3264_v22 = vadd.f32 %v4673_v39, %v6324_v9  ;;  %v4590_v11 = vpop.f32.mrb[125].mxu1  ;;  %v3255_v62 = vpop.f32.mrb[125].mxu0 }
 0x1f4   : > { %v4591_v28 = vadd.f32 %v4590_v11, %v4589_v56  ;;  %v3256_v16 = vadd.f32 %v3255_v62, %v6312_v31  ;;  %v4592_v2 = vpop.f32.mrb[126].mxu1  ;;  %v4674_v52 = vpop.f32.mrb[126].mxu0 }
 0x1f5   : > { %v3412_v47 = vadd.f32 %v3411_v14, %v3381_v40  ;;  %v3344_v41 = vadd.f32 %v3343_v42, %v3251_v24  ;;  %v3267_v13 = vadd.f32 %v4674_v52, %v6330_v5  ;;  %v4593_v51 = vpop.f32.mrb[127].mxu1  ;;  %v3258_v45 = vpop.f32.mrb[127].mxu0  ;;  %v3385_v46 = vmul.f32 %v3264_v22, %v3264_v22 }
 0x1f6   : > { %v3383_v8 = vmul.f32 %v3256_v16, %v3256_v16  ;;  %v4594_v23 = vadd.f32 %v4593_v51, %v4592_v2  ;;  %v3259_v9 = vadd.f32 %v3258_v45, %v6318_v29  ;;  %v3135_v6 = vadd.f32 %v4591_v28, %v6273_v35 }
 0x1f7   : > { %v3345_v20 = vadd.f32 %v3344_v41, %v3256_v16  ;;  %v3413_v50 = vadd.f32 %v3412_v47, %v3382_v0  ;;  %v4114_v31 = vpack.c.bf16 %v3267_v13, %v3264_v22  ;;  %v3386_v12 = vmul.f32 %v3267_v13, %v3267_v13 }
 0x1f8   : > { %v3384_v10 = vmul.f32 %v3259_v9, %v3259_v9  ;;  %v4109_v60 = vpack.c.bf16 %v3259_v9, %v3256_v16  ;;  %v3138_v36 = vadd.f32 %v4594_v23, %v6279_v59 }
 0x1f9   : > { %v3414_v34 = vadd.f32 %v3413_v50, %v3383_v8  ;;  %4162 = vst [vmem:[%s6339_s26 + $0x38] sm:$0xff] %v4114_v31   ;;  %v3346_v33 = vadd.f32 %v3345_v20, %v3259_v9 }
 0x1fa   : > { %4161 = vst [vmem:[%s6339_s26 + $0x30] sm:$0xff] %v4109_v60   ;;  %v4595_v5 = vpop.f32.mrb[128].mxu1  ;;  %v4677_v54 = vpop.f32.mrb[128].mxu0 }
 0x1fb   : > { %v3347_v55 = vadd.f32 %v3346_v33, %v3264_v22  ;;  %v3415_v24 = vadd.f32 %v3414_v34, %v3384_v10  ;;  %v3280_v29 = vadd.f32 %v4677_v54, %v6355_v38  ;;  %v4596_v37 = vpop.f32.mrb[129].mxu1  ;;  %v3271_v35 = vpop.f32.mrb[129].mxu0 }
 0x1fc   : > { %v4597_v15 = vadd.f32 %v4596_v37, %v4595_v5  ;;  %v3272_v25 = vadd.f32 %v3271_v35, %v6343_v17  ;;  %v4598_v27 = vpop.f32.mrb[130].mxu1  ;;  %v4678_v43 = vpop.f32.mrb[130].mxu0 }
 0x1fd   : > { %v3416_v59 = vadd.f32 %v3415_v24, %v3385_v46  ;;  %v3348_v7 = vadd.f32 %v3347_v55, %v3267_v13  ;;  %v3283_v18 = vadd.f32 %v4678_v43, %v6358_v1  ;;  %v4599_v48 = vpop.f32.mrb[131].mxu1  ;;  %v3274_v32 = vpop.f32.mrb[131].mxu0  ;;  %v3389_v16 = vmul.f32 %v3280_v29, %v3280_v29 }
 0x1fe   : > { %v3387_v26 = vmul.f32 %v3272_v25, %v3272_v25  ;;  %v4600_v4 = vadd.f32 %v4599_v48, %v4598_v27  ;;  %v3275_v38 = vadd.f32 %v3274_v32, %v6346_v21  ;;  %v3143_v56 = vadd.f32 %v4597_v15, %v6285_v3 }
 0x1ff   : > { %v3349_v39 = vadd.f32 %v3348_v7, %v3272_v25  ;;  %v3417_v40 = vadd.f32 %v3416_v59, %v3386_v12  ;;  %v4124_v17 = vpack.c.bf16 %v3283_v18, %v3280_v29  ;;  %v3390_v45 = vmul.f32 %v3283_v18, %v3283_v18 }
 0x200   : > { %v3388_v42 = vmul.f32 %v3275_v38, %v3275_v38  ;;  %v4119_v14 = vpack.c.bf16 %v3275_v38, %v3272_v25  ;;  %v3146_v22 = vadd.f32 %v4600_v4, %v6291_v44 }
 0x201   : > { %v3418_v11 = vadd.f32 %v3417_v40, %v3387_v26  ;;  %4164 = vst [vmem:[%s6339_s26 + $0x48] sm:$0xff] %v4124_v17   ;;  %v3350_v62 = vadd.f32 %v3349_v39, %v3275_v38 }
 0x202   : > { %4163 = vst [vmem:[%s6339_s26 + $0x40] sm:$0xff] %v4119_v14   ;;  %v4601_v1 = vpop.f32.mrb[132].mxu1  ;;  %v4681_v28 = vpop.f32.mrb[132].mxu0 }
 0x203   : > { %v3351_v2 = vadd.f32 %v3350_v62, %v3280_v29  ;;  %v3419_v52 = vadd.f32 %v3418_v11, %v3388_v42  ;;  %v3296_v0 = vadd.f32 %v4681_v28, %v3135_v6  ;;  %v4602_v21 = vpop.f32.mrb[133].mxu1  ;;  %v3287_v47 = vpop.f32.mrb[133].mxu0 }
 0x204   : > { %v4603_v3 = vadd.f32 %v4602_v21, %v4601_v1  ;;  %v3288_v41 = vadd.f32 %v3287_v47, %v6367_v61  ;;  %v4604_v13 = vpop.f32.mrb[134].mxu1  ;;  %v4682_v51 = vpop.f32.mrb[134].mxu0 }
 0x205   : > { %v3420_v8 = vadd.f32 %v3419_v52, %v3389_v16  ;;  %v3352_v44 = vadd.f32 %v3351_v2, %v3283_v18  ;;  %v3299_v23 = vadd.f32 %v4682_v51, %v3138_v36  ;;  %v4605_v9 = vpop.f32.mrb[135].mxu1  ;;  %v3290_v20 = vpop.f32.mrb[135].mxu0  ;;  %v3393_v29 = vmul.f32 %v3296_v0, %v3296_v0 }
 0x206   : > { %v3391_v50 = vmul.f32 %v3288_v41, %v3288_v41  ;;  %v4606_v31 = vadd.f32 %v4605_v9, %v4604_v13  ;;  %v3291_v10 = vadd.f32 %v3290_v20, %v6370_v63  ;;  %v3151_v6 = vadd.f32 %v4603_v3, %v6297_v49 }
 0x207   : > { %v3353_v60 = vadd.f32 %v3352_v44, %v3288_v41  ;;  %v3421_v34 = vadd.f32 %v3420_v8, %v3390_v45  ;;  %v4134_v33 = vpack.c.bf16 %v3299_v23, %v3296_v0  ;;  %v3394_v59 = vmul.f32 %v3299_v23, %v3299_v23 }
 0x208   : > { %v3392_v61 = vmul.f32 %v3291_v10, %v3291_v10  ;;  %v4129_v5 = vpack.c.bf16 %v3291_v10, %v3288_v41  ;;  %v3154_v54 = vadd.f32 %v4606_v31, %v6303_v58 }
 0x209   : > { %v3422_v46 = vadd.f32 %v3421_v34, %v3391_v50  ;;  %4166 = vst [vmem:[%s6339_s26 + $0x58] sm:$0xff] %v4134_v33   ;;  %v3354_v55 = vadd.f32 %v3353_v60, %v3291_v10 }
 0x20a   : > { %4165 = vst [vmem:[%s6339_s26 + $0x50] sm:$0xff] %v4129_v5   ;;  %v4607_v36 = vpop.f32.mrb[136].mxu1  ;;  %v4685_v24 = vpop.f32.mrb[136].mxu0 }
 0x20b   : > { %v3355_v37 = vadd.f32 %v3354_v55, %v3296_v0  ;;  %v3423_v35 = vadd.f32 %v3422_v46, %v3392_v61  ;;  %v3312_v15 = vadd.f32 %v4685_v24, %v3151_v6  ;;  %v4608_v63 = vpop.f32.mrb[137].mxu1  ;;  %v3303_v25 = vpop.f32.mrb[137].mxu0 }
 0x20c   : > { %v4609_v49 = vadd.f32 %v4608_v63, %v4607_v36  ;;  %v3304_v27 = vadd.f32 %v3303_v25, %v3143_v56  ;;  %v4610_v43 = vpop.f32.mrb[138].mxu1  ;;  %v4686_v12 = vpop.f32.mrb[138].mxu0 }
 0x20d   : > { %v3424_v7 = vadd.f32 %v3423_v35, %v3393_v29  ;;  %v3356_v58 = vadd.f32 %v3355_v37, %v3299_v23  ;;  %v3315_v18 = vadd.f32 %v4686_v12, %v3154_v54  ;;  %v4611_v48 = vpop.f32.mrb[139].mxu1  ;;  %v3306_v32 = vpop.f32.mrb[139].mxu0  ;;  %v3397_v2 = vmul.f32 %v3312_v15, %v3312_v15 }
 0x20e   : > { %v3395_v26 = vmul.f32 %v3304_v27, %v3304_v27  ;;  %v4612_v4 = vadd.f32 %v4611_v48, %v4610_v43  ;;  %v3307_v38 = vadd.f32 %v3306_v32, %v3146_v22  ;;  %v3159_v39 = vadd.f32 %v4609_v49, %v6309_v53 }
 0x20f   : > { %v3357_v40 = vadd.f32 %v3356_v58, %v3304_v27  ;;  %v3425_v17 = vadd.f32 %v3424_v7, %v3394_v59  ;;  %v4144_v42 = vpack.c.bf16 %v3315_v18, %v3312_v15  ;;  %v3398_v13 = vmul.f32 %v3315_v18, %v3315_v18 }
 0x210   : > { %v3396_v14 = vmul.f32 %v3307_v38, %v3307_v38  ;;  %v4139_v56 = vpack.c.bf16 %v3307_v38, %v3304_v27  ;;  %v3162_v11 = vadd.f32 %v4612_v4, %v6315_v19 }
 0x211   : > { %v3426_v62 = vadd.f32 %v3425_v17, %v3395_v26  ;;  %4168 = vst [vmem:[%s6339_s26 + $0x68] sm:$0xff] %v4144_v42   ;;  %v3358_v1 = vadd.f32 %v3357_v40, %v3307_v38 }
 0x212   : > { %4167 = vst [vmem:[%s6339_s26 + $0x60] sm:$0xff] %v4139_v56   ;;  %v4613_v28 = vpop.f32.mrb[140].mxu1  ;;  %v4689_v16 = vpop.f32.mrb[140].mxu0 }
 0x213   : > { %v3359_v52 = vadd.f32 %v3358_v1, %v3312_v15  ;;  %v3427_v0 = vadd.f32 %v3426_v62, %v3396_v14  ;;  %v4614_v21 = vpop.f32.mrb[141].mxu1  ;;  %v3319_v22 = vpop.f32.mrb[141].mxu0 }
 0x214   : > { %v4615_v47 = vadd.f32 %v4614_v21, %v4613_v28  ;;  %v3320_v53 = vadd.f32 %v3319_v22, %v3159_v39  ;;  %v4616_v3 = vpop.f32.mrb[142].mxu1  ;;  %v4690_v41 = vpop.f32.mrb[142].mxu0 }
 0x215   : > { %v3428_v51 = vadd.f32 %v3427_v0, %v3397_v2  ;;  %v3360_v45 = vadd.f32 %v3359_v52, %v3315_v18  ;;  %v4617_v8 = vpop.f32.mrb[143].mxu1  ;;  %v3322_v19 = vpop.f32.mrb[143].mxu0 }
 0x216   : > { %v3167_v44 = vadd.f32 %v4615_v47, %v6321_v30  ;;  %v3399_v23 = vmul.f32 %v3320_v53, %v3320_v53  ;;  %v4618_v9 = vadd.f32 %v4617_v8, %v4616_v3  ;;  %v3323_v20 = vadd.f32 %v3322_v19, %v3162_v11 }
 0x217   : > { %v3361_v50 = vadd.f32 %v3360_v45, %v3320_v53  ;;  %v3429_v31 = vadd.f32 %v3428_v51, %v3398_v13 }
 0x218   : > { %v3328_v10 = vadd.f32 %v4689_v16, %v3167_v44  ;;  %v3170_v6 = vadd.f32 %v4618_v9, %v6327_v57  ;;  %v3400_v60 = vmul.f32 %v3323_v20, %v3323_v20  ;;  %v4149_v34 = vpack.c.bf16 %v3323_v20, %v3320_v53 }
 0x219   : > { %v3430_v33 = vadd.f32 %v3429_v31, %v3399_v23  ;;  %v3362_v61 = vadd.f32 %v3361_v50, %v3323_v20 }
 0x21a   : > { %v3401_v5 = vmul.f32 %v3328_v10, %v3328_v10  ;;  %v3331_v54 = vadd.f32 %v4690_v41, %v3170_v6  ;;  %4169 = vst [vmem:[%s6339_s26 + $0x70] sm:$0xff] %v4149_v34  }
 0x21b   : > { %v3363_v46 = vadd.f32 %v3362_v61, %v3328_v10  ;;  %v3431_v55 = vadd.f32 %v3430_v33, %v3400_v60 }
 0x21c   : > { %v3402_v30 = vmul.f32 %v3331_v54, %v3331_v54  ;;  %v4154_v36 = vpack.c.bf16 %v3331_v54, %v3328_v10 }
 0x21d   : > { %v3364_v24 = vadd.f32 %v3363_v46, %v3331_v54  ;;  %v3432_v29 = vadd.f32 %v3431_v55, %v3401_v5 }
 0x21e   : > { %4170 = vst [vmem:[%s6339_s26 + $0x78] sm:$0xff] %v4154_v36  }
 0x21f   : > { %v3365_v37 = vrot.slane %v3364_v24, 4  ;;  %v3433_v35 = vadd.f32 %v3432_v29, %v3402_v30 }
 0x221   : > { %v3366_v15 = vadd.f32 %v3365_v37, %v3364_v24  ;;  %v3434_v63 = vrot.slane %v3433_v35, 4 }
 0x223   : > { %v3367_v57 = vrot.slane %v3366_v15, 2  ;;  %v3435_v25 = vadd.f32 %v3434_v63, %v3433_v35 }
 0x225   : > { %v3368_v49 = vadd.f32 %v3367_v57, %v3366_v15  ;;  %v3436_v27 = vrot.slane %v3435_v25, 2 }
 0x227   : > { %v3369_v43 = vrot.slane %v3368_v49, 1  ;;  %v3437_v12 = vadd.f32 %v3436_v27, %v3435_v25 }
 0x229   : > { %v3438_v59 = vrot.slane %v3437_v12, 1  ;;  %v3370_v7 = vadd.f32 %v3369_v43, %v3368_v49 }
 0x22b   : > { %v3439_v58 = vadd.f32 %v3438_v59, %v3437_v12 }
 0x22d   : > { %v3441_v18 = vsel %vm3440_vm2, %v3370_v7, %v3439_v58 }
 0x22e   : > { %3442 = vst [vmem:[%s365_s30] sm:$0x3] %v3441_v18 }
 0x22f PF: > { %s16_s20 = sadd.s32 1, %s4978_s20   ;;  %s6423_s18 = smov %s4974_s19 }
 0x230   : > { %p13_p5 = scmp.ge.s32.totalorder %s16_s20, 4   ;;  %s6424_s19 = smov %s6426_s21 }
 0x232   :  { %15 = sbr.rel (!%p13_p5) target bundleno = 2 (0x2), region = 84 }

</bundles_post_ra>
